<compile_context>
chip_gen: v7x
topology: tpu7x:2x2x1
jax: 0.10.0
libtpu: 0.0.40
codegen_flags: <defaults>
</compile_context>

<pallas_src>
import functools
import numpy as np
import jax
import jax.numpy as jnp
from jax.experimental import pallas as pl
from jax.experimental.pallas import tpu as pltpu

# Set to jnp.bfloat16 on v6e/v7x for ~2x MXU throughput (accumulation stays f32
# via preferred_element_type). Kept f32 here so the numeric check stays tight.
MATMUL_DTYPE = jnp.float32

NEG_INF = -1e30


# ----------------------------------------------------------------------------
# Static neighborhood-attention index math (exact natten semantics).
# ----------------------------------------------------------------------------
def _window_start(idx, length, K, D):
    nb = K // 2
    if D <= 1:
        start = max(idx - nb, 0)
        if idx + nb >= length:
            start += length - idx - nb - 1
        return start
    ni = idx - nb * D
    if ni < 0:
        return idx % D
    if idx + nb * D >= length:
        imodd = idx % D
        a = (length // D) * D
        b = length - a
        if imodd < b:
            return length - b + imodd - 2 * nb * D
        return a + imodd - K * D
    return ni


def _pb_start(idx, length, K, D):
    nb = K // 2
    if D <= 1:
        start = nb
        if idx < nb:
            start += nb - idx
        if idx + nb >= length:
            start += length - idx - 1 - nb
        return start
    if idx - nb * D < 0:
        return K - 1 - (idx // D)
    if idx + nb * D >= length:
        return (length - idx - 1) // D
    return nb


@functools.lru_cache(maxsize=None)
def neighborhood_indices(H, W, K, D):
    """Static flat neighbor indices (into H*W) and relative-position-bias
    indices (into (2K-1)*(2K-1)) for every query pixel (numpy)."""
    nbr = np.zeros((H * W, K * K), dtype=np.int32)
    rpb = np.zeros((H * W, K * K), dtype=np.int32)
    for i in range(H):
        si, pi = _window_start(i, H, K, D), _pb_start(i, H, K, D)
        for j in range(W):
            sj, pj = _window_start(j, W, K, D), _pb_start(j, W, K, D)
            q = i * W + j
            for ki in range(K):
                for kj in range(K):
                    nbr[q, ki * K + kj] = (si + ki * D) * W + (sj + kj * D)
                    rpb[q, ki * K + kj] = (pi + ki) * (2 * K - 1) + (pj + kj)
    return nbr, rpb


def build_na_bias(H, W, K, D, rpb):
    """Dense additive bias (nh, Q, Q): rpb value at neighbor positions,
    -1e30 elsewhere. Built from static numpy index maps; the only traced op is
    a tiny gather on the (nh, (2K-1)^2) rpb table.
    TODO(synk): for very large feature maps (Q >> 1000) switch to a query-banded
    / in-kernel gather formulation instead of the dense (nh, Q, Q) bias."""
    nbr, rpbidx = neighborhood_indices(H, W, K, D)
    Q = H * W
    L = K * K
    rows = np.repeat(np.arange(Q, dtype=np.int32), L)
    cols = nbr.reshape(-1)
    rpbmap = np.zeros((Q, Q), dtype=np.int32)
    mask = np.full((Q, Q), NEG_INF, dtype=np.float32)
    rpbmap[rows, cols] = rpbidx.reshape(-1)
    mask[rows, cols] = 0.0
    nh = rpb.shape[0]
    rpb_flat = rpb.reshape(nh, -1).astype(jnp.float32)
    bias = rpb_flat[:, rpbmap] + jnp.asarray(mask)[None]      # (nh, Q, Q)
    return bias


def _row_tile(n, max_tile=512):
    """Largest multiple-of-8 divisor of n up to max_tile (big tiles for the
    mem-bound row-wise kernels)."""
    best = None
    for t in range(8, min(n, max_tile) + 1, 8):
        if n % t == 0:
            best = t
    if best is None:
        # TODO(synk): pad N to a multiple of 8 instead of a whole-N block.
        return n
    return best


# ----------------------------------------------------------------------------
# Kernel 1: fused LayerNorm + QKV projection (3 separate outputs, head-packed C)
# ----------------------------------------------------------------------------
def _ln_qkv_kernel(x_ref, g_ref, b_ref, wq_ref, wk_ref, wv_ref,
                   bq_ref, bk_ref, bv_ref, q_ref, k_ref, v_ref):
    x = x_ref[...].astype(jnp.float32)
    mean = jnp.mean(x, axis=-1, keepdims=True)
    xc = x - mean
    var = jnp.mean(xc * xc, axis=-1, keepdims=True)
    xn = xc * jax.lax.rsqrt(var + 1e-5) * g_ref[...] + b_ref[...]
    xm = xn.astype(MATMUL_DTYPE)
    q = jnp.dot(xm, wq_ref[...].astype(MATMUL_DTYPE),
                preferred_element_type=jnp.float32) + bq_ref[...]
    k = jnp.dot(xm, wk_ref[...].astype(MATMUL_DTYPE),
                preferred_element_type=jnp.float32) + bk_ref[...]
    v = jnp.dot(xm, wv_ref[...].astype(MATMUL_DTYPE),
                preferred_element_type=jnp.float32) + bv_ref[...]
    q_ref[...] = q.astype(q_ref.dtype)
    k_ref[...] = k.astype(k_ref.dtype)
    v_ref[...] = v.astype(v_ref.dtype)


def pallas_ln_qkv(x, g, b, wq, wk, wv, bq, bk, bv):
    N, C = x.shape
    tm = _row_tile(N)
    row = pl.BlockSpec((tm, C), lambda i: (i, 0))
    vec = pl.BlockSpec((1, C), lambda i: (0, 0))
    wsp = pl.BlockSpec((C, C), lambda i: (0, 0))
    cost = pl.CostEstimate(flops=int(6 * N * C * C),
                           transcendentals=int(N),
                           bytes_accessed=int(4 * (4 * N * C + 3 * C * C + 6 * C)))
    return pl.pallas_call(
        _ln_qkv_kernel,
        out_shape=tuple(jax.ShapeDtypeStruct((N, C), x.dtype) for _ in range(3)),
        grid=(N // tm,),
        in_specs=[row, vec, vec, wsp, wsp, wsp, vec, vec, vec],
        out_specs=(row, row, row),
        compiler_params=pltpu.CompilerParams(dimension_semantics=("parallel",)),
        cost_estimate=cost,
    )(x, g.reshape(1, C), b.reshape(1, C), wq, wk, wv,
      bq.reshape(1, C), bk.reshape(1, C), bv.reshape(1, C))


# ----------------------------------------------------------------------------
# Kernel 2: neighborhood attention (MXU, dense masked scores) + proj + residual
# ----------------------------------------------------------------------------
def _make_na_kernel(nh, hd):
    def kernel(q_ref, k_ref, v_ref, bias_ref, res_ref, pw_ref, pb_ref, o_ref):
        heads = []
        for h in range(nh):
            lo, hi = h * hd, (h + 1) * hd
            qh = q_ref[0, :, lo:hi].astype(MATMUL_DTYPE)          # (tq, hd)
            kh = k_ref[0, :, lo:hi].astype(MATMUL_DTYPE)          # (Q, hd)
            vh = v_ref[0, :, lo:hi].astype(MATMUL_DTYPE)          # (Q, hd)
            # scores on the MXU: (tq, hd) . (Q, hd)^T -> (tq, Q)
            s = jax.lax.dot_general(qh, kh, (((1,), (1,)), ((), ())),
                                    preferred_element_type=jnp.float32)
            s = s + bias_ref[h]                                   # rpb + -inf mask
            s = s - jnp.max(s, axis=-1, keepdims=True)
            p = jnp.exp(s)
            p = p * pl.reciprocal(jnp.sum(p, axis=-1, keepdims=True), approx=True)
            heads.append(jnp.dot(p.astype(MATMUL_DTYPE), vh,
                                 preferred_element_type=jnp.float32))  # (tq, hd)
        o = jnp.concatenate(heads, axis=-1)                       # (tq, C) lane-dense
        y = jnp.dot(o.astype(MATMUL_DTYPE), pw_ref[...].astype(MATMUL_DTYPE),
                    preferred_element_type=jnp.float32) + pb_ref[...]
        o_ref[0] = (res_ref[0].astype(jnp.float32) + y).astype(o_ref.dtype)
    return kernel


def pallas_na_attention_proj(q, k, v, bias, shortcut, proj_w, proj_b, nh):
    B, Q, C = q.shape
    hd = C // nh
    tq = _row_tile(Q, max_tile=256)
    nqt = Q // tq
    qspec = pl.BlockSpec((1, tq, C), lambda b, t: (b, t, 0))
    kvspec = pl.BlockSpec((1, Q, C), lambda b, t: (b, 0, 0))
    bspec = pl.BlockSpec((nh, tq, Q), lambda b, t: (0, t, 0))
    wspec = pl.BlockSpec((C, C), lambda b, t: (0, 0))
    pbspec = pl.BlockSpec((1, C), lambda b, t: (0, 0))
    cost = pl.CostEstimate(
        flops=int(B * (4 * nh * Q * Q * hd + 2 * Q * C * C)),
        transcendentals=int(B * nh * Q * Q),
        bytes_accessed=int(4 * (5 * B * Q * C + nh * Q * Q + C * C + C)))
    return pl.pallas_call(
        _make_na_kernel(nh, hd),
        out_shape=jax.ShapeDtypeStruct((B, Q, C), q.dtype),
        grid=(B, nqt),
        in_specs=[qspec, kvspec, kvspec, bspec, qspec, wspec, pbspec],
        out_specs=qspec,
        compiler_params=pltpu.CompilerParams(
            dimension_semantics=("parallel", "parallel")),
        cost_estimate=cost,
    )(q, k, v, bias, shortcut, proj_w, proj_b.reshape(1, C))


# ----------------------------------------------------------------------------
# Kernel 3: fused LayerNorm + FC1 + GELU + FC2 + residual
# ----------------------------------------------------------------------------
def _ln_mlp_kernel(x_ref, g_ref, b_ref, w1_ref, b1_ref, w2_ref, b2_ref, o_ref):
    x = x_ref[...].astype(jnp.float32)
    mean = jnp.mean(x, axis=-1, keepdims=True)
    xc = x - mean
    var = jnp.mean(xc * xc, axis=-1, keepdims=True)
    xn = xc * jax.lax.rsqrt(var + 1e-5) * g_ref[...] + b_ref[...]
    h = jnp.dot(xn.astype(MATMUL_DTYPE), w1_ref[...].astype(MATMUL_DTYPE),
                preferred_element_type=jnp.float32) + b1_ref[...]
    h = 0.5 * h * (1.0 + jax.lax.erf(h * 0.7071067811865476))    # exact GELU
    y = jnp.dot(h.astype(MATMUL_DTYPE), w2_ref[...].astype(MATMUL_DTYPE),
                preferred_element_type=jnp.float32) + b2_ref[...]
    o_ref[...] = (x + y).astype(o_ref.dtype)


def pallas_ln_mlp_residual(x, g, b, w1, b1, w2, b2):
    N, C = x.shape
    Hd = w1.shape[1]
    tm = _row_tile(N)
    row = pl.BlockSpec((tm, C), lambda i: (i, 0))
    vec = pl.BlockSpec((1, C), lambda i: (0, 0))
    cost = pl.CostEstimate(flops=int(4 * N * C * Hd),
                           transcendentals=int(N * Hd + N),
                           bytes_accessed=int(4 * (2 * N * C + 2 * C * Hd + Hd + 2 * C)))
    return pl.pallas_call(
        _ln_mlp_kernel,
        out_shape=jax.ShapeDtypeStruct((N, C), x.dtype),
        grid=(N // tm,),
        in_specs=[row, vec, vec,
                  pl.BlockSpec((C, Hd), lambda i: (0, 0)),
                  pl.BlockSpec((1, Hd), lambda i: (0, 0)),
                  pl.BlockSpec((Hd, C), lambda i: (0, 0)),
                  vec],
        out_specs=row,
        compiler_params=pltpu.CompilerParams(dimension_semantics=("parallel",)),
        cost_estimate=cost,
    )(x, g.reshape(1, C), b.reshape(1, C), w1, b1.reshape(1, Hd), w2, b2.reshape(1, C))


# ----------------------------------------------------------------------------
# Pure-JAX reference (gather formulation, mirrors the PyTorch module)
# ----------------------------------------------------------------------------
def ref_layernorm(x, g, b):
    mean = jnp.mean(x, axis=-1, keepdims=True)
    var = jnp.mean((x - mean) ** 2, axis=-1, keepdims=True)
    return (x - mean) * jax.lax.rsqrt(var + 1e-5) * g + b


def _nat_block_ref(x, p, K, dilation, nh):
    B, H, W, C = x.shape
    hd = C // nh
    scale = hd ** -0.5
    Q, N, L = H * W, B * H * W, K * K
    nbr, rpbidx = neighborhood_indices(H, W, K, dilation)
    shortcut = x
    xn = ref_layernorm(x.reshape(N, C), p["norm1_g"], p["norm1_b"])
    qkv = (xn @ p["qkv_w"] + p["qkv_b"]).reshape(B, H, W, 3, nh, hd)
    qkv = jnp.transpose(qkv, (3, 0, 4, 1, 2, 5))
    q = (qkv[0] * scale).reshape(B * nh, Q, hd)
    k = qkv[1].reshape(B * nh, Q, hd)
    v = qkv[2].reshape(B * nh, Q, hd)
    knb, vnb = k[:, nbr, :], v[:, nbr, :]
    rpbnb = p["rpb"].reshape(nh, -1)[:, rpbidx]                   # (nh, Q, L)
    rpbnb = jnp.broadcast_to(rpbnb[None], (B, nh, Q, L)).reshape(B * nh, Q, L)
    s = jnp.einsum("gqd,gqld->gql", q, knb) + rpbnb
    pattn = jax.nn.softmax(s, axis=-1)
    o = jnp.einsum("gql,gqld->gqd", pattn, vnb)
    o = jnp.transpose(o.reshape(B, nh, H, W, hd), (0, 2, 3, 1, 4)).reshape(N, C)
    o = o @ p["proj_w"] + p["proj_b"]
    x = shortcut + o.reshape(B, H, W, C)
    xn2 = ref_layernorm(x.reshape(N, C), p["norm2_g"], p["norm2_b"])
    h1 = jax.nn.gelu(xn2 @ p["fc1_w"] + p["fc1_b"], approximate=False)
    y = h1 @ p["fc2_w"] + p["fc2_b"]
    return x + y.reshape(B, H, W, C)


# ----------------------------------------------------------------------------
# Pallas NATBlock / BasicLayer forward
# ----------------------------------------------------------------------------
def _nat_block_pallas(x, p, K, dilation, nh):
    B, H, W, C = x.shape
    hd = C // nh
    scale = hd ** -0.5
    Q, N = H * W, B * H * W
    # TODO(synk): natten pads feature maps smaller than kernel_size*dilation; not needed here.
    assert H >= K * dilation and W >= K * dilation, "NA padding path not implemented"

    # weight-only prep: split QKV columns and fold the head scale into Q.
    wq = p["qkv_w"][:, :C] * scale
    wk = p["qkv_w"][:, C:2 * C]
    wv = p["qkv_w"][:, 2 * C:]
    bq = p["qkv_b"][:C] * scale
    bk = p["qkv_b"][C:2 * C]
    bv = p["qkv_b"][2 * C:]
    bias = build_na_bias(H, W, K, dilation, p["rpb"])             # (nh, Q, Q)

    x2d = x.reshape(N, C)
    q2, k2, v2 = pallas_ln_qkv(x2d, p["norm1_g"], p["norm1_b"],
                               wq, wk, wv, bq, bk, bv)
    xatt = pallas_na_attention_proj(q2.reshape(B, Q, C), k2.reshape(B, Q, C),
                                    v2.reshape(B, Q, C), bias, x2d.reshape(B, Q, C),
                                    p["proj_w"], p["proj_b"], nh)
    xout = pallas_ln_mlp_residual(xatt.reshape(N, C), p["norm2_g"], p["norm2_b"],
                                  p["fc1_w"], p["fc1_b"], p["fc2_w"], p["fc2_b"])
    return xout.reshape(B, H, W, C)


def nat_block_forward(x, p, kernel_size, dilation, num_heads, use_pallas=True):
    if use_pallas:
        return _nat_block_pallas(x, p, kernel_size, dilation, num_heads)
    return _nat_block_ref(x, p, kernel_size, dilation, num_heads)


def basic_layer_forward(x, params_list, kernel_size, dilations, num_heads, use_pallas=True):
    for p, d in zip(params_list, dilations):
        x = nat_block_forward(x, p, kernel_size, d, num_heads, use_pallas)
    return x, x  # downsample=None -> (x, x)


# ----------------------------------------------------------------------------
# Deterministic parameter init (shapes follow the PyTorch module __init__)
# ----------------------------------------------------------------------------
def init_block_params(key, dim, num_heads, kernel_size, mlp_ratio):
    hidden = int(dim * mlp_ratio)
    ks = jax.random.split(key, 8)

    def w(k, shape, scale=0.02):
        return scale * jax.random.normal(k, shape, jnp.float32)

    return dict(
        norm1_g=jnp.ones((dim,), jnp.float32),
        norm1_b=jnp.zeros((dim,), jnp.float32),
        qkv_w=w(ks[0], (dim, 3 * dim)),            # stored as (in, out)
        qkv_b=w(ks[1], (3 * dim,)),
        rpb=w(ks[2], (num_heads, 2 * kernel_size - 1, 2 * kernel_size - 1)),
        proj_w=w(ks[3], (dim, dim)),
        proj_b=w(ks[4], (dim,)),
        norm2_g=jnp.ones((dim,), jnp.float32),
        norm2_b=jnp.zeros((dim,), jnp.float32),
        fc1_w=w(ks[5], (dim, hidden)),
        fc1_b=w(ks[6], (hidden,)),
        fc2_w=w(ks[7], (hidden, dim)),
        fc2_b=jnp.zeros((dim,), jnp.float32),
    )


if __name__ == "__main__":
    B, H, W = 2, 8, 8
    dim, depth, num_heads, kernel_size = 32, 2, 2, 3
    dilations = [1, 2]
    mlp_ratio = 4.0

    key = jax.random.PRNGKey(0)
    key, xkey = jax.random.split(key)
    x = jax.random.normal(xkey, (B, H, W, dim), jnp.float32)

    block_keys = jax.random.split(key, depth)
    params = [init_block_params(block_keys[i], dim, num_heads, kernel_size, mlp_ratio)
              for i in range(depth)]

    fwd = jax.jit(lambda xx: basic_layer_forward(
        xx, params, kernel_size, dilations, num_heads, use_pallas=True))
    out, out_down = fwd(x)
    out = jax.block_until_ready(out)
    assert out.shape == (B, H, W, dim)

    ref, _ = basic_layer_forward(x, params, kernel_size, dilations, num_heads, use_pallas=False)
    if not np.allclose(np.asarray(out), np.asarray(ref), atol=3e-3, rtol=3e-3):
        raise AssertionError("Pallas output mismatch vs JAX reference")

    print("KERNEL_OK")
</pallas_src>

<mosaic_0001>
module attributes {stable_mosaic.version = 11 : i64} {
  func.func @_ln_qkv_kernel(%arg0: i32, %arg1: memref<128x32xf32, #tpu.memory_space<vmem>>, %arg2: memref<1x32xf32, #tpu.memory_space<vmem>>, %arg3: memref<1x32xf32, #tpu.memory_space<vmem>>, %arg4: memref<32x32xf32, #tpu.memory_space<vmem>>, %arg5: memref<32x32xf32, #tpu.memory_space<vmem>>, %arg6: memref<32x32xf32, #tpu.memory_space<vmem>>, %arg7: memref<1x32xf32, #tpu.memory_space<vmem>>, %arg8: memref<1x32xf32, #tpu.memory_space<vmem>>, %arg9: memref<1x32xf32, #tpu.memory_space<vmem>>, %arg10: memref<128x32xf32, #tpu.memory_space<vmem>>, %arg11: memref<128x32xf32, #tpu.memory_space<vmem>>, %arg12: memref<128x32xf32, #tpu.memory_space<vmem>>) attributes {dimension_semantics = [#tpu.dimension_semantics<parallel>], iteration_bounds = array<i64: 1>, scalar_prefetch = 0 : i64, scratch_operands = 0 : i64, tpu.core_type = #tpu.core_type<tc>, window_params = [{transform_indices = @transform_0, window_bounds = array<i64: 128, 32>}, {pipeline_mode = #tpu.pipeline_mode<synchronous>, transform_indices = @transform_1, window_bounds = array<i64: 1, 32>}, {pipeline_mode = #tpu.pipeline_mode<synchronous>, transform_indices = @transform_2, window_bounds = array<i64: 1, 32>}, {pipeline_mode = #tpu.pipeline_mode<synchronous>, transform_indices = @transform_3, window_bounds = array<i64: 32, 32>}, {pipeline_mode = #tpu.pipeline_mode<synchronous>, transform_indices = @transform_4, window_bounds = array<i64: 32, 32>}, {pipeline_mode = #tpu.pipeline_mode<synchronous>, transform_indices = @transform_5, window_bounds = array<i64: 32, 32>}, {pipeline_mode = #tpu.pipeline_mode<synchronous>, transform_indices = @transform_6, window_bounds = array<i64: 1, 32>}, {pipeline_mode = #tpu.pipeline_mode<synchronous>, transform_indices = @transform_7, window_bounds = array<i64: 1, 32>}, {pipeline_mode = #tpu.pipeline_mode<synchronous>, transform_indices = @transform_8, window_bounds = array<i64: 1, 32>}, {transform_indices = @transform_9, window_bounds = array<i64: 128, 32>}, {transform_indices = @transform_10, window_bounds = array<i64: 128, 32>}, {transform_indices = @transform_11, window_bounds = array<i64: 128, 32>}]} {
    %c0 = arith.constant 0 : index
    %c0_0 = arith.constant 0 : index
    %0 = vector.load %arg1[%c0, %c0_0] : memref<128x32xf32, #tpu.memory_space<vmem>>, vector<128x32xf32>
    %cst = arith.constant dense<0.000000e+00> : vector<128xf32>
    %1 = vector.multi_reduction <add>, %0, %cst [1] : vector<128x32xf32> to vector<128xf32>
    %2 = vector.shape_cast %1 : vector<128xf32> to vector<128x1xf32>
    %cst_1 = arith.constant 3.200000e+01 : f32
    %3 = vector.broadcast %cst_1 : f32 to vector<128x1xf32>
    %4 = arith.divf %2, %3 : vector<128x1xf32>
    %5 = vector.broadcast %4 : vector<128x1xf32> to vector<128x32xf32>
    %6 = arith.subf %0, %5 : vector<128x32xf32>
    %7 = arith.mulf %6, %6 : vector<128x32xf32>
    %cst_2 = arith.constant dense<0.000000e+00> : vector<128xf32>
    %8 = vector.multi_reduction <add>, %7, %cst_2 [1] : vector<128x32xf32> to vector<128xf32>
    %9 = vector.shape_cast %8 : vector<128xf32> to vector<128x1xf32>
    %cst_3 = arith.constant 3.200000e+01 : f32
    %10 = vector.broadcast %cst_3 : f32 to vector<128x1xf32>
    %11 = arith.divf %9, %10 : vector<128x1xf32>
    %cst_4 = arith.constant 9.99999974E-6 : f32
    %12 = vector.broadcast %cst_4 : f32 to vector<128x1xf32>
    %13 = arith.addf %11, %12 : vector<128x1xf32>
    %14 = math.rsqrt %13 : vector<128x1xf32>
    %15 = vector.broadcast %14 : vector<128x1xf32> to vector<128x32xf32>
    %16 = arith.mulf %6, %15 : vector<128x32xf32>
    %c0_5 = arith.constant 0 : index
    %c0_6 = arith.constant 0 : index
    %17 = vector.load %arg2[%c0_5, %c0_6] : memref<1x32xf32, #tpu.memory_space<vmem>>, vector<1x32xf32>
    %18 = vector.broadcast %17 : vector<1x32xf32> to vector<128x32xf32>
    %19 = arith.mulf %16, %18 : vector<128x32xf32>
    %c0_7 = arith.constant 0 : index
    %c0_8 = arith.constant 0 : index
    %20 = vector.load %arg3[%c0_7, %c0_8] : memref<1x32xf32, #tpu.memory_space<vmem>>, vector<1x32xf32>
    %21 = vector.broadcast %20 : vector<1x32xf32> to vector<128x32xf32>
    %22 = arith.addf %19, %21 : vector<128x32xf32>
    %c0_9 = arith.constant 0 : index
    %c0_10 = arith.constant 0 : index
    %23 = vector.load %arg4[%c0_9, %c0_10] : memref<32x32xf32, #tpu.memory_space<vmem>>, vector<32x32xf32>
    %cst_11 = arith.constant dense<0.000000e+00> : vector<128x32xf32>
    %24 = tpu.matmul %22, %23, %cst_11 {dimension_numbers = #tpu.dot_dimension_numbers<[1], [0], [0], [1], [0, 0, 1, 1], [], []>} : vector<128x32xf32>, vector<32x32xf32>, vector<128x32xf32> -> vector<128x32xf32>
    %c0_12 = arith.constant 0 : index
    %c0_13 = arith.constant 0 : index
    %25 = vector.load %arg7[%c0_12, %c0_13] : memref<1x32xf32, #tpu.memory_space<vmem>>, vector<1x32xf32>
    %26 = vector.broadcast %25 : vector<1x32xf32> to vector<128x32xf32>
    %27 = arith.addf %24, %26 : vector<128x32xf32>
    %c0_14 = arith.constant 0 : index
    %c0_15 = arith.constant 0 : index
    %28 = vector.load %arg5[%c0_14, %c0_15] : memref<32x32xf32, #tpu.memory_space<vmem>>, vector<32x32xf32>
    %cst_16 = arith.constant dense<0.000000e+00> : vector<128x32xf32>
    %29 = tpu.matmul %22, %28, %cst_16 {dimension_numbers = #tpu.dot_dimension_numbers<[1], [0], [0], [1], [0, 0, 1, 1], [], []>} : vector<128x32xf32>, vector<32x32xf32>, vector<128x32xf32> -> vector<128x32xf32>
    %c0_17 = arith.constant 0 : index
    %c0_18 = arith.constant 0 : index
    %30 = vector.load %arg8[%c0_17, %c0_18] : memref<1x32xf32, #tpu.memory_space<vmem>>, vector<1x32xf32>
    %31 = vector.broadcast %30 : vector<1x32xf32> to vector<128x32xf32>
    %32 = arith.addf %29, %31 : vector<128x32xf32>
    %c0_19 = arith.constant 0 : index
    %c0_20 = arith.constant 0 : index
    %33 = vector.load %arg6[%c0_19, %c0_20] : memref<32x32xf32, #tpu.memory_space<vmem>>, vector<32x32xf32>
    %cst_21 = arith.constant dense<0.000000e+00> : vector<128x32xf32>
    %34 = tpu.matmul %22, %33, %cst_21 {dimension_numbers = #tpu.dot_dimension_numbers<[1], [0], [0], [1], [0, 0, 1, 1], [], []>} : vector<128x32xf32>, vector<32x32xf32>, vector<128x32xf32> -> vector<128x32xf32>
    %c0_22 = arith.constant 0 : index
    %c0_23 = arith.constant 0 : index
    %35 = vector.load %arg9[%c0_22, %c0_23] : memref<1x32xf32, #tpu.memory_space<vmem>>, vector<1x32xf32>
    %36 = vector.broadcast %35 : vector<1x32xf32> to vector<128x32xf32>
    %37 = arith.addf %34, %36 : vector<128x32xf32>
    %c0_24 = arith.constant 0 : index
    %c0_25 = arith.constant 0 : index
    %38 = vector.load %arg10[%c0_24, %c0_25] : memref<128x32xf32, #tpu.memory_space<vmem>>, vector<128x32xf32>
    tpu.vector_store %arg10[%c0_24, %c0_25], %27 {strides = array<i32>} : memref<128x32xf32, #tpu.memory_space<vmem>>, vector<128x32xf32>,
    %c0_26 = arith.constant 0 : index
    %c0_27 = arith.constant 0 : index
    %39 = vector.load %arg11[%c0_26, %c0_27] : memref<128x32xf32, #tpu.memory_space<vmem>>, vector<128x32xf32>
    tpu.vector_store %arg11[%c0_26, %c0_27], %32 {strides = array<i32>} : memref<128x32xf32, #tpu.memory_space<vmem>>, vector<128x32xf32>,
    %c0_28 = arith.constant 0 : index
    %c0_29 = arith.constant 0 : index
    %40 = vector.load %arg12[%c0_28, %c0_29] : memref<128x32xf32, #tpu.memory_space<vmem>>, vector<128x32xf32>
    tpu.vector_store %arg12[%c0_28, %c0_29], %37 {strides = array<i32>} : memref<128x32xf32, #tpu.memory_space<vmem>>, vector<128x32xf32>,
    return
  }
  func.func @transform_0(%arg0: i32) -> (i32, i32) {
    %c0_i32 = arith.constant 0 : i32
    %c0_i32_0 = arith.constant 0 : i32
    return %arg0, %c0_i32 : i32, i32
  }
  func.func @transform_1(%arg0: i32) -> (i32, i32) {
    %c0_i32 = arith.constant 0 : i32
    %c0_i32_0 = arith.constant 0 : i32
    %c0_i32_1 = arith.constant 0 : i32
    return %c0_i32, %c0_i32_0 : i32, i32
  }
  func.func @transform_2(%arg0: i32) -> (i32, i32) {
    %c0_i32 = arith.constant 0 : i32
    %c0_i32_0 = arith.constant 0 : i32
    %c0_i32_1 = arith.constant 0 : i32
    return %c0_i32, %c0_i32_0 : i32, i32
  }
  func.func @transform_3(%arg0: i32) -> (i32, i32) {
    %c0_i32 = arith.constant 0 : i32
    %c0_i32_0 = arith.constant 0 : i32
    %c0_i32_1 = arith.constant 0 : i32
    return %c0_i32, %c0_i32_0 : i32, i32
  }
  func.func @transform_4(%arg0: i32) -> (i32, i32) {
    %c0_i32 = arith.constant 0 : i32
    %c0_i32_0 = arith.constant 0 : i32
    %c0_i32_1 = arith.constant 0 : i32
    return %c0_i32, %c0_i32_0 : i32, i32
  }
  func.func @transform_5(%arg0: i32) -> (i32, i32) {
    %c0_i32 = arith.constant 0 : i32
    %c0_i32_0 = arith.constant 0 : i32
    %c0_i32_1 = arith.constant 0 : i32
    return %c0_i32, %c0_i32_0 : i32, i32
  }
  func.func @transform_6(%arg0: i32) -> (i32, i32) {
    %c0_i32 = arith.constant 0 : i32
    %c0_i32_0 = arith.constant 0 : i32
    %c0_i32_1 = arith.constant 0 : i32
    return %c0_i32, %c0_i32_0 : i32, i32
  }
  func.func @transform_7(%arg0: i32) -> (i32, i32) {
    %c0_i32 = arith.constant 0 : i32
    %c0_i32_0 = arith.constant 0 : i32
    %c0_i32_1 = arith.constant 0 : i32
    return %c0_i32, %c0_i32_0 : i32, i32
  }
  func.func @transform_8(%arg0: i32) -> (i32, i32) {
    %c0_i32 = arith.constant 0 : i32
    %c0_i32_0 = arith.constant 0 : i32
    %c0_i32_1 = arith.constant 0 : i32
    return %c0_i32, %c0_i32_0 : i32, i32
  }
  func.func @transform_9(%arg0: i32) -> (i32, i32) {
    %c0_i32 = arith.constant 0 : i32
    %c0_i32_0 = arith.constant 0 : i32
    return %arg0, %c0_i32 : i32, i32
  }
  func.func @transform_10(%arg0: i32) -> (i32, i32) {
    %c0_i32 = arith.constant 0 : i32
    %c0_i32_0 = arith.constant 0 : i32
    return %arg0, %c0_i32 : i32, i32
  }
  func.func @transform_11(%arg0: i32) -> (i32, i32) {
    %c0_i32 = arith.constant 0 : i32
    %c0_i32_0 = arith.constant 0 : i32
    return %arg0, %c0_i32 : i32, i32
  }
}

module attributes {stable_mosaic.version = 11 : i64} {
  func.func @_ln_mlp_kernel(%arg0: i32, %arg1: memref<128x32xf32, #tpu.memory_space<vmem>>, %arg2: memref<1x32xf32, #tpu.memory_space<vmem>>, %arg3: memref<1x32xf32, #tpu.memory_space<vmem>>, %arg4: memref<32x128xf32, #tpu.memory_space<vmem>>, %arg5: memref<1x128xf32, #tpu.memory_space<vmem>>, %arg6: memref<128x32xf32, #tpu.memory_space<vmem>>, %arg7: memref<1x32xf32, #tpu.memory_space<vmem>>, %arg8: memref<128x32xf32, #tpu.memory_space<vmem>>) attributes {dimension_semantics = [#tpu.dimension_semantics<parallel>], iteration_bounds = array<i64: 1>, scalar_prefetch = 0 : i64, scratch_operands = 0 : i64, tpu.core_type = #tpu.core_type<tc>, window_params = [{transform_indices = @transform_0, window_bounds = array<i64: 128, 32>}, {pipeline_mode = #tpu.pipeline_mode<synchronous>, transform_indices = @transform_1, window_bounds = array<i64: 1, 32>}, {pipeline_mode = #tpu.pipeline_mode<synchronous>, transform_indices = @transform_2, window_bounds = array<i64: 1, 32>}, {pipeline_mode = #tpu.pipeline_mode<synchronous>, transform_indices = @transform_3, window_bounds = array<i64: 32, 128>}, {pipeline_mode = #tpu.pipeline_mode<synchronous>, transform_indices = @transform_4, window_bounds = array<i64: 1, 128>}, {pipeline_mode = #tpu.pipeline_mode<synchronous>, transform_indices = @transform_5, window_bounds = array<i64: 128, 32>}, {pipeline_mode = #tpu.pipeline_mode<synchronous>, transform_indices = @transform_6, window_bounds = array<i64: 1, 32>}, {transform_indices = @transform_7, window_bounds = array<i64: 128, 32>}]} {
    %c0 = arith.constant 0 : index
    %c0_0 = arith.constant 0 : index
    %0 = vector.load %arg1[%c0, %c0_0] : memref<128x32xf32, #tpu.memory_space<vmem>>, vector<128x32xf32>
    %cst = arith.constant dense<0.000000e+00> : vector<128xf32>
    %1 = vector.multi_reduction <add>, %0, %cst [1] : vector<128x32xf32> to vector<128xf32>
    %2 = vector.shape_cast %1 : vector<128xf32> to vector<128x1xf32>
    %cst_1 = arith.constant 3.200000e+01 : f32
    %3 = vector.broadcast %cst_1 : f32 to vector<128x1xf32>
    %4 = arith.divf %2, %3 : vector<128x1xf32>
    %5 = vector.broadcast %4 : vector<128x1xf32> to vector<128x32xf32>
    %6 = arith.subf %0, %5 : vector<128x32xf32>
    %7 = arith.mulf %6, %6 : vector<128x32xf32>
    %cst_2 = arith.constant dense<0.000000e+00> : vector<128xf32>
    %8 = vector.multi_reduction <add>, %7, %cst_2 [1] : vector<128x32xf32> to vector<128xf32>
    %9 = vector.shape_cast %8 : vector<128xf32> to vector<128x1xf32>
    %cst_3 = arith.constant 3.200000e+01 : f32
    %10 = vector.broadcast %cst_3 : f32 to vector<128x1xf32>
    %11 = arith.divf %9, %10 : vector<128x1xf32>
    %cst_4 = arith.constant 9.99999974E-6 : f32
    %12 = vector.broadcast %cst_4 : f32 to vector<128x1xf32>
    %13 = arith.addf %11, %12 : vector<128x1xf32>
    %14 = math.rsqrt %13 : vector<128x1xf32>
    %15 = vector.broadcast %14 : vector<128x1xf32> to vector<128x32xf32>
    %16 = arith.mulf %6, %15 : vector<128x32xf32>
    %c0_5 = arith.constant 0 : index
    %c0_6 = arith.constant 0 : index
    %17 = vector.load %arg2[%c0_5, %c0_6] : memref<1x32xf32, #tpu.memory_space<vmem>>, vector<1x32xf32>
    %18 = vector.broadcast %17 : vector<1x32xf32> to vector<128x32xf32>
    %19 = arith.mulf %16, %18 : vector<128x32xf32>
    %c0_7 = arith.constant 0 : index
    %c0_8 = arith.constant 0 : index
    %20 = vector.load %arg3[%c0_7, %c0_8] : memref<1x32xf32, #tpu.memory_space<vmem>>, vector<1x32xf32>
    %21 = vector.broadcast %20 : vector<1x32xf32> to vector<128x32xf32>
    %22 = arith.addf %19, %21 : vector<128x32xf32>
    %c0_9 = arith.constant 0 : index
    %c0_10 = arith.constant 0 : index
    %23 = vector.load %arg4[%c0_9, %c0_10] : memref<32x128xf32, #tpu.memory_space<vmem>>, vector<32x128xf32>
    %cst_11 = arith.constant dense<0.000000e+00> : vector<128x128xf32>
    %24 = tpu.matmul %22, %23, %cst_11 {dimension_numbers = #tpu.dot_dimension_numbers<[1], [0], [0], [1], [0, 0, 1, 1], [], []>} : vector<128x32xf32>, vector<32x128xf32>, vector<128x128xf32> -> vector<128x128xf32>
    %c0_12 = arith.constant 0 : index
    %c0_13 = arith.constant 0 : index
    %25 = vector.load %arg5[%c0_12, %c0_13] : memref<1x128xf32, #tpu.memory_space<vmem>>, vector<1x128xf32>
    %26 = vector.broadcast %25 : vector<1x128xf32> to vector<128x128xf32>
    %27 = arith.addf %24, %26 : vector<128x128xf32>
    %cst_14 = arith.constant 5.000000e-01 : f32
    %28 = vector.broadcast %cst_14 : f32 to vector<128x128xf32>
    %29 = arith.mulf %28, %27 : vector<128x128xf32>
    %cst_15 = arith.constant 0.707106769 : f32
    %30 = vector.broadcast %cst_15 : f32 to vector<128x128xf32>
    %31 = arith.mulf %27, %30 : vector<128x128xf32>
    %32 = math.erf %31 : vector<128x128xf32>
    %cst_16 = arith.constant 1.000000e+00 : f32
    %33 = vector.broadcast %cst_16 : f32 to vector<128x128xf32>
    %34 = arith.addf %33, %32 : vector<128x128xf32>
    %35 = arith.mulf %29, %34 : vector<128x128xf32>
    %c0_17 = arith.constant 0 : index
    %c0_18 = arith.constant 0 : index
    %36 = vector.load %arg6[%c0_17, %c0_18] : memref<128x32xf32, #tpu.memory_space<vmem>>, vector<128x32xf32>
    %cst_19 = arith.constant dense<0.000000e+00> : vector<128x32xf32>
    %37 = tpu.matmul %35, %36, %cst_19 {dimension_numbers = #tpu.dot_dimension_numbers<[1], [0], [0], [1], [0, 0, 1, 1], [], []>} : vector<128x128xf32>, vector<128x32xf32>, vector<128x32xf32> -> vector<128x32xf32>
    %c0_20 = arith.constant 0 : index
    %c0_21 = arith.constant 0 : index
    %38 = vector.load %arg7[%c0_20, %c0_21] : memref<1x32xf32, #tpu.memory_space<vmem>>, vector<1x32xf32>
    %39 = vector.broadcast %38 : vector<1x32xf32> to vector<128x32xf32>
    %40 = arith.addf %37, %39 : vector<128x32xf32>
    %41 = arith.addf %0, %40 : vector<128x32xf32>
    %c0_22 = arith.constant 0 : index
    %c0_23 = arith.constant 0 : index
    %42 = vector.load %arg8[%c0_22, %c0_23] : memref<128x32xf32, #tpu.memory_space<vmem>>, vector<128x32xf32>
    tpu.vector_store %arg8[%c0_22, %c0_23], %41 {strides = array<i32>} : memref<128x32xf32, #tpu.memory_space<vmem>>, vector<128x32xf32>,
    return
  }
  func.func @transform_0(%arg0: i32) -> (i32, i32) {
    %c0_i32 = arith.constant 0 : i32
    %c0_i32_0 = arith.constant 0 : i32
    return %arg0, %c0_i32 : i32, i32
  }
  func.func @transform_1(%arg0: i32) -> (i32, i32) {
    %c0_i32 = arith.constant 0 : i32
    %c0_i32_0 = arith.constant 0 : i32
    %c0_i32_1 = arith.constant 0 : i32
    return %c0_i32, %c0_i32_0 : i32, i32
  }
  func.func @transform_2(%arg0: i32) -> (i32, i32) {
    %c0_i32 = arith.constant 0 : i32
    %c0_i32_0 = arith.constant 0 : i32
    %c0_i32_1 = arith.constant 0 : i32
    return %c0_i32, %c0_i32_0 : i32, i32
  }
  func.func @transform_3(%arg0: i32) -> (i32, i32) {
    %c0_i32 = arith.constant 0 : i32
    %c0_i32_0 = arith.constant 0 : i32
    %c0_i32_1 = arith.constant 0 : i32
    return %c0_i32, %c0_i32_0 : i32, i32
  }
  func.func @transform_4(%arg0: i32) -> (i32, i32) {
    %c0_i32 = arith.constant 0 : i32
    %c0_i32_0 = arith.constant 0 : i32
    %c0_i32_1 = arith.constant 0 : i32
    return %c0_i32, %c0_i32_0 : i32, i32
  }
  func.func @transform_5(%arg0: i32) -> (i32, i32) {
    %c0_i32 = arith.constant 0 : i32
    %c0_i32_0 = arith.constant 0 : i32
    %c0_i32_1 = arith.constant 0 : i32
    return %c0_i32, %c0_i32_0 : i32, i32
  }
  func.func @transform_6(%arg0: i32) -> (i32, i32) {
    %c0_i32 = arith.constant 0 : i32
    %c0_i32_0 = arith.constant 0 : i32
    %c0_i32_1 = arith.constant 0 : i32
    return %c0_i32, %c0_i32_0 : i32, i32
  }
  func.func @transform_7(%arg0: i32) -> (i32, i32) {
    %c0_i32 = arith.constant 0 : i32
    %c0_i32_0 = arith.constant 0 : i32
    return %arg0, %c0_i32 : i32, i32
  }
}

module attributes {stable_mosaic.version = 11 : i64} {
  func.func @kernel(%arg0: i32, %arg1: i32, %arg2: memref<1x64x32xf32, #tpu.memory_space<vmem>>, %arg3: memref<1x64x32xf32, #tpu.memory_space<vmem>>, %arg4: memref<1x64x32xf32, #tpu.memory_space<vmem>>, %arg5: memref<2x64x64xf32, #tpu.memory_space<vmem>>, %arg6: memref<1x64x32xf32, #tpu.memory_space<vmem>>, %arg7: memref<32x32xf32, #tpu.memory_space<vmem>>, %arg8: memref<1x32xf32, #tpu.memory_space<vmem>>, %arg9: memref<1x64x32xf32, #tpu.memory_space<vmem>>) attributes {dimension_semantics = [#tpu.dimension_semantics<parallel>, #tpu.dimension_semantics<parallel>], iteration_bounds = array<i64: 2, 1>, scalar_prefetch = 0 : i64, scratch_operands = 0 : i64, tpu.core_type = #tpu.core_type<tc>, window_params = [{transform_indices = @transform_0, window_bounds = array<i64: 1, 64, 32>}, {transform_indices = @transform_1, window_bounds = array<i64: 1, 64, 32>}, {transform_indices = @transform_2, window_bounds = array<i64: 1, 64, 32>}, {transform_indices = @transform_3, window_bounds = array<i64: 2, 64, 64>}, {transform_indices = @transform_4, window_bounds = array<i64: 1, 64, 32>}, {pipeline_mode = #tpu.pipeline_mode<synchronous>, transform_indices = @transform_5, window_bounds = array<i64: 32, 32>}, {pipeline_mode = #tpu.pipeline_mode<synchronous>, transform_indices = @transform_6, window_bounds = array<i64: 1, 32>}, {transform_indices = @transform_7, window_bounds = array<i64: 1, 64, 32>}]} {
    %c0 = arith.constant 0 : index
    %c0_0 = arith.constant 0 : index
    %c0_1 = arith.constant 0 : index
    %0 = vector.load %arg2[%c0, %c0_0, %c0_1] : memref<1x64x32xf32, #tpu.memory_space<vmem>>, vector<1x64x16xf32>
    %1 = vector.shape_cast %0 : vector<1x64x16xf32> to vector<64x16xf32>
    %c0_2 = arith.constant 0 : index
    %c0_3 = arith.constant 0 : index
    %c0_4 = arith.constant 0 : index
    %2 = vector.load %arg3[%c0_2, %c0_3, %c0_4] : memref<1x64x32xf32, #tpu.memory_space<vmem>>, vector<1x64x16xf32>
    %3 = vector.shape_cast %2 : vector<1x64x16xf32> to vector<64x16xf32>
    %c0_5 = arith.constant 0 : index
    %c0_6 = arith.constant 0 : index
    %c0_7 = arith.constant 0 : index
    %4 = vector.load %arg4[%c0_5, %c0_6, %c0_7] : memref<1x64x32xf32, #tpu.memory_space<vmem>>, vector<1x64x16xf32>
    %5 = vector.shape_cast %4 : vector<1x64x16xf32> to vector<64x16xf32>
    %cst = arith.constant dense<0.000000e+00> : vector<64x64xf32>
    %6 = tpu.matmul %1, %3, %cst {dimension_numbers = #tpu.dot_dimension_numbers<[1], [1], [0], [0], [0, 0, 1, 0], [], []>} : vector<64x16xf32>, vector<64x16xf32>, vector<64x64xf32> -> vector<64x64xf32>
    %c0_8 = arith.constant 0 : index
    %c0_9 = arith.constant 0 : index
    %c0_10 = arith.constant 0 : index
    %7 = vector.load %arg5[%c0_8, %c0_9, %c0_10] : memref<2x64x64xf32, #tpu.memory_space<vmem>>, vector<1x64x64xf32>
    %8 = vector.shape_cast %7 : vector<1x64x64xf32> to vector<64x64xf32>
    %9 = arith.addf %6, %8 : vector<64x64xf32>
    %cst_11 = arith.constant dense<0xFF800000> : vector<64xf32>
    %10 = vector.multi_reduction <maximumf>, %9, %cst_11 [1] : vector<64x64xf32> to vector<64xf32>
    %11 = vector.shape_cast %10 : vector<64xf32> to vector<64x1xf32>
    %12 = vector.broadcast %11 : vector<64x1xf32> to vector<64x64xf32>
    %13 = arith.subf %9, %12 : vector<64x64xf32>
    %14 = math.exp %13 : vector<64x64xf32>
    %cst_12 = arith.constant dense<0.000000e+00> : vector<64xf32>
    %15 = vector.multi_reduction <add>, %14, %cst_12 [1] : vector<64x64xf32> to vector<64xf32>
    %16 = vector.shape_cast %15 : vector<64xf32> to vector<64x1xf32>
    %17 = tpu.reciprocal %16 {approx = true} : vector<64x1xf32> -> vector<64x1xf32>
    %18 = vector.broadcast %17 : vector<64x1xf32> to vector<64x64xf32>
    %19 = arith.mulf %14, %18 : vector<64x64xf32>
    %cst_13 = arith.constant dense<0.000000e+00> : vector<64x16xf32>
    %20 = tpu.matmul %19, %5, %cst_13 {dimension_numbers = #tpu.dot_dimension_numbers<[1], [0], [0], [1], [0, 0, 1, 1], [], []>} : vector<64x64xf32>, vector<64x16xf32>, vector<64x16xf32> -> vector<64x16xf32>
    %c0_14 = arith.constant 0 : index
    %c0_15 = arith.constant 0 : index
    %c16 = arith.constant 16 : index
    %21 = vector.load %arg2[%c0_14, %c0_15, %c16] : memref<1x64x32xf32, #tpu.memory_space<vmem>>, vector<1x64x16xf32>
    %22 = vector.shape_cast %21 : vector<1x64x16xf32> to vector<64x16xf32>
    %c0_16 = arith.constant 0 : index
    %c0_17 = arith.constant 0 : index
    %c16_18 = arith.constant 16 : index
    %23 = vector.load %arg3[%c0_16, %c0_17, %c16_18] : memref<1x64x32xf32, #tpu.memory_space<vmem>>, vector<1x64x16xf32>
    %24 = vector.shape_cast %23 : vector<1x64x16xf32> to vector<64x16xf32>
    %c0_19 = arith.constant 0 : index
    %c0_20 = arith.constant 0 : index
    %c16_21 = arith.constant 16 : index
    %25 = vector.load %arg4[%c0_19, %c0_20, %c16_21] : memref<1x64x32xf32, #tpu.memory_space<vmem>>, vector<1x64x16xf32>
    %26 = vector.shape_cast %25 : vector<1x64x16xf32> to vector<64x16xf32>
    %cst_22 = arith.constant dense<0.000000e+00> : vector<64x64xf32>
    %27 = tpu.matmul %22, %24, %cst_22 {dimension_numbers = #tpu.dot_dimension_numbers<[1], [1], [0], [0], [0, 0, 1, 0], [], []>} : vector<64x16xf32>, vector<64x16xf32>, vector<64x64xf32> -> vector<64x64xf32>
    %c1 = arith.constant 1 : index
    %c0_23 = arith.constant 0 : index
    %c0_24 = arith.constant 0 : index
    %28 = vector.load %arg5[%c1, %c0_23, %c0_24] : memref<2x64x64xf32, #tpu.memory_space<vmem>>, vector<1x64x64xf32>
    %29 = vector.shape_cast %28 : vector<1x64x64xf32> to vector<64x64xf32>
    %30 = arith.addf %27, %29 : vector<64x64xf32>
    %cst_25 = arith.constant dense<0xFF800000> : vector<64xf32>
    %31 = vector.multi_reduction <maximumf>, %30, %cst_25 [1] : vector<64x64xf32> to vector<64xf32>
    %32 = vector.shape_cast %31 : vector<64xf32> to vector<64x1xf32>
    %33 = vector.broadcast %32 : vector<64x1xf32> to vector<64x64xf32>
    %34 = arith.subf %30, %33 : vector<64x64xf32>
    %35 = math.exp %34 : vector<64x64xf32>
    %cst_26 = arith.constant dense<0.000000e+00> : vector<64xf32>
    %36 = vector.multi_reduction <add>, %35, %cst_26 [1] : vector<64x64xf32> to vector<64xf32>
    %37 = vector.shape_cast %36 : vector<64xf32> to vector<64x1xf32>
    %38 = tpu.reciprocal %37 {approx = true} : vector<64x1xf32> -> vector<64x1xf32>
    %39 = vector.broadcast %38 : vector<64x1xf32> to vector<64x64xf32>
    %40 = arith.mulf %35, %39 : vector<64x64xf32>
    %cst_27 = arith.constant dense<0.000000e+00> : vector<64x16xf32>
    %41 = tpu.matmul %40, %26, %cst_27 {dimension_numbers = #tpu.dot_dimension_numbers<[1], [0], [0], [1], [0, 0, 1, 1], [], []>} : vector<64x64xf32>, vector<64x16xf32>, vector<64x16xf32> -> vector<64x16xf32>
    %42 = tpu.concatenate %20, %41 in 1 : vector<64x16xf32>, vector<64x16xf32> -> vector<64x32xf32>
    %c0_28 = arith.constant 0 : index
    %c0_29 = arith.constant 0 : index
    %43 = vector.load %arg7[%c0_28, %c0_29] : memref<32x32xf32, #tpu.memory_space<vmem>>, vector<32x32xf32>
    %cst_30 = arith.constant dense<0.000000e+00> : vector<64x32xf32>
    %44 = tpu.matmul %42, %43, %cst_30 {dimension_numbers = #tpu.dot_dimension_numbers<[1], [0], [0], [1], [0, 0, 1, 1], [], []>} : vector<64x32xf32>, vector<32x32xf32>, vector<64x32xf32> -> vector<64x32xf32>
    %c0_31 = arith.constant 0 : index
    %c0_32 = arith.constant 0 : index
    %45 = vector.load %arg8[%c0_31, %c0_32] : memref<1x32xf32, #tpu.memory_space<vmem>>, vector<1x32xf32>
    %46 = vector.broadcast %45 : vector<1x32xf32> to vector<64x32xf32>
    %47 = arith.addf %44, %46 : vector<64x32xf32>
    %c0_33 = arith.constant 0 : index
    %c0_34 = arith.constant 0 : index
    %c0_35 = arith.constant 0 : index
    %48 = vector.load %arg6[%c0_33, %c0_34, %c0_35] : memref<1x64x32xf32, #tpu.memory_space<vmem>>, vector<1x64x32xf32>
    %49 = vector.shape_cast %48 : vector<1x64x32xf32> to vector<64x32xf32>
    %50 = arith.addf %49, %47 : vector<64x32xf32>
    %c0_36 = arith.constant 0 : index
    %c0_37 = arith.constant 0 : index
    %c0_38 = arith.constant 0 : index
    %51 = vector.load %arg9[%c0_36, %c0_37, %c0_38] : memref<1x64x32xf32, #tpu.memory_space<vmem>>, vector<1x64x32xf32>
    %52 = vector.shape_cast %51 : vector<1x64x32xf32> to vector<64x32xf32>
    %53 = vector.shape_cast %50 : vector<64x32xf32> to vector<1x64x32xf32>
    tpu.vector_store %arg9[%c0_36, %c0_37, %c0_38], %53 {strides = array<i32>} : memref<1x64x32xf32, #tpu.memory_space<vmem>>, vector<1x64x32xf32>,
    return
  }
  func.func @transform_0(%arg0: i32, %arg1: i32) -> (i32, i32, i32) {
    %c0_i32 = arith.constant 0 : i32
    %c0_i32_0 = arith.constant 0 : i32
    return %arg0, %arg1, %c0_i32 : i32, i32, i32
  }
  func.func @transform_1(%arg0: i32, %arg1: i32) -> (i32, i32, i32) {
    %c0_i32 = arith.constant 0 : i32
    %c0_i32_0 = arith.constant 0 : i32
    %c0_i32_1 = arith.constant 0 : i32
    return %arg0, %c0_i32, %c0_i32_0 : i32, i32, i32
  }
  func.func @transform_2(%arg0: i32, %arg1: i32) -> (i32, i32, i32) {
    %c0_i32 = arith.constant 0 : i32
    %c0_i32_0 = arith.constant 0 : i32
    %c0_i32_1 = arith.constant 0 : i32
    return %arg0, %c0_i32, %c0_i32_0 : i32, i32, i32
  }
  func.func @transform_3(%arg0: i32, %arg1: i32) -> (i32, i32, i32) {
    %c0_i32 = arith.constant 0 : i32
    %c0_i32_0 = arith.constant 0 : i32
    %c0_i32_1 = arith.constant 0 : i32
    return %c0_i32, %arg1, %c0_i32_0 : i32, i32, i32
  }
  func.func @transform_4(%arg0: i32, %arg1: i32) -> (i32, i32, i32) {
    %c0_i32 = arith.constant 0 : i32
    %c0_i32_0 = arith.constant 0 : i32
    return %arg0, %arg1, %c0_i32 : i32, i32, i32
  }
  func.func @transform_5(%arg0: i32, %arg1: i32) -> (i32, i32) {
    %c0_i32 = arith.constant 0 : i32
    %c0_i32_0 = arith.constant 0 : i32
    %c0_i32_1 = arith.constant 0 : i32
    return %c0_i32, %c0_i32_0 : i32, i32
  }
  func.func @transform_6(%arg0: i32, %arg1: i32) -> (i32, i32) {
    %c0_i32 = arith.constant 0 : i32
    %c0_i32_0 = arith.constant 0 : i32
    %c0_i32_1 = arith.constant 0 : i32
    return %c0_i32, %c0_i32_0 : i32, i32
  }
  func.func @transform_7(%arg0: i32, %arg1: i32) -> (i32, i32, i32) {
    %c0_i32 = arith.constant 0 : i32
    %c0_i32_0 = arith.constant 0 : i32
    return %arg0, %arg1, %c0_i32 : i32, i32, i32
  }
}

module attributes {stable_mosaic.version = 11 : i64} {
  func.func @_ln_qkv_kernel(%arg0: i32, %arg1: memref<128x32xf32, #tpu.memory_space<vmem>>, %arg2: memref<1x32xf32, #tpu.memory_space<vmem>>, %arg3: memref<1x32xf32, #tpu.memory_space<vmem>>, %arg4: memref<32x32xf32, #tpu.memory_space<vmem>>, %arg5: memref<32x32xf32, #tpu.memory_space<vmem>>, %arg6: memref<32x32xf32, #tpu.memory_space<vmem>>, %arg7: memref<1x32xf32, #tpu.memory_space<vmem>>, %arg8: memref<1x32xf32, #tpu.memory_space<vmem>>, %arg9: memref<1x32xf32, #tpu.memory_space<vmem>>, %arg10: memref<128x32xf32, #tpu.memory_space<vmem>>, %arg11: memref<128x32xf32, #tpu.memory_space<vmem>>, %arg12: memref<128x32xf32, #tpu.memory_space<vmem>>) attributes {dimension_semantics = [#tpu.dimension_semantics<parallel>], iteration_bounds = array<i64: 1>, scalar_prefetch = 0 : i64, scratch_operands = 0 : i64, tpu.core_type = #tpu.core_type<tc>, window_params = [{transform_indices = @transform_0, window_bounds = array<i64: 128, 32>}, {pipeline_mode = #tpu.pipeline_mode<synchronous>, transform_indices = @transform_1, window_bounds = array<i64: 1, 32>}, {pipeline_mode = #tpu.pipeline_mode<synchronous>, transform_indices = @transform_2, window_bounds = array<i64: 1, 32>}, {pipeline_mode = #tpu.pipeline_mode<synchronous>, transform_indices = @transform_3, window_bounds = array<i64: 32, 32>}, {pipeline_mode = #tpu.pipeline_mode<synchronous>, transform_indices = @transform_4, window_bounds = array<i64: 32, 32>}, {pipeline_mode = #tpu.pipeline_mode<synchronous>, transform_indices = @transform_5, window_bounds = array<i64: 32, 32>}, {pipeline_mode = #tpu.pipeline_mode<synchronous>, transform_indices = @transform_6, window_bounds = array<i64: 1, 32>}, {pipeline_mode = #tpu.pipeline_mode<synchronous>, transform_indices = @transform_7, window_bounds = array<i64: 1, 32>}, {pipeline_mode = #tpu.pipeline_mode<synchronous>, transform_indices = @transform_8, window_bounds = array<i64: 1, 32>}, {transform_indices = @transform_9, window_bounds = array<i64: 128, 32>}, {transform_indices = @transform_10, window_bounds = array<i64: 128, 32>}, {transform_indices = @transform_11, window_bounds = array<i64: 128, 32>}]} {
    %c0 = arith.constant 0 : index
    %c0_0 = arith.constant 0 : index
    %0 = vector.load %arg1[%c0, %c0_0] : memref<128x32xf32, #tpu.memory_space<vmem>>, vector<128x32xf32>
    %cst = arith.constant dense<0.000000e+00> : vector<128xf32>
    %1 = vector.multi_reduction <add>, %0, %cst [1] : vector<128x32xf32> to vector<128xf32>
    %2 = vector.shape_cast %1 : vector<128xf32> to vector<128x1xf32>
    %cst_1 = arith.constant 3.200000e+01 : f32
    %3 = vector.broadcast %cst_1 : f32 to vector<128x1xf32>
    %4 = arith.divf %2, %3 : vector<128x1xf32>
    %5 = vector.broadcast %4 : vector<128x1xf32> to vector<128x32xf32>
    %6 = arith.subf %0, %5 : vector<128x32xf32>
    %7 = arith.mulf %6, %6 : vector<128x32xf32>
    %cst_2 = arith.constant dense<0.000000e+00> : vector<128xf32>
    %8 = vector.multi_reduction <add>, %7, %cst_2 [1] : vector<128x32xf32> to vector<128xf32>
    %9 = vector.shape_cast %8 : vector<128xf32> to vector<128x1xf32>
    %cst_3 = arith.constant 3.200000e+01 : f32
    %10 = vector.broadcast %cst_3 : f32 to vector<128x1xf32>
    %11 = arith.divf %9, %10 : vector<128x1xf32>
    %cst_4 = arith.constant 9.99999974E-6 : f32
    %12 = vector.broadcast %cst_4 : f32 to vector<128x1xf32>
    %13 = arith.addf %11, %12 : vector<128x1xf32>
    %14 = math.rsqrt %13 : vector<128x1xf32>
    %15 = vector.broadcast %14 : vector<128x1xf32> to vector<128x32xf32>
    %16 = arith.mulf %6, %15 : vector<128x32xf32>
    %c0_5 = arith.constant 0 : index
    %c0_6 = arith.constant 0 : index
    %17 = vector.load %arg2[%c0_5, %c0_6] : memref<1x32xf32, #tpu.memory_space<vmem>>, vector<1x32xf32>
    %18 = vector.broadcast %17 : vector<1x32xf32> to vector<128x32xf32>
    %19 = arith.mulf %16, %18 : vector<128x32xf32>
    %c0_7 = arith.constant 0 : index
    %c0_8 = arith.constant 0 : index
    %20 = vector.load %arg3[%c0_7, %c0_8] : memref<1x32xf32, #tpu.memory_space<vmem>>, vector<1x32xf32>
    %21 = vector.broadcast %20 : vector<1x32xf32> to vector<128x32xf32>
    %22 = arith.addf %19, %21 : vector<128x32xf32>
    %c0_9 = arith.constant 0 : index
    %c0_10 = arith.constant 0 : index
    %23 = vector.load %arg4[%c0_9, %c0_10] : memref<32x32xf32, #tpu.memory_space<vmem>>, vector<32x32xf32>
    %cst_11 = arith.constant dense<0.000000e+00> : vector<128x32xf32>
    %24 = tpu.matmul %22, %23, %cst_11 {dimension_numbers = #tpu.dot_dimension_numbers<[1], [0], [0], [1], [0, 0, 1, 1], [], []>} : vector<128x32xf32>, vector<32x32xf32>, vector<128x32xf32> -> vector<128x32xf32>
    %c0_12 = arith.constant 0 : index
    %c0_13 = arith.constant 0 : index
    %25 = vector.load %arg7[%c0_12, %c0_13] : memref<1x32xf32, #tpu.memory_space<vmem>>, vector<1x32xf32>
    %26 = vector.broadcast %25 : vector<1x32xf32> to vector<128x32xf32>
    %27 = arith.addf %24, %26 : vector<128x32xf32>
    %c0_14 = arith.constant 0 : index
    %c0_15 = arith.constant 0 : index
    %28 = vector.load %arg5[%c0_14, %c0_15] : memref<32x32xf32, #tpu.memory_space<vmem>>, vector<32x32xf32>
    %cst_16 = arith.constant dense<0.000000e+00> : vector<128x32xf32>
    %29 = tpu.matmul %22, %28, %cst_16 {dimension_numbers = #tpu.dot_dimension_numbers<[1], [0], [0], [1], [0, 0, 1, 1], [], []>} : vector<128x32xf32>, vector<32x32xf32>, vector<128x32xf32> -> vector<128x32xf32>
    %c0_17 = arith.constant 0 : index
    %c0_18 = arith.constant 0 : index
    %30 = vector.load %arg8[%c0_17, %c0_18] : memref<1x32xf32, #tpu.memory_space<vmem>>, vector<1x32xf32>
    %31 = vector.broadcast %30 : vector<1x32xf32> to vector<128x32xf32>
    %32 = arith.addf %29, %31 : vector<128x32xf32>
    %c0_19 = arith.constant 0 : index
    %c0_20 = arith.constant 0 : index
    %33 = vector.load %arg6[%c0_19, %c0_20] : memref<32x32xf32, #tpu.memory_space<vmem>>, vector<32x32xf32>
    %cst_21 = arith.constant dense<0.000000e+00> : vector<128x32xf32>
    %34 = tpu.matmul %22, %33, %cst_21 {dimension_numbers = #tpu.dot_dimension_numbers<[1], [0], [0], [1], [0, 0, 1, 1], [], []>} : vector<128x32xf32>, vector<32x32xf32>, vector<128x32xf32> -> vector<128x32xf32>
    %c0_22 = arith.constant 0 : index
    %c0_23 = arith.constant 0 : index
    %35 = vector.load %arg9[%c0_22, %c0_23] : memref<1x32xf32, #tpu.memory_space<vmem>>, vector<1x32xf32>
    %36 = vector.broadcast %35 : vector<1x32xf32> to vector<128x32xf32>
    %37 = arith.addf %34, %36 : vector<128x32xf32>
    %c0_24 = arith.constant 0 : index
    %c0_25 = arith.constant 0 : index
    %38 = vector.load %arg10[%c0_24, %c0_25] : memref<128x32xf32, #tpu.memory_space<vmem>>, vector<128x32xf32>
    tpu.vector_store %arg10[%c0_24, %c0_25], %27 {strides = array<i32>} : memref<128x32xf32, #tpu.memory_space<vmem>>, vector<128x32xf32>,
    %c0_26 = arith.constant 0 : index
    %c0_27 = arith.constant 0 : index
    %39 = vector.load %arg11[%c0_26, %c0_27] : memref<128x32xf32, #tpu.memory_space<vmem>>, vector<128x32xf32>
    tpu.vector_store %arg11[%c0_26, %c0_27], %32 {strides = array<i32>} : memref<128x32xf32, #tpu.memory_space<vmem>>, vector<128x32xf32>,
    %c0_28 = arith.constant 0 : index
    %c0_29 = arith.constant 0 : index
    %40 = vector.load %arg12[%c0_28, %c0_29] : memref<128x32xf32, #tpu.memory_space<vmem>>, vector<128x32xf32>
    tpu.vector_store %arg12[%c0_28, %c0_29], %37 {strides = array<i32>} : memref<128x32xf32, #tpu.memory_space<vmem>>, vector<128x32xf32>,
    return
  }
  func.func @transform_0(%arg0: i32) -> (i32, i32) {
    %c0_i32 = arith.constant 0 : i32
    %c0_i32_0 = arith.constant 0 : i32
    return %arg0, %c0_i32 : i32, i32
  }
  func.func @transform_1(%arg0: i32) -> (i32, i32) {
    %c0_i32 = arith.constant 0 : i32
    %c0_i32_0 = arith.constant 0 : i32
    %c0_i32_1 = arith.constant 0 : i32
    return %c0_i32, %c0_i32_0 : i32, i32
  }
  func.func @transform_2(%arg0: i32) -> (i32, i32) {
    %c0_i32 = arith.constant 0 : i32
    %c0_i32_0 = arith.constant 0 : i32
    %c0_i32_1 = arith.constant 0 : i32
    return %c0_i32, %c0_i32_0 : i32, i32
  }
  func.func @transform_3(%arg0: i32) -> (i32, i32) {
    %c0_i32 = arith.constant 0 : i32
    %c0_i32_0 = arith.constant 0 : i32
    %c0_i32_1 = arith.constant 0 : i32
    return %c0_i32, %c0_i32_0 : i32, i32
  }
  func.func @transform_4(%arg0: i32) -> (i32, i32) {
    %c0_i32 = arith.constant 0 : i32
    %c0_i32_0 = arith.constant 0 : i32
    %c0_i32_1 = arith.constant 0 : i32
    return %c0_i32, %c0_i32_0 : i32, i32
  }
  func.func @transform_5(%arg0: i32) -> (i32, i32) {
    %c0_i32 = arith.constant 0 : i32
    %c0_i32_0 = arith.constant 0 : i32
    %c0_i32_1 = arith.constant 0 : i32
    return %c0_i32, %c0_i32_0 : i32, i32
  }
  func.func @transform_6(%arg0: i32) -> (i32, i32) {
    %c0_i32 = arith.constant 0 : i32
    %c0_i32_0 = arith.constant 0 : i32
    %c0_i32_1 = arith.constant 0 : i32
    return %c0_i32, %c0_i32_0 : i32, i32
  }
  func.func @transform_7(%arg0: i32) -> (i32, i32) {
    %c0_i32 = arith.constant 0 : i32
    %c0_i32_0 = arith.constant 0 : i32
    %c0_i32_1 = arith.constant 0 : i32
    return %c0_i32, %c0_i32_0 : i32, i32
  }
  func.func @transform_8(%arg0: i32) -> (i32, i32) {
    %c0_i32 = arith.constant 0 : i32
    %c0_i32_0 = arith.constant 0 : i32
    %c0_i32_1 = arith.constant 0 : i32
    return %c0_i32, %c0_i32_0 : i32, i32
  }
  func.func @transform_9(%arg0: i32) -> (i32, i32) {
    %c0_i32 = arith.constant 0 : i32
    %c0_i32_0 = arith.constant 0 : i32
    return %arg0, %c0_i32 : i32, i32
  }
  func.func @transform_10(%arg0: i32) -> (i32, i32) {
    %c0_i32 = arith.constant 0 : i32
    %c0_i32_0 = arith.constant 0 : i32
    return %arg0, %c0_i32 : i32, i32
  }
  func.func @transform_11(%arg0: i32) -> (i32, i32) {
    %c0_i32 = arith.constant 0 : i32
    %c0_i32_0 = arith.constant 0 : i32
    return %arg0, %c0_i32 : i32, i32
  }
}

module attributes {stable_mosaic.version = 11 : i64} {
  func.func @kernel(%arg0: i32, %arg1: i32, %arg2: memref<1x64x32xf32, #tpu.memory_space<vmem>>, %arg3: memref<1x64x32xf32, #tpu.memory_space<vmem>>, %arg4: memref<1x64x32xf32, #tpu.memory_space<vmem>>, %arg5: memref<2x64x64xf32, #tpu.memory_space<vmem>>, %arg6: memref<1x64x32xf32, #tpu.memory_space<vmem>>, %arg7: memref<32x32xf32, #tpu.memory_space<vmem>>, %arg8: memref<1x32xf32, #tpu.memory_space<vmem>>, %arg9: memref<1x64x32xf32, #tpu.memory_space<vmem>>) attributes {dimension_semantics = [#tpu.dimension_semantics<parallel>, #tpu.dimension_semantics<parallel>], iteration_bounds = array<i64: 2, 1>, scalar_prefetch = 0 : i64, scratch_operands = 0 : i64, tpu.core_type = #tpu.core_type<tc>, window_params = [{transform_indices = @transform_0, window_bounds = array<i64: 1, 64, 32>}, {transform_indices = @transform_1, window_bounds = array<i64: 1, 64, 32>}, {transform_indices = @transform_2, window_bounds = array<i64: 1, 64, 32>}, {transform_indices = @transform_3, window_bounds = array<i64: 2, 64, 64>}, {transform_indices = @transform_4, window_bounds = array<i64: 1, 64, 32>}, {pipeline_mode = #tpu.pipeline_mode<synchronous>, transform_indices = @transform_5, window_bounds = array<i64: 32, 32>}, {pipeline_mode = #tpu.pipeline_mode<synchronous>, transform_indices = @transform_6, window_bounds = array<i64: 1, 32>}, {transform_indices = @transform_7, window_bounds = array<i64: 1, 64, 32>}]} {
    %c0 = arith.constant 0 : index
    %c0_0 = arith.constant 0 : index
    %c0_1 = arith.constant 0 : index
    %0 = vector.load %arg2[%c0, %c0_0, %c0_1] : memref<1x64x32xf32, #tpu.memory_space<vmem>>, vector<1x64x16xf32>
    %1 = vector.shape_cast %0 : vector<1x64x16xf32> to vector<64x16xf32>
    %c0_2 = arith.constant 0 : index
    %c0_3 = arith.constant 0 : index
    %c0_4 = arith.constant 0 : index
    %2 = vector.load %arg3[%c0_2, %c0_3, %c0_4] : memref<1x64x32xf32, #tpu.memory_space<vmem>>, vector<1x64x16xf32>
    %3 = vector.shape_cast %2 : vector<1x64x16xf32> to vector<64x16xf32>
    %c0_5 = arith.constant 0 : index
    %c0_6 = arith.constant 0 : index
    %c0_7 = arith.constant 0 : index
    %4 = vector.load %arg4[%c0_5, %c0_6, %c0_7] : memref<1x64x32xf32, #tpu.memory_space<vmem>>, vector<1x64x16xf32>
    %5 = vector.shape_cast %4 : vector<1x64x16xf32> to vector<64x16xf32>
    %cst = arith.constant dense<0.000000e+00> : vector<64x64xf32>
    %6 = tpu.matmul %1, %3, %cst {dimension_numbers = #tpu.dot_dimension_numbers<[1], [1], [0], [0], [0, 0, 1, 0], [], []>} : vector<64x16xf32>, vector<64x16xf32>, vector<64x64xf32> -> vector<64x64xf32>
    %c0_8 = arith.constant 0 : index
    %c0_9 = arith.constant 0 : index
    %c0_10 = arith.constant 0 : index
    %7 = vector.load %arg5[%c0_8, %c0_9, %c0_10] : memref<2x64x64xf32, #tpu.memory_space<vmem>>, vector<1x64x64xf32>
    %8 = vector.shape_cast %7 : vector<1x64x64xf32> to vector<64x64xf32>
    %9 = arith.addf %6, %8 : vector<64x64xf32>
    %cst_11 = arith.constant dense<0xFF800000> : vector<64xf32>
    %10 = vector.multi_reduction <maximumf>, %9, %cst_11 [1] : vector<64x64xf32> to vector<64xf32>
    %11 = vector.shape_cast %10 : vector<64xf32> to vector<64x1xf32>
    %12 = vector.broadcast %11 : vector<64x1xf32> to vector<64x64xf32>
    %13 = arith.subf %9, %12 : vector<64x64xf32>
    %14 = math.exp %13 : vector<64x64xf32>
    %cst_12 = arith.constant dense<0.000000e+00> : vector<64xf32>
    %15 = vector.multi_reduction <add>, %14, %cst_12 [1] : vector<64x64xf32> to vector<64xf32>
    %16 = vector.shape_cast %15 : vector<64xf32> to vector<64x1xf32>
    %17 = tpu.reciprocal %16 {approx = true} : vector<64x1xf32> -> vector<64x1xf32>
    %18 = vector.broadcast %17 : vector<64x1xf32> to vector<64x64xf32>
    %19 = arith.mulf %14, %18 : vector<64x64xf32>
    %cst_13 = arith.constant dense<0.000000e+00> : vector<64x16xf32>
    %20 = tpu.matmul %19, %5, %cst_13 {dimension_numbers = #tpu.dot_dimension_numbers<[1], [0], [0], [1], [0, 0, 1, 1], [], []>} : vector<64x64xf32>, vector<64x16xf32>, vector<64x16xf32> -> vector<64x16xf32>
    %c0_14 = arith.constant 0 : index
    %c0_15 = arith.constant 0 : index
    %c16 = arith.constant 16 : index
    %21 = vector.load %arg2[%c0_14, %c0_15, %c16] : memref<1x64x32xf32, #tpu.memory_space<vmem>>, vector<1x64x16xf32>
    %22 = vector.shape_cast %21 : vector<1x64x16xf32> to vector<64x16xf32>
    %c0_16 = arith.constant 0 : index
    %c0_17 = arith.constant 0 : index
    %c16_18 = arith.constant 16 : index
    %23 = vector.load %arg3[%c0_16, %c0_17, %c16_18] : memref<1x64x32xf32, #tpu.memory_space<vmem>>, vector<1x64x16xf32>
    %24 = vector.shape_cast %23 : vector<1x64x16xf32> to vector<64x16xf32>
    %c0_19 = arith.constant 0 : index
    %c0_20 = arith.constant 0 : index
    %c16_21 = arith.constant 16 : index
    %25 = vector.load %arg4[%c0_19, %c0_20, %c16_21] : memref<1x64x32xf32, #tpu.memory_space<vmem>>, vector<1x64x16xf32>
    %26 = vector.shape_cast %25 : vector<1x64x16xf32> to vector<64x16xf32>
    %cst_22 = arith.constant dense<0.000000e+00> : vector<64x64xf32>
    %27 = tpu.matmul %22, %24, %cst_22 {dimension_numbers = #tpu.dot_dimension_numbers<[1], [1], [0], [0], [0, 0, 1, 0], [], []>} : vector<64x16xf32>, vector<64x16xf32>, vector<64x64xf32> -> vector<64x64xf32>
    %c1 = arith.constant 1 : index
    %c0_23 = arith.constant 0 : index
    %c0_24 = arith.constant 0 : index
    %28 = vector.load %arg5[%c1, %c0_23, %c0_24] : memref<2x64x64xf32, #tpu.memory_space<vmem>>, vector<1x64x64xf32>
    %29 = vector.shape_cast %28 : vector<1x64x64xf32> to vector<64x64xf32>
    %30 = arith.addf %27, %29 : vector<64x64xf32>
    %cst_25 = arith.constant dense<0xFF800000> : vector<64xf32>
    %31 = vector.multi_reduction <maximumf>, %30, %cst_25 [1] : vector<64x64xf32> to vector<64xf32>
    %32 = vector.shape_cast %31 : vector<64xf32> to vector<64x1xf32>
    %33 = vector.broadcast %32 : vector<64x1xf32> to vector<64x64xf32>
    %34 = arith.subf %30, %33 : vector<64x64xf32>
    %35 = math.exp %34 : vector<64x64xf32>
    %cst_26 = arith.constant dense<0.000000e+00> : vector<64xf32>
    %36 = vector.multi_reduction <add>, %35, %cst_26 [1] : vector<64x64xf32> to vector<64xf32>
    %37 = vector.shape_cast %36 : vector<64xf32> to vector<64x1xf32>
    %38 = tpu.reciprocal %37 {approx = true} : vector<64x1xf32> -> vector<64x1xf32>
    %39 = vector.broadcast %38 : vector<64x1xf32> to vector<64x64xf32>
    %40 = arith.mulf %35, %39 : vector<64x64xf32>
    %cst_27 = arith.constant dense<0.000000e+00> : vector<64x16xf32>
    %41 = tpu.matmul %40, %26, %cst_27 {dimension_numbers = #tpu.dot_dimension_numbers<[1], [0], [0], [1], [0, 0, 1, 1], [], []>} : vector<64x64xf32>, vector<64x16xf32>, vector<64x16xf32> -> vector<64x16xf32>
    %42 = tpu.concatenate %20, %41 in 1 : vector<64x16xf32>, vector<64x16xf32> -> vector<64x32xf32>
    %c0_28 = arith.constant 0 : index
    %c0_29 = arith.constant 0 : index
    %43 = vector.load %arg7[%c0_28, %c0_29] : memref<32x32xf32, #tpu.memory_space<vmem>>, vector<32x32xf32>
    %cst_30 = arith.constant dense<0.000000e+00> : vector<64x32xf32>
    %44 = tpu.matmul %42, %43, %cst_30 {dimension_numbers = #tpu.dot_dimension_numbers<[1], [0], [0], [1], [0, 0, 1, 1], [], []>} : vector<64x32xf32>, vector<32x32xf32>, vector<64x32xf32> -> vector<64x32xf32>
    %c0_31 = arith.constant 0 : index
    %c0_32 = arith.constant 0 : index
    %45 = vector.load %arg8[%c0_31, %c0_32] : memref<1x32xf32, #tpu.memory_space<vmem>>, vector<1x32xf32>
    %46 = vector.broadcast %45 : vector<1x32xf32> to vector<64x32xf32>
    %47 = arith.addf %44, %46 : vector<64x32xf32>
    %c0_33 = arith.constant 0 : index
    %c0_34 = arith.constant 0 : index
    %c0_35 = arith.constant 0 : index
    %48 = vector.load %arg6[%c0_33, %c0_34, %c0_35] : memref<1x64x32xf32, #tpu.memory_space<vmem>>, vector<1x64x32xf32>
    %49 = vector.shape_cast %48 : vector<1x64x32xf32> to vector<64x32xf32>
    %50 = arith.addf %49, %47 : vector<64x32xf32>
    %c0_36 = arith.constant 0 : index
    %c0_37 = arith.constant 0 : index
    %c0_38 = arith.constant 0 : index
    %51 = vector.load %arg9[%c0_36, %c0_37, %c0_38] : memref<1x64x32xf32, #tpu.memory_space<vmem>>, vector<1x64x32xf32>
    %52 = vector.shape_cast %51 : vector<1x64x32xf32> to vector<64x32xf32>
    %53 = vector.shape_cast %50 : vector<64x32xf32> to vector<1x64x32xf32>
    tpu.vector_store %arg9[%c0_36, %c0_37, %c0_38], %53 {strides = array<i32>} : memref<1x64x32xf32, #tpu.memory_space<vmem>>, vector<1x64x32xf32>,
    return
  }
  func.func @transform_0(%arg0: i32, %arg1: i32) -> (i32, i32, i32) {
    %c0_i32 = arith.constant 0 : i32
    %c0_i32_0 = arith.constant 0 : i32
    return %arg0, %arg1, %c0_i32 : i32, i32, i32
  }
  func.func @transform_1(%arg0: i32, %arg1: i32) -> (i32, i32, i32) {
    %c0_i32 = arith.constant 0 : i32
    %c0_i32_0 = arith.constant 0 : i32
    %c0_i32_1 = arith.constant 0 : i32
    return %arg0, %c0_i32, %c0_i32_0 : i32, i32, i32
  }
  func.func @transform_2(%arg0: i32, %arg1: i32) -> (i32, i32, i32) {
    %c0_i32 = arith.constant 0 : i32
    %c0_i32_0 = arith.constant 0 : i32
    %c0_i32_1 = arith.constant 0 : i32
    return %arg0, %c0_i32, %c0_i32_0 : i32, i32, i32
  }
  func.func @transform_3(%arg0: i32, %arg1: i32) -> (i32, i32, i32) {
    %c0_i32 = arith.constant 0 : i32
    %c0_i32_0 = arith.constant 0 : i32
    %c0_i32_1 = arith.constant 0 : i32
    return %c0_i32, %arg1, %c0_i32_0 : i32, i32, i32
  }
  func.func @transform_4(%arg0: i32, %arg1: i32) -> (i32, i32, i32) {
    %c0_i32 = arith.constant 0 : i32
    %c0_i32_0 = arith.constant 0 : i32
    return %arg0, %arg1, %c0_i32 : i32, i32, i32
  }
  func.func @transform_5(%arg0: i32, %arg1: i32) -> (i32, i32) {
    %c0_i32 = arith.constant 0 : i32
    %c0_i32_0 = arith.constant 0 : i32
    %c0_i32_1 = arith.constant 0 : i32
    return %c0_i32, %c0_i32_0 : i32, i32
  }
  func.func @transform_6(%arg0: i32, %arg1: i32) -> (i32, i32) {
    %c0_i32 = arith.constant 0 : i32
    %c0_i32_0 = arith.constant 0 : i32
    %c0_i32_1 = arith.constant 0 : i32
    return %c0_i32, %c0_i32_0 : i32, i32
  }
  func.func @transform_7(%arg0: i32, %arg1: i32) -> (i32, i32, i32) {
    %c0_i32 = arith.constant 0 : i32
    %c0_i32_0 = arith.constant 0 : i32
    return %arg0, %arg1, %c0_i32 : i32, i32, i32
  }
}

</mosaic_0001>

<bundles_post_ra>
// kernel: _lambda_.6
= control target key start
LH: loop header
LB: loop body
LE: loop exit
PB: predicated region body
PF: predicated region fallthrough
CT: control target
= control target key end

     0   :  { %17 = vsyncpa [#allocation3], 0  ;;  %s1921_s0 = inlined_call_operand.hbm [shape: f32[128,32], index: 0, kind: input, shape index: {}]   ;;  %s1922_s1 = inlined_call_operand.vmem [shape: f32[1,32], index: 1, kind: input, shape index: {}]   ;;  %s1923_s2 = inlined_call_operand.vmem [shape: f32[1,32], index: 2, kind: input, shape index: {}]   ;;  %s1924_s3 = inlined_call_operand.vmem [shape: f32[32,32], index: 3, kind: input, shape index: {}]   ;;  %s1925_s4 = inlined_call_operand.vmem [shape: f32[32,32], index: 4, kind: input, shape index: {}]   ;;  %s1926_s5 = inlined_call_operand.vmem [shape: f32[32,32], index: 5, kind: input, shape index: {}]   ;;  %s1927_s6 = inlined_call_operand.vmem [shape: f32[1,32], index: 6, kind: input, shape index: {}]   ;;  %s1928_s7 = inlined_call_operand.hbm [shape: f32[1,32], index: 7, kind: input, shape index: {}]   ;;  %s1929_s8 = inlined_call_operand.hbm [shape: f32[1,32], index: 8, kind: input, shape index: {}]   ;;  %s1930_s9 = inlined_call_operand.vmem [shape: f32[128,32], index: 9, kind: output, shape index: {0}]   ;;  %s1931_s10 = inlined_call_operand.vmem [shape: f32[128,32], index: 10, kind: output, shape index: {1}]   ;;  %s1932_s11 = inlined_call_operand.vmem [shape: f32[128,32], index: 11, kind: output, shape index: {2}]  }
   0x1   :  { %18 = vsyncpa [#allocation5], 0  ;;  %s1266_s17 = smov [#allocation4]   ;;  %s1267_s19 = smov [#allocation2]  }
   0x2   :  { %s49_s18 = sshll.u32 %s1266_s17, 4  ;;  %s24_s20 = sshll.u32 %s1267_s19, 4  ;;  %s50_s18 = int_to_ptr.vmem [resolvable:$true] %s49_s18  ;;  %s1331_s20 = int_to_ptr.vmem [resolvable:$true] %s24_s20 }
   0x3   :  { %s1196_s23 = scalar_lea.hbm %s1928_s7, 16 }
   0x4   :  { %p1197_p0 = scmp.ne.s32.totalorder %s1928_s7, %s1196_s23  ;;  %p1200_p1 = scmp.lt.u32.totalorder %s1196_s23, %s1928_s7 }
   0x6   :  { %p1202_p2 = pnand %p1200_p1, %p1197_p0 }
   0x8   :  { %1205 = shalt.err (!%p1202_p2)
}
   0x9   :  { %s1206_s28 = scalar_lea.vmem %s50_s18, 16  ;;  %s1210_s29 = scalar_lea.vmem %s50_s18, 32 }
   0xa   :  { %p1207_p3 = scmp.ne.s32.totalorder %s50_s18, %s1206_s28  ;;  %p1211_p4 = scmp.lt.s32.totalorder %s50_s18, %s50_s18 }
   0xb   :  { %p1212_p5 = scmp.lt.s32.totalorder %s1210_s29, %s1206_s28 }
   0xd   :  { %p1213_p6 = por %p1212_p5, %p1211_p4 }
   0xf   :  { %p1214_p7 = pnand %p1213_p6, %p1207_p3 }
  0x11   :  { %1217 = shalt.err (!%p1214_p7)
}
  0x12   :  { %52 = dma.hbm_to_vmem [thread:$0]  %s1928_s7, 16, %s50_s18, [#allocation5]  }
  0x13   :  { %s1218_s15 = scalar_lea.hbm %s1921_s0, 2048 }
  0x14   :  { %p1219_p8 = scmp.ne.s32.totalorder %s1921_s0, %s1218_s15  ;;  %p1222_p9 = scmp.lt.u32.totalorder %s1218_s15, %s1921_s0 }
  0x16   :  { %p1224_p10 = pnand %p1222_p9, %p1219_p8 }
  0x18   :  { %1227 = shalt.err (!%p1224_p10)
}
  0x19   :  { %s1228_s22 = scalar_lea.vmem %s1331_s20, 2048  ;;  %p1233_p12 = scmp.lt.s32.totalorder %s1331_s20, %s1331_s20 }
  0x1a   :  { %p1229_p11 = scmp.ne.s32.totalorder %s1331_s20, %s1228_s22  ;;  %p1234_p13 = scmp.lt.s32.totalorder %s1228_s22, %s1228_s22 }
  0x1c   :  { %p1235_p0 = por %p1234_p13, %p1233_p12 }
  0x1e   :  { %p1236_p1 = pnand %p1235_p0, %p1229_p11 }
  0x20   :  { %1239 = shalt.err (!%p1236_p1)
}
  0x21   :  { %s1268_s7 = smov 128   ;;  %s1269_s18 = smov 8  }
  0x22   :  { %30 = dma.hbm_to_vmem [thread:$0]  %s1921_s0, 2048, %s1331_s20, [#allocation3], %s1268_s7, %s1268_s7, %s1269_s18  }
  0x23   :  { %s1270_s25 = smov [#allocation6]   ;;  %s1240_s29 = scalar_lea.hbm %s1929_s8, 16 }
  0x24   :  { %s59_s26 = sshll.u32 %s1270_s25, 4  ;;  %p1241_p2 = scmp.ne.s32.totalorder %s1929_s8, %s1240_s29  ;;  %s60_s26 = int_to_ptr.vmem [resolvable:$true] %s59_s26 }
  0x25   :  { %p1244_p3 = scmp.lt.u32.totalorder %s1240_s29, %s1929_s8 }
  0x27   :  { %p1246_p4 = pnand %p1244_p3, %p1241_p2 }
  0x29   :  { %1249 = shalt.err (!%p1246_p4)
}
  0x2a   :  { %s1250_s15 = scalar_lea.vmem %s60_s26, 16  ;;  %s1254_s0 = scalar_lea.vmem %s60_s26, 32 }
  0x2b   :  { %p1251_p5 = scmp.ne.s32.totalorder %s60_s26, %s1250_s15  ;;  %p1255_p6 = scmp.lt.s32.totalorder %s60_s26, %s60_s26 }
  0x2c   :  { %p1256_p7 = scmp.lt.s32.totalorder %s1254_s0, %s1250_s15 }
  0x2e   :  { %p1257_p8 = por %p1256_p7, %p1255_p6 }
  0x30   :  { %p1258_p9 = pnand %p1257_p8, %p1251_p5 }
  0x32   :  { %1261 = shalt.err (!%p1258_p9)
}
  0x33   :  { %62 = dma.hbm_to_vmem [thread:$0]  %s1929_s8, 16, %s60_s26, [#allocation5]  }
  0x34   :  { %1262 = dma.done.wait [#allocation3], 2048  }
  0x35   :  { %1263 = vsyncadd [#allocation3], 4294965248 }
  0x36   :  { %1264 = dma.done.wait [#allocation5], 32  }
  0x37   :  { %1265 = vsyncadd [#allocation5], 4294967264  ;;  %vm88_vm0 = vcmask 261120   ;;  %v72_v0 = vld [vmem:[#allocation2] sm:$0xff]  ;;  %v73_v1 = vld [vmem:[#allocation2 + $0x8] sm:$0xff] }
  0x38   :  { %v80_v2 = vld [vmem:[#allocation2 + $0x40] sm:$0xff]  ;;  %v89_v3 = vsel %vm88_vm0, %v72_v0, 0.0  ;;  %v92_v4 = vsel %vm88_vm0, %v73_v1, 0.0  ;;  %v81_v5 = vld [vmem:[#allocation2 + $0x48] sm:$0xff]  ;;  %v74_v8 = vld [vmem:[#allocation2 + $0x10] sm:$0xff] }
  0x39   :  { %90 = vadd.xlane.f32.xlu0 %v89_v3  ;;  %93 = vadd.xlane.f32.xlu1 %v92_v4  ;;  %v113_v6 = vsel %vm88_vm0, %v80_v2, 0.0  ;;  %v116_v7 = vsel %vm88_vm0, %v81_v5, 0.0  ;;  %v82_v9 = vld [vmem:[#allocation2 + $0x50] sm:$0xff]  ;;  %v95_v10 = vsel %vm88_vm0, %v74_v8, 0.0  ;;  %v1380_v12 = vld [vmem:[#allocation2 + $0x18] sm:$0xff]  ;;  %v1388_v16 = vld [vmem:[#allocation2 + $0x20] sm:$0xff] }
  0x3a   :  { %v119_v11 = vsel %vm88_vm0, %v82_v9, 0.0  ;;  %v1382_v13 = vld [vmem:[#allocation2 + $0x58] sm:$0xff]  ;;  %v98_v14 = vsel %vm88_vm0, %v1380_v12, 0.0  ;;  %v1390_v17 = vld [vmem:[#allocation2 + $0x60] sm:$0xff]  ;;  %v101_v18 = vsel %vm88_vm0, %v1388_v16, 0.0  ;;  %v1396_v20 = vld [vmem:[#allocation2 + $0x28] sm:$0xff] }
  0x3b   :  { %v122_v15 = vsel %vm88_vm0, %v1382_v13, 0.0  ;;  %v125_v19 = vsel %vm88_vm0, %v1390_v17, 0.0  ;;  %v1398_v21 = vld [vmem:[#allocation2 + $0x68] sm:$0xff]  ;;  %v104_v22 = vsel %vm88_vm0, %v1396_v20, 0.0  ;;  %v1404_v24 = vld [vmem:[#allocation2 + $0x30] sm:$0xff]  ;;  %v1412_v28 = vld [vmem:[#allocation2 + $0x38] sm:$0xff] }
  0x3c   :  { %v128_v23 = vsel %vm88_vm0, %v1398_v21, 0.0  ;;  %v1406_v25 = vld [vmem:[#allocation2 + $0x70] sm:$0xff]  ;;  %v107_v26 = vsel %vm88_vm0, %v1404_v24, 0.0  ;;  %v1414_v29 = vld [vmem:[#allocation2 + $0x78] sm:$0xff]  ;;  %v110_v30 = vsel %vm88_vm0, %v1412_v28, 0.0 }
  0x3d   :  { %114 = vadd.xlane.f32.xlu0 %v113_v6  ;;  %117 = vadd.xlane.f32.xlu1 %v116_v7  ;;  %v131_v27 = vsel %vm88_vm0, %v1406_v25, 0.0  ;;  %v134_v31 = vsel %vm88_vm0, %v1414_v29, 0.0 }
  0x41   :  { %96 = vadd.xlane.f32.xlu0 %v95_v10  ;;  %120 = vadd.xlane.f32.xlu1 %v119_v11 }
  0x45   :  { %99 = vadd.xlane.f32.xlu0 %v98_v14  ;;  %123 = vadd.xlane.f32.xlu1 %v122_v15 }
  0x49   :  { %102 = vadd.xlane.f32.xlu0 %v101_v18  ;;  %126 = vadd.xlane.f32.xlu1 %v125_v19 }
  0x4d   :  { %105 = vadd.xlane.f32.xlu0 %v104_v22  ;;  %129 = vadd.xlane.f32.xlu1 %v128_v23 }
  0x51   :  { %108 = vadd.xlane.f32.xlu0 %v107_v26  ;;  %132 = vadd.xlane.f32.xlu1 %v131_v27 }
  0x55   :  { %111 = vadd.xlane.f32.xlu0 %v110_v30  ;;  %135 = vadd.xlane.f32.xlu1 %v134_v31 }
  0xc6   :  { %v91_v32 = vpop.xlane.xlu0 %90  ;;  %v94_v33 = vpop.xlane.xlu1 %93 }
  0xc7   :  { %v138_v34 = vmul.f32 0.03125, %v91_v32  ;;  %v139_v35 = vmul.f32 0.03125, %v94_v33 }
  0xc9   :  { %v1420_v36 = vsub.f32 %v72_v0, %v138_v34  ;;  %v1422_v37 = vsub.f32 %v73_v1, %v139_v35 }
  0xca   :  { %v115_v38 = vpop.xlane.xlu0 %114  ;;  %v118_v39 = vpop.xlane.xlu1 %117 }
  0xcb   :  { %v146_v40 = vmul.f32 0.03125, %v115_v38  ;;  %v147_v41 = vmul.f32 0.03125, %v118_v39  ;;  %v170_v42 = vmul.f32 %v1420_v36, %v1420_v36  ;;  %v171_v43 = vmul.f32 %v1422_v37, %v1422_v37 }
  0xcd   :  { %v1428_v44 = vsub.f32 %v80_v2, %v146_v40  ;;  %v1430_v45 = vsub.f32 %v81_v5, %v147_v41  ;;  %v186_v46 = vsel %vm88_vm0, %v170_v42, 0.0  ;;  %v189_v49 = vsel %vm88_vm0, %v171_v43, 0.0 }
  0xce   :  { %187 = vadd.xlane.f32.xlu0 %v186_v46  ;;  %v97_v47 = vpop.xlane.xlu0 %96  ;;  %v121_v48 = vpop.xlane.xlu1 %120 }
  0xcf   :  { %v140_v50 = vmul.f32 0.03125, %v97_v47  ;;  %v148_v51 = vmul.f32 0.03125, %v121_v48  ;;  %v178_v52 = vmul.f32 %v1428_v44, %v1428_v44  ;;  %v179_v53 = vmul.f32 %v1430_v45, %v1430_v45 }
  0xd1   :  { %v1438_v54 = vsub.f32 %v74_v8, %v140_v50  ;;  %v1440_v55 = vsub.f32 %v82_v9, %v148_v51  ;;  %v210_v56 = vsel %vm88_vm0, %v178_v52, 0.0  ;;  %v213_v59 = vsel %vm88_vm0, %v179_v53, 0.0  ;;  %v345_v53 = vld [vmem:[%s1924_s3 + $0x8] sm:$0xff] }
  0xd2   :  { %190 = vadd.xlane.f32.xlu0 %v189_v49  ;;  %211 = vadd.xlane.f32.xlu1 %v210_v56  ;;  %v100_v57 = vpop.xlane.xlu0 %99  ;;  %v124_v58 = vpop.xlane.xlu1 %123 }
  0xd3   :  { %v141_v60 = vmul.f32 0.03125, %v100_v57  ;;  %v149_v61 = vmul.f32 0.03125, %v124_v58  ;;  %v172_v62 = vmul.f32 %v1438_v54, %v1438_v54  ;;  %v180_v63 = vmul.f32 %v1440_v55, %v1440_v55  ;;  %v346_v57 = vld [vmem:[%s1924_s3 + $0x10] sm:$0xff]  ;;  %v347_v58 = vld [vmem:[%s1924_s3 + $0x18] sm:$0xff] }
  0xd5   :  { %v1449_v0 = vsub.f32 %v1380_v12, %v141_v60  ;;  %v1452_v1 = vsub.f32 %v1382_v13, %v149_v61  ;;  %v192_v2 = vsel %vm88_vm0, %v172_v62, 0.0  ;;  %v216_v5 = vsel %vm88_vm0, %v180_v63, 0.0  ;;  %v548_v60 = vld [vmem:[%s1925_s4] sm:$0xff]  ;;  %v549_v61 = vld [vmem:[%s1925_s4 + $0x8] sm:$0xff] }
  0xd6   :  { %214 = vadd.xlane.f32.xlu1 %v213_v59  ;;  %193 = vadd.xlane.f32.xlu0 %v192_v2  ;;  %v103_v3 = vpop.xlane.xlu0 %102  ;;  %v127_v4 = vpop.xlane.xlu1 %126  ;;  %v1135_v59 = vpack.c.bf16 %v347_v58, %v346_v57  ;;  %v704_v62 = vld [vmem:[%s1926_s5] sm:$0xff]  ;;  %v1531_v63 = vpack.c.bf16 %v549_v61, %v548_v60  ;;  %v705_v2 = vld [vmem:[%s1926_s5 + $0x8] sm:$0xff]  ;;  %v706_v58 = vld [vmem:[%s1926_s5 + $0x10] sm:$0xff] }
  0xd7   :  { %v142_v6 = vmul.f32 0.03125, %v103_v3  ;;  %v150_v7 = vmul.f32 0.03125, %v127_v4  ;;  %v173_v8 = vmul.f32 %v1449_v0, %v1449_v0  ;;  %v181_v9 = vmul.f32 %v1452_v1, %v1452_v1 }
  0xd8   :  { %v1536_v3 = vpack.c.bf16 %v705_v2, %v704_v62 }
  0xd9   :  { %v1461_v10 = vsub.f32 %v1388_v16, %v142_v6  ;;  %v1464_v11 = vsub.f32 %v1390_v17, %v150_v7  ;;  %v195_v12 = vsel %vm88_vm0, %v173_v8, 0.0  ;;  %v219_v15 = vsel %vm88_vm0, %v181_v9, 0.0 }
  0xda   :  { %217 = vadd.xlane.f32.xlu1 %v216_v5  ;;  %196 = vadd.xlane.f32.xlu0 %v195_v12  ;;  %v106_v13 = vpop.xlane.xlu0 %105  ;;  %v130_v14 = vpop.xlane.xlu1 %129 }
  0xdb   :  { %v143_v18 = vmul.f32 0.03125, %v106_v13  ;;  %v151_v19 = vmul.f32 0.03125, %v130_v14  ;;  %v174_v22 = vmul.f32 %v1461_v10, %v1461_v10  ;;  %v182_v16 = vmul.f32 %v1464_v11, %v1464_v11 }
  0xdd   :  { %v1473_v23 = vsub.f32 %v1396_v20, %v143_v18  ;;  %v1476_v17 = vsub.f32 %v1398_v21, %v151_v19  ;;  %v198_v26 = vsel %vm88_vm0, %v174_v22, 0.0  ;;  %v222_v31 = vsel %vm88_vm0, %v182_v16, 0.0 }
  0xde   :  { %220 = vadd.xlane.f32.xlu1 %v219_v15  ;;  %199 = vadd.xlane.f32.xlu0 %v198_v26  ;;  %v109_v27 = vpop.xlane.xlu0 %108  ;;  %v133_v30 = vpop.xlane.xlu1 %132 }
  0xdf   :  { %v144_v32 = vmul.f32 0.03125, %v109_v27  ;;  %v152_v33 = vmul.f32 0.03125, %v133_v30  ;;  %v175_v34 = vmul.f32 %v1473_v23, %v1473_v23  ;;  %v183_v20 = vmul.f32 %v1476_v17, %v1476_v17 }
  0xe1   :  { %v1485_v35 = vsub.f32 %v1404_v24, %v144_v32  ;;  %v1488_v21 = vsub.f32 %v1406_v25, %v152_v33  ;;  %v201_v38 = vsel %vm88_vm0, %v175_v34, 0.0  ;;  %v225_v41 = vsel %vm88_vm0, %v183_v20, 0.0 }
  0xe2   :  { %223 = vadd.xlane.f32.xlu1 %v222_v31  ;;  %202 = vadd.xlane.f32.xlu0 %v201_v38  ;;  %v112_v39 = vpop.xlane.xlu0 %111  ;;  %v136_v40 = vpop.xlane.xlu1 %135  ;;  %v1543_v38 = vld [vmem:[%s1922_s1] ss:$0 sm:$0xff] }
  0xe3   :  { %v145_v42 = vmul.f32 0.03125, %v112_v39  ;;  %v153_v43 = vmul.f32 0.03125, %v136_v40  ;;  %v176_v46 = vmul.f32 %v1485_v35, %v1485_v35  ;;  %v184_v24 = vmul.f32 %v1488_v21, %v1488_v21 }
  0xe5   :  { %v1497_v47 = vsub.f32 %v1412_v28, %v145_v42  ;;  %v1500_v25 = vsub.f32 %v1414_v29, %v153_v43  ;;  %v204_v48 = vsel %vm88_vm0, %v176_v46, 0.0  ;;  %v228_v49 = vsel %vm88_vm0, %v184_v24, 0.0  ;;  %v344_v29 = vld [vmem:[%s1924_s3] sm:$0xff] }
  0xe6   :  { %226 = vadd.xlane.f32.xlu1 %v225_v41  ;;  %205 = vadd.xlane.f32.xlu0 %v204_v48  ;;  %v1131_v56 = vpack.c.bf16 %v345_v53, %v344_v29  ;;  %v1549_v46 = vld [vmem:[%s1923_s2] ss:$0 sm:$0xff] }
  0xe7   :  { %v177_v50 = vmul.f32 %v1497_v47, %v1497_v47  ;;  %v185_v51 = vmul.f32 %v1500_v25, %v1500_v25 }
  0xe8   :  { %1132 = vmatprep.subr.bf16.mxu0 %v1131_v56  ;;  %1155 = vmatprep.subr.bf16.mxu1 %v1131_v56 }
  0xe9   :  { %v207_v52 = vsel %vm88_vm0, %v177_v50, 0.0  ;;  %v231_v28 = vsel %vm88_vm0, %v185_v51, 0.0  ;;  %1134 = vmatpush3.bf16.msra.mxu0 %v1131_v56  ;;  %1157 = vmatpush3.bf16.msra.mxu1 %v1131_v56 }
  0xea   :  { %229 = vadd.xlane.f32.xlu1 %v228_v49  ;;  %208 = vadd.xlane.f32.xlu0 %v207_v52 }
  0xeb   :  { %1136 = vmatprep.subr.bf16.mxu0 %v1135_v59  ;;  %1156 = vmatprep.subr.bf16.mxu1 %v1135_v59 }
  0xed   :  { %1138 = vmatpush3.bf16.msra.mxu0 %v1135_v59  ;;  %1158 = vmatpush3.bf16.msra.mxu1 %v1135_v59  ;;  %v707_v59 = vld [vmem:[%s1926_s5 + $0x18] sm:$0xff] }
  0xee   :  { %232 = vadd.xlane.f32.xlu1 %v231_v28  ;;  %1140 = vmatprep.subr.bf16.mxu1 %v1531_v63 }
  0xef   :  { %1148 = vmatprep.subr.bf16.mxu0 %v1536_v3 }
 0x15b   :  { %v188_v4 = vpop.xlane.xlu0 %187 }
 0x15c   :  { %v234_v5 = vmul.f32 0.03125, %v188_v4 }
 0x15e   :  { %v250_v6 = vadd.f32 1e-05, %v234_v5 }
 0x15f   :  { %v212_v7 = vpop.xlane.xlu1 %211  ;;  %v191_v8 = vpop.xlane.xlu0 %190 }
 0x160   :  { %1164 = vrsqrt.f32 %v250_v6  ;;  %v242_v9 = vmul.f32 0.03125, %v212_v7  ;;  %v235_v12 = vmul.f32 0.03125, %v191_v8  ;;  %v1151_v8 = vpack.c.bf16 %v707_v59, %v706_v58 }
 0x162   :  { %v258_v13 = vadd.f32 1e-05, %v242_v9  ;;  %v251_v14 = vadd.f32 1e-05, %v235_v12 }
 0x163   :  { %v215_v15 = vpop.xlane.xlu1 %214  ;;  %v194_v18 = vpop.xlane.xlu0 %193 }
 0x164   :  { %1166 = vrsqrt.f32 %v258_v13  ;;  %v243_v19 = vmul.f32 0.03125, %v215_v15  ;;  %v236_v22 = vmul.f32 0.03125, %v194_v18  ;;  %v551_v15 = vld [vmem:[%s1925_s4 + $0x18] sm:$0xff] }
 0x165   :  { %1168 = vrsqrt.f32 %v251_v14  ;;  %v550_v14 = vld [vmem:[%s1925_s4 + $0x10] sm:$0xff] }
 0x166   :  { %v259_v16 = vadd.f32 1e-05, %v243_v19  ;;  %v252_v26 = vadd.f32 1e-05, %v236_v22 }
 0x167   :  { %v218_v27 = vpop.xlane.xlu1 %217  ;;  %v197_v30 = vpop.xlane.xlu0 %196 }
 0x168   :  { %1170 = vrsqrt.f32 %v259_v16  ;;  %v244_v31 = vmul.f32 0.03125, %v218_v27  ;;  %v237_v32 = vmul.f32 0.03125, %v197_v30 }
 0x169   :  { %1172 = vrsqrt.f32 %v252_v26 }
 0x16a   :  { %v1165_v33 = vpop.eup %1164  ;;  %v260_v34 = vadd.f32 1e-05, %v244_v31  ;;  %v253_v20 = vadd.f32 1e-05, %v237_v32 }
 0x16b   :  { %v221_v39 = vpop.xlane.xlu1 %220  ;;  %v200_v40 = vpop.xlane.xlu0 %199  ;;  %v282_v41 = vmul.f32 %v1165_v33, %v1420_v36 }
 0x16c   :  { %1174 = vrsqrt.f32 %v260_v34  ;;  %v245_v42 = vmul.f32 0.03125, %v221_v39  ;;  %v238_v43 = vmul.f32 0.03125, %v200_v40 }
 0x16d   :  { %1176 = vrsqrt.f32 %v253_v20  ;;  %v305_v24 = vmul.f32 %v1543_v38, %v282_v41 }
 0x16e   :  { %v1167_v48 = vpop.eup %1166  ;;  %v261_v49 = vadd.f32 1e-05, %v245_v42  ;;  %v254_v50 = vadd.f32 1e-05, %v238_v43 }
 0x16f   :  { %v1169_v51 = vpop.eup %1168  ;;  %v224_v52 = vpop.xlane.xlu1 %223  ;;  %v1553_v29 = vadd.f32 %v1549_v46, %v305_v24  ;;  %v290_v36 = vmul.f32 %v1167_v48, %v1428_v44 }
 0x170   :  { %v203_v28 = vpop.xlane.xlu0 %202  ;;  %1178 = vrsqrt.f32 %v261_v49  ;;  %v246_v53 = vmul.f32 0.03125, %v224_v52  ;;  %v283_v57 = vmul.f32 %v1169_v51, %v1422_v37 }
 0x171   :  { %v239_v56 = vmul.f32 0.03125, %v203_v28  ;;  %1180 = vrsqrt.f32 %v254_v50  ;;  %1043 = vmatprep.mubr.msk.f32.mxu0 %vm88_vm0, %v1553_v29  ;;  %v313_v60 = vmul.f32 %v1543_v38, %v290_v36 }
 0x172   :  { %v1171_v44 = vpop.eup %1170  ;;  %v262_v61 = vadd.f32 1e-05, %v246_v53  ;;  %v306_v2 = vmul.f32 %v1543_v38, %v283_v57 }
 0x173   :  { %v255_v62 = vadd.f32 1e-05, %v239_v56  ;;  %v1173_v37 = vpop.eup %1172  ;;  %v227_v4 = vpop.xlane.xlu1 %226  ;;  %v1568_v6 = vadd.f32 %v1549_v46, %v313_v60  ;;  %v291_v7 = vmul.f32 %v1171_v44, %v1430_v45 }
 0x174   :  { %v206_v5 = vpop.xlane.xlu0 %205  ;;  %1182 = vrsqrt.f32 %v262_v61  ;;  %v247_v9 = vmul.f32 0.03125, %v227_v4  ;;  %v1572_v13 = vadd.f32 %v1549_v46, %v306_v2  ;;  %v284_v45 = vmul.f32 %v1173_v37, %v1438_v54 }
 0x175   :  { %v240_v12 = vmul.f32 0.03125, %v206_v5  ;;  %1184 = vrsqrt.f32 %v255_v62  ;;  %1055 = vmatprep.mubr.msk.f32.mxu1 %vm88_vm0, %v1568_v6  ;;  %v314_v18 = vmul.f32 %v1543_v38, %v291_v7  ;;  %v1143_v54 = vpack.c.bf16 %v551_v15, %v550_v14 }
 0x176   :  { %v1175_v19 = vpop.eup %1174  ;;  %v263_v22 = vadd.f32 1e-05, %v247_v9  ;;  %1044 = vmatmul.mubr.msk.f32.vlgmr.msra.gmra.mrb[0].mxu0 %vm88_vm0, %v1572_v13  ;;  %v307_v31 = vmul.f32 %v1543_v38, %v284_v45 }
 0x177   :  { %v256_v16 = vadd.f32 1e-05, %v240_v12  ;;  %v1177_v26 = vpop.eup %1176  ;;  %v230_v27 = vpop.xlane.xlu1 %229  ;;  %v1588_v32 = vadd.f32 %v1549_v46, %v314_v18  ;;  %v292_v33 = vmul.f32 %v1175_v19, %v1440_v55  ;;  %1150 = vmatpush3.bf16.msra.mxu0 %v1536_v3 }
 0x178   :  { %v209_v30 = vpop.xlane.xlu0 %208  ;;  %1186 = vrsqrt.f32 %v263_v22  ;;  %v248_v34 = vmul.f32 0.03125, %v230_v27  ;;  %v285_v39 = vmul.f32 %v1177_v26, %v1449_v0  ;;  %1152 = vmatprep.subr.bf16.mxu0 %v1151_v8  ;;  %v1594_v40 = vadd.f32 %v1549_v46, %v307_v31 }
 0x179   :  { %v241_v20 = vmul.f32 0.03125, %v209_v30  ;;  %1188 = vrsqrt.f32 %v256_v16  ;;  %1056 = vmatmul.mubr.msk.f32.vlgmr.msra.gmra.mrb[0].mxu1 %vm88_vm0, %v1588_v32  ;;  %v315_v41 = vmul.f32 %v1543_v38, %v292_v33 }
 0x17a   :  { %v1179_v42 = vpop.eup %1178  ;;  %v264_v55 = vadd.f32 1e-05, %v248_v34  ;;  %v308_v3 = vmul.f32 %v1543_v38, %v285_v39  ;;  %1142 = vmatpush3.bf16.msra.mxu1 %v1531_v63  ;;  %1046 = vmatprep.mubr.msk.f32.mxu0 %vm88_vm0, %v1594_v40 }
 0x17b   :  { %v257_v43 = vadd.f32 1e-05, %v241_v20  ;;  %v1181_v24 = vpop.eup %1180  ;;  %v233_v0 = vpop.xlane.xlu1 %232  ;;  %v1604_v48 = vadd.f32 %v1549_v46, %v315_v41  ;;  %v293_v49 = vmul.f32 %v1179_v42, %v1452_v1  ;;  %1144 = vmatprep.subr.bf16.mxu1 %v1143_v54  ;;  %1154 = vmatpush3.bf16.msra.mxu0 %v1151_v8 }
 0x17c   :  { %1190 = vrsqrt.f32 %v264_v55  ;;  %v249_v50 = vmul.f32 0.03125, %v233_v0  ;;  %v331_v51 = vadd.f32 %v1549_v46, %v308_v3  ;;  %v286_v52 = vmul.f32 %v1181_v24, %v1461_v10 }
 0x17d   :  { %1192 = vrsqrt.f32 %v257_v43  ;;  %1058 = vmatprep.mubr.msk.f32.mxu1 %vm88_vm0, %v1604_v48  ;;  %v316_v63 = vmul.f32 %v1543_v38, %v293_v49 }
 0x17e   :  { %v1183_v28 = vpop.eup %1182  ;;  %v265_v36 = vadd.f32 1e-05, %v249_v50  ;;  %1047 = vmatmul.mubr.msk.f32.gmra.mrb[2].mxu0 %vm88_vm0, %v331_v51  ;;  %v309_v1 = vmul.f32 %v1543_v38, %v286_v52  ;;  %1146 = vmatpush3.bf16.msra.mxu1 %v1143_v54 }
 0x17f   :  { %v1185_v53 = vpop.eup %1184  ;;  %v339_v56 = vadd.f32 %v1549_v46, %v316_v63  ;;  %v294_v57 = vmul.f32 %v1183_v28, %v1464_v11 }
 0x180   :  { %1194 = vrsqrt.f32 %v265_v36  ;;  %v332_v10 = vadd.f32 %v1549_v46, %v309_v1  ;;  %v287_v58 = vmul.f32 %v1185_v53, %v1473_v23 }
 0x181   :  { %1059 = vmatmul.mubr.msk.f32.gmra.mrb[2].mxu1 %vm88_vm0, %v339_v56  ;;  %v317_v59 = vmul.f32 %v1543_v38, %v294_v57  ;;  %v1752_v57 = vld [vmem:[#allocation4] ss:$0 sm:$0xff] }
 0x182   :  { %v1187_v60 = vpop.eup %1186  ;;  %1049 = vmatprep.mubr.msk.f32.mxu0 %vm88_vm0, %v332_v10  ;;  %v310_v44 = vmul.f32 %v1543_v38, %v287_v58 }
 0x183   :  { %v1189_v61 = vpop.eup %1188  ;;  %v340_v62 = vadd.f32 %v1549_v46, %v317_v59  ;;  %v295_v2 = vmul.f32 %v1187_v60, %v1476_v17 }
 0x184   :  { %v333_v11 = vadd.f32 %v1549_v46, %v310_v44  ;;  %v288_v37 = vmul.f32 %v1189_v61, %v1485_v35 }
 0x185   :  { %1061 = vmatprep.mubr.msk.f32.mxu1 %vm88_vm0, %v340_v62  ;;  %v318_v23 = vmul.f32 %v1543_v38, %v295_v2 }
 0x186   :  { %v1191_v4 = vpop.eup %1190  ;;  %1050 = vmatmul.mubr.msk.f32.gmra.mrb[4].mxu0 %vm88_vm0, %v333_v11  ;;  %v311_v5 = vmul.f32 %v1543_v38, %v288_v37 }
 0x187   :  { %v1193_v7 = vpop.eup %1192  ;;  %v341_v8 = vadd.f32 %v1549_v46, %v318_v23  ;;  %v296_v9 = vmul.f32 %v1191_v4, %v1488_v21 }
 0x188   :  { %v334_v17 = vadd.f32 %v1549_v46, %v311_v5  ;;  %v289_v12 = vmul.f32 %v1193_v7, %v1497_v47 }
 0x189   :  { %1062 = vmatmul.mubr.msk.f32.gmra.mrb[4].mxu1 %vm88_vm0, %v341_v8  ;;  %v319_v35 = vmul.f32 %v1543_v38, %v296_v9 }
 0x18a   :  { %v1195_v14 = vpop.eup %1194  ;;  %1052 = vmatprep.mubr.msk.f32.mxu0 %vm88_vm0, %v334_v17  ;;  %v312_v15 = vmul.f32 %v1543_v38, %v289_v12 }
 0x18b   :  { %v342_v45 = vadd.f32 %v1549_v46, %v319_v35  ;;  %v297_v18 = vmul.f32 %v1195_v14, %v1500_v25  ;;  %v924_v25 = vld [vmem:[%s1927_s6] ss:$0 sm:$0xff] }
 0x18c   :  { %v335_v19 = vadd.f32 %v1549_v46, %v312_v15 }
 0x18d   :  { %1064 = vmatprep.mubr.msk.f32.mxu1 %vm88_vm0, %v342_v45  ;;  %v320_v21 = vmul.f32 %v1543_v38, %v297_v18 }
 0x18e   :  { %1053 = vmatmul.mubr.msk.f32.gmra.mrb[6].mxu0 %vm88_vm0, %v335_v19 }
 0x18f   :  { %1107 = vmatprep.mubr.msk.f32.mxu0 %vm88_vm0, %v1553_v29  ;;  %v343_v47 = vadd.f32 %v1549_v46, %v320_v21 }
 0x191   :  { %1065 = vmatmul.mubr.msk.f32.gmra.mrb[6].mxu1 %vm88_vm0, %v343_v47 }
 0x192   :  { %1108 = vmatmul.mubr.msk.f32.vlgmr.msra.gmra.mrb[8].mxu0 %vm88_vm0, %v1572_v13  ;;  %1075 = vmatprep.mubr.msk.f32.mxu1 %vm88_vm0, %v1553_v29 }
 0x193   :  { %1110 = vmatprep.mubr.msk.f32.mxu0 %vm88_vm0, %v1594_v40 }
 0x195   :  { %1076 = vmatmul.mubr.msk.f32.vlgmr.msra.gmra.mrb[8].mxu1 %vm88_vm0, %v1572_v13 }
 0x196   :  { %1111 = vmatmul.mubr.msk.f32.gmra.mrb[10].mxu0 %vm88_vm0, %v331_v51  ;;  %1078 = vmatprep.mubr.msk.f32.mxu1 %vm88_vm0, %v1594_v40 }
 0x197   :  { %1113 = vmatprep.mubr.msk.f32.mxu0 %vm88_vm0, %v332_v10 }
 0x199   :  { %1079 = vmatmul.mubr.msk.f32.gmra.mrb[10].mxu1 %vm88_vm0, %v331_v51  ;;  %v1741_v51 = vld [vmem:[#allocation6] ss:$0 sm:$0xff] }
 0x19a   :  { %1114 = vmatmul.mubr.msk.f32.gmra.mrb[12].mxu0 %vm88_vm0, %v333_v11  ;;  %1081 = vmatprep.mubr.msk.f32.mxu1 %vm88_vm0, %v332_v10 }
 0x19b   :  { %1116 = vmatprep.mubr.msk.f32.mxu0 %vm88_vm0, %v334_v17 }
 0x19d   :  { %1082 = vmatmul.mubr.msk.f32.gmra.mrb[12].mxu1 %vm88_vm0, %v333_v11 }
 0x19e   :  { %1117 = vmatmul.mubr.msk.f32.gmra.mrb[14].mxu0 %vm88_vm0, %v335_v19  ;;  %1084 = vmatprep.mubr.msk.f32.mxu1 %vm88_vm0, %v334_v17 }
 0x19f   :  { %1119 = vmatprep.mubr.msk.f32.mxu0 %vm88_vm0, %v1568_v6 }
 0x1a1   :  { %1085 = vmatmul.mubr.msk.f32.gmra.mrb[14].mxu1 %vm88_vm0, %v335_v19 }
 0x1a2   :  { %1120 = vmatmul.mubr.msk.f32.gmra.mrb[16].mxu0 %vm88_vm0, %v1588_v32  ;;  %1087 = vmatprep.mubr.msk.f32.mxu1 %vm88_vm0, %v1568_v6 }
 0x1a3   :  { %1122 = vmatprep.mubr.msk.f32.mxu0 %vm88_vm0, %v1604_v48 }
 0x1a5   :  { %1088 = vmatmul.mubr.msk.f32.gmra.mrb[16].mxu1 %vm88_vm0, %v1588_v32 }
 0x1a6   :  { %1123 = vmatmul.mubr.msk.f32.gmra.mrb[18].mxu0 %vm88_vm0, %v339_v56  ;;  %1090 = vmatprep.mubr.msk.f32.mxu1 %vm88_vm0, %v1604_v48 }
 0x1a7   :  { %1125 = vmatprep.mubr.msk.f32.mxu0 %vm88_vm0, %v340_v62 }
 0x1a9   :  { %1091 = vmatmul.mubr.msk.f32.gmra.mrb[18].mxu1 %vm88_vm0, %v339_v56 }
 0x1aa   :  { %1126 = vmatmul.mubr.msk.f32.gmra.mrb[20].mxu0 %vm88_vm0, %v341_v8  ;;  %1093 = vmatprep.mubr.msk.f32.mxu1 %vm88_vm0, %v340_v62 }
 0x1ab   :  { %1128 = vmatprep.mubr.msk.f32.mxu0 %vm88_vm0, %v342_v45 }
 0x1ad   :  { %1094 = vmatmul.mubr.msk.f32.gmra.mrb[20].mxu1 %vm88_vm0, %v341_v8 }
 0x1ae   :  { %1129 = vmatmul.mubr.msk.f32.gmra.mrb[22].mxu0 %vm88_vm0, %v343_v47  ;;  %1096 = vmatprep.mubr.msk.f32.mxu1 %vm88_vm0, %v342_v45 }
 0x1b1   :  { %1097 = vmatmul.mubr.msk.f32.gmra.mrb[22].mxu1 %vm88_vm0, %v343_v47 }
 0x249   :  { %v1045_v38 = vpop.f32.mrb[0].mxu0 }
 0x24a   :  { %v475_v46 = vadd.f32 %v1045_v38, %v924_v25  ;;  %v469_v29 = vpop.f32.mrb[1].mxu0 }
 0x24b   :  { %v470_v6 = vadd.f32 %v924_v25, %v469_v29 }
 0x24c   :  { %861 = vst.msk [vmem:[%s1930_s9 + $0x8] sm:$0xff] %vm88_vm0, %v475_v46  ;;  %v1057_v13 = vpop.f32.mrb[0].mxu1 }
 0x24d   :  { %860 = vst.msk [vmem:[%s1930_s9] sm:$0xff] %vm88_vm0, %v470_v6  ;;  %v515_v22 = vadd.f32 %v1057_v13, %v924_v25  ;;  %v509_v16 = vpop.f32.mrb[1].mxu1 }
 0x24e   :  { %v510_v26 = vadd.f32 %v924_v25, %v509_v16 }
 0x24f   :  { %869 = vst.msk [vmem:[%s1930_s9 + $0x48] sm:$0xff] %vm88_vm0, %v515_v22 }
 0x250   :  { %868 = vst.msk [vmem:[%s1930_s9 + $0x40] sm:$0xff] %vm88_vm0, %v510_v26 }
 0x251   :  { %v1048_v27 = vpop.f32.mrb[2].mxu0 }
 0x252   :  { %v485_v30 = vadd.f32 %v1048_v27, %v924_v25  ;;  %v479_v31 = vpop.f32.mrb[3].mxu0 }
 0x253   :  { %v480_v32 = vadd.f32 %v924_v25, %v479_v31 }
 0x254   :  { %863 = vst.msk [vmem:[%s1930_s9 + $0x18] sm:$0xff] %vm88_vm0, %v485_v30  ;;  %v1060_v33 = vpop.f32.mrb[2].mxu1 }
 0x255   :  { %862 = vst.msk [vmem:[%s1930_s9 + $0x10] sm:$0xff] %vm88_vm0, %v480_v32  ;;  %v525_v54 = vadd.f32 %v1060_v33, %v924_v25  ;;  %v519_v34 = vpop.f32.mrb[3].mxu1 }
 0x256   :  { %v520_v20 = vadd.f32 %v924_v25, %v519_v34 }
 0x257   :  { %871 = vst.msk [vmem:[%s1930_s9 + $0x58] sm:$0xff] %vm88_vm0, %v525_v54 }
 0x258   :  { %870 = vst.msk [vmem:[%s1930_s9 + $0x50] sm:$0xff] %vm88_vm0, %v520_v20 }
 0x259   :  { %v1051_v39 = vpop.f32.mrb[4].mxu0 }
 0x25a   :  { %v495_v40 = vadd.f32 %v1051_v39, %v924_v25  ;;  %v489_v41 = vpop.f32.mrb[5].mxu0 }
 0x25b   :  { %v490_v42 = vadd.f32 %v924_v25, %v489_v41 }
 0x25c   :  { %865 = vst.msk [vmem:[%s1930_s9 + $0x28] sm:$0xff] %vm88_vm0, %v495_v40  ;;  %v1063_v55 = vpop.f32.mrb[4].mxu1 }
 0x25d   :  { %864 = vst.msk [vmem:[%s1930_s9 + $0x20] sm:$0xff] %vm88_vm0, %v490_v42  ;;  %v535_v43 = vadd.f32 %v1063_v55, %v924_v25  ;;  %v529_v3 = vpop.f32.mrb[5].mxu1 }
 0x25e   :  { %v530_v24 = vadd.f32 %v924_v25, %v529_v3 }
 0x25f   :  { %873 = vst.msk [vmem:[%s1930_s9 + $0x68] sm:$0xff] %vm88_vm0, %v535_v43 }
 0x260   :  { %872 = vst.msk [vmem:[%s1930_s9 + $0x60] sm:$0xff] %vm88_vm0, %v530_v24 }
 0x261   :  { %v1054_v0 = vpop.f32.mrb[6].mxu0 }
 0x262   :  { %v505_v48 = vadd.f32 %v1054_v0, %v924_v25  ;;  %v499_v49 = vpop.f32.mrb[7].mxu0 }
 0x263   :  { %v500_v50 = vadd.f32 %v924_v25, %v499_v49 }
 0x264   :  { %867 = vst.msk [vmem:[%s1930_s9 + $0x38] sm:$0xff] %vm88_vm0, %v505_v48  ;;  %v1066_v52 = vpop.f32.mrb[6].mxu1 }
 0x265   :  { %866 = vst.msk [vmem:[%s1930_s9 + $0x30] sm:$0xff] %vm88_vm0, %v500_v50  ;;  %v545_v63 = vadd.f32 %v1066_v52, %v924_v25  ;;  %v1109_v28 = vpop.f32.mrb[8].mxu0  ;;  %v539_v36 = vpop.f32.mrb[7].mxu1 }
 0x266   :  { %v787_v1 = vadd.f32 %v1109_v28, %v1741_v51  ;;  %v540_v53 = vadd.f32 %v924_v25, %v539_v36  ;;  %v781_v56 = vpop.f32.mrb[9].mxu0 }
 0x267   :  { %875 = vst.msk [vmem:[%s1930_s9 + $0x78] sm:$0xff] %vm88_vm0, %v545_v63  ;;  %v782_v10 = vadd.f32 %v1741_v51, %v781_v56 }
 0x268   :  { %893 = vst.msk [vmem:[%s1932_s11 + $0x8] sm:$0xff] %vm88_vm0, %v787_v1  ;;  %874 = vst.msk [vmem:[%s1930_s9 + $0x70] sm:$0xff] %vm88_vm0, %v540_v53  ;;  %v1077_v58 = vpop.f32.mrb[8].mxu1 }
 0x269   :  { %892 = vst.msk [vmem:[%s1932_s11] sm:$0xff] %vm88_vm0, %v782_v10  ;;  %v631_v59 = vadd.f32 %v1077_v58, %v1752_v57  ;;  %v1112_v60 = vpop.f32.mrb[10].mxu0  ;;  %v625_v44 = vpop.f32.mrb[9].mxu1 }
 0x26a   :  { %v797_v61 = vadd.f32 %v1112_v60, %v1741_v51  ;;  %v626_v62 = vadd.f32 %v1752_v57, %v625_v44  ;;  %v791_v2 = vpop.f32.mrb[11].mxu0 }
 0x26b   :  { %877 = vst.msk [vmem:[%s1931_s10 + $0x8] sm:$0xff] %vm88_vm0, %v631_v59  ;;  %v792_v11 = vadd.f32 %v1741_v51, %v791_v2 }
 0x26c   :  { %895 = vst.msk [vmem:[%s1932_s11 + $0x18] sm:$0xff] %vm88_vm0, %v797_v61  ;;  %876 = vst.msk [vmem:[%s1931_s10] sm:$0xff] %vm88_vm0, %v626_v62  ;;  %v1080_v37 = vpop.f32.mrb[10].mxu1 }
 0x26d   :  { %894 = vst.msk [vmem:[%s1932_s11 + $0x10] sm:$0xff] %vm88_vm0, %v792_v11  ;;  %v641_v23 = vadd.f32 %v1080_v37, %v1752_v57  ;;  %v1115_v4 = vpop.f32.mrb[12].mxu0  ;;  %v635_v5 = vpop.f32.mrb[11].mxu1 }
 0x26e   :  { %v807_v7 = vadd.f32 %v1115_v4, %v1741_v51  ;;  %v636_v8 = vadd.f32 %v1752_v57, %v635_v5  ;;  %v801_v9 = vpop.f32.mrb[13].mxu0 }
 0x26f   :  { %879 = vst.msk [vmem:[%s1931_s10 + $0x18] sm:$0xff] %vm88_vm0, %v641_v23  ;;  %v802_v17 = vadd.f32 %v1741_v51, %v801_v9 }
 0x270   :  { %897 = vst.msk [vmem:[%s1932_s11 + $0x28] sm:$0xff] %vm88_vm0, %v807_v7  ;;  %878 = vst.msk [vmem:[%s1931_s10 + $0x10] sm:$0xff] %vm88_vm0, %v636_v8  ;;  %v1083_v12 = vpop.f32.mrb[12].mxu1 }
 0x271   :  { %896 = vst.msk [vmem:[%s1932_s11 + $0x20] sm:$0xff] %vm88_vm0, %v802_v17  ;;  %v651_v35 = vadd.f32 %v1083_v12, %v1752_v57  ;;  %v1118_v14 = vpop.f32.mrb[14].mxu0  ;;  %v645_v15 = vpop.f32.mrb[13].mxu1 }
 0x272   :  { %v817_v45 = vadd.f32 %v1118_v14, %v1741_v51  ;;  %v646_v18 = vadd.f32 %v1752_v57, %v645_v15  ;;  %v811_v19 = vpop.f32.mrb[15].mxu0 }
 0x273   :  { %881 = vst.msk [vmem:[%s1931_s10 + $0x28] sm:$0xff] %vm88_vm0, %v651_v35  ;;  %v812_v21 = vadd.f32 %v1741_v51, %v811_v19 }
 0x274   :  { %899 = vst.msk [vmem:[%s1932_s11 + $0x38] sm:$0xff] %vm88_vm0, %v817_v45  ;;  %880 = vst.msk [vmem:[%s1931_s10 + $0x20] sm:$0xff] %vm88_vm0, %v646_v18  ;;  %v1086_v47 = vpop.f32.mrb[14].mxu1 }
 0x275   :  { %898 = vst.msk [vmem:[%s1932_s11 + $0x30] sm:$0xff] %vm88_vm0, %v812_v21  ;;  %v661_v25 = vadd.f32 %v1086_v47, %v1752_v57  ;;  %v1121_v38 = vpop.f32.mrb[16].mxu0  ;;  %v655_v46 = vpop.f32.mrb[15].mxu1 }
 0x276   :  { %v827_v29 = vadd.f32 %v1121_v38, %v1741_v51  ;;  %v656_v6 = vadd.f32 %v1752_v57, %v655_v46  ;;  %v821_v13 = vpop.f32.mrb[17].mxu0 }
 0x277   :  { %883 = vst.msk [vmem:[%s1931_s10 + $0x38] sm:$0xff] %vm88_vm0, %v661_v25  ;;  %v822_v22 = vadd.f32 %v1741_v51, %v821_v13 }
 0x278   :  { %901 = vst.msk [vmem:[%s1932_s11 + $0x48] sm:$0xff] %vm88_vm0, %v827_v29  ;;  %882 = vst.msk [vmem:[%s1931_s10 + $0x30] sm:$0xff] %vm88_vm0, %v656_v6  ;;  %v1089_v16 = vpop.f32.mrb[16].mxu1 }
 0x279   :  { %900 = vst.msk [vmem:[%s1932_s11 + $0x40] sm:$0xff] %vm88_vm0, %v822_v22  ;;  %v671_v26 = vadd.f32 %v1089_v16, %v1752_v57  ;;  %v1124_v27 = vpop.f32.mrb[18].mxu0  ;;  %v665_v30 = vpop.f32.mrb[17].mxu1 }
 0x27a   :  { %v837_v31 = vadd.f32 %v1124_v27, %v1741_v51  ;;  %v666_v32 = vadd.f32 %v1752_v57, %v665_v30  ;;  %v831_v33 = vpop.f32.mrb[19].mxu0 }
 0x27b   :  { %885 = vst.msk [vmem:[%s1931_s10 + $0x48] sm:$0xff] %vm88_vm0, %v671_v26  ;;  %v832_v54 = vadd.f32 %v1741_v51, %v831_v33 }
 0x27c   :  { %903 = vst.msk [vmem:[%s1932_s11 + $0x58] sm:$0xff] %vm88_vm0, %v837_v31  ;;  %884 = vst.msk [vmem:[%s1931_s10 + $0x40] sm:$0xff] %vm88_vm0, %v666_v32  ;;  %v1092_v34 = vpop.f32.mrb[18].mxu1 }
 0x27d   :  { %902 = vst.msk [vmem:[%s1932_s11 + $0x50] sm:$0xff] %vm88_vm0, %v832_v54  ;;  %v681_v20 = vadd.f32 %v1092_v34, %v1752_v57  ;;  %v1127_v39 = vpop.f32.mrb[20].mxu0  ;;  %v675_v40 = vpop.f32.mrb[19].mxu1 }
 0x27e   :  { %v847_v41 = vadd.f32 %v1127_v39, %v1741_v51  ;;  %v676_v42 = vadd.f32 %v1752_v57, %v675_v40  ;;  %v841_v55 = vpop.f32.mrb[21].mxu0 }
 0x27f   :  { %887 = vst.msk [vmem:[%s1931_s10 + $0x58] sm:$0xff] %vm88_vm0, %v681_v20  ;;  %v842_v43 = vadd.f32 %v1741_v51, %v841_v55 }
 0x280   :  { %905 = vst.msk [vmem:[%s1932_s11 + $0x68] sm:$0xff] %vm88_vm0, %v847_v41  ;;  %886 = vst.msk [vmem:[%s1931_s10 + $0x50] sm:$0xff] %vm88_vm0, %v676_v42  ;;  %v1095_v3 = vpop.f32.mrb[20].mxu1 }
 0x281   :  { %904 = vst.msk [vmem:[%s1932_s11 + $0x60] sm:$0xff] %vm88_vm0, %v842_v43  ;;  %v691_v24 = vadd.f32 %v1095_v3, %v1752_v57  ;;  %v1130_v0 = vpop.f32.mrb[22].mxu0  ;;  %v685_v48 = vpop.f32.mrb[21].mxu1 }
 0x282   :  { %v857_v49 = vadd.f32 %v1130_v0, %v1741_v51  ;;  %v686_v50 = vadd.f32 %v1752_v57, %v685_v48  ;;  %v851_v52 = vpop.f32.mrb[23].mxu0 }
 0x283   :  { %889 = vst.msk [vmem:[%s1931_s10 + $0x68] sm:$0xff] %vm88_vm0, %v691_v24  ;;  %v852_v63 = vadd.f32 %v1741_v51, %v851_v52 }
 0x284   :  { %907 = vst.msk [vmem:[%s1932_s11 + $0x78] sm:$0xff] %vm88_vm0, %v857_v49  ;;  %888 = vst.msk [vmem:[%s1931_s10 + $0x60] sm:$0xff] %vm88_vm0, %v686_v50  ;;  %v1098_v28 = vpop.f32.mrb[22].mxu1 }
 0x285   :  { %906 = vst.msk [vmem:[%s1932_s11 + $0x70] sm:$0xff] %vm88_vm0, %v852_v63  ;;  %v701_v36 = vadd.f32 %v1098_v28, %v1752_v57  ;;  %v695_v1 = vpop.f32.mrb[23].mxu1 }
 0x286   :  { %v696_v51 = vadd.f32 %v1752_v57, %v695_v1 }
 0x287   :  { %891 = vst.msk [vmem:[%s1931_s10 + $0x78] sm:$0xff] %vm88_vm0, %v701_v36 }
 0x288   :  { %890 = vst.msk [vmem:[%s1931_s10 + $0x70] sm:$0xff] %vm88_vm0, %v696_v51 }
 0x289   :  { %920 = vsyncpa [#allocation3], 1 }
 0x28a   :  { %921 = vsyncpa [#allocation5], 1 }

// kernel: _lambda_.7
= control target key start
LH: loop header
LB: loop body
LE: loop exit
PB: predicated region body
PF: predicated region fallthrough
CT: control target
= control target key end

     0   :  { %12 = vsyncpa [#allocation3], 0  ;;  %s2881_s0 = inlined_call_operand.vmem [shape: f32[2,64,32], index: 0, kind: input, shape index: {}]   ;;  %s2882_s1 = inlined_call_operand.vmem [shape: f32[2,64,32], index: 1, kind: input, shape index: {}]   ;;  %s2883_s2 = inlined_call_operand.vmem [shape: f32[2,64,32], index: 2, kind: input, shape index: {}]   ;;  %s2884_s3 = inlined_call_operand.vmem [shape: f32[2,64,64], index: 3, kind: input, shape index: {}]   ;;  %s2885_s4 = inlined_call_operand.vmem [shape: f32[2,64,32], index: 4, kind: input, shape index: {}]   ;;  %s2886_s5 = inlined_call_operand.hbm [shape: f32[32,32], index: 5, kind: input, shape index: {}]   ;;  %s2887_s6 = inlined_call_operand.hbm [shape: f32[1,32], index: 6, kind: input, shape index: {}]   ;;  %s2888_s7 = inlined_call_operand.vmem [shape: f32[2,64,32], index: 7, kind: output, shape index: {}]  }
   0x1   :  { %13 = vsyncpa [#allocation5], 0  ;;  %s2329_s24 = smov 0   ;;  %s2331_s25 = smov 0  }
   0x2   :  { %s2333_s26 = smov 0  }
   0x3 LB: > { %s1646_s27 = sadd.s32 4294967295, %s2281_s26   ;;  %s31_s28 = sadd.s32 1, %s2277_s25  ;;  %s2281_s26 = sphi %s2333_s26, %s19_s26   ;;  %s2277_s25 = sphi %s2331_s25, %s2900_s25   ;;  %s2273_s24 = sphi %s2329_s24, %s2899_s24  }
   0x4   : > { %p33_p0 = scmp.ge.s32.totalorder %s31_s28, 2  ;;  %p1648_p1 = scmp.ge.s32.totalorder %s2281_s26, 1 }
   0x5   : > { %p240_p2 = scmp.lt.s32.totalorder %s2281_s26, 3  ;;  %p2354_p4 = scmp.eq.s32.totalorder %s1646_s27, 0 }
   0x6   : > { %s2902_s28 = smov (%p33_p0, %s31_s28), 0  ;;  %s2283_s8 = smov [#allocation2]  }
   0x7   : > { %p2350_p3 = pnand %p1648_p1, %p240_p2  ;;  %s261_s9 = sshll.u32 %s2283_s8, 4  ;;  %s262_s9 = int_to_ptr.vmem [resolvable:$true] %s261_s9 }
   0x8   : > { %s2893_s30 = scalar_select %p2354_p4, 1, 0 }
   0x9   : > { %s2892_s29 = scalar_select %p2350_p3, 1, 0 }
   0xa   : > { %p2050_p5 = pneg %p2350_p3  ;;  %s2284_s11 = smov [#allocation4]  }
   0xb   : > { %s275_s12 = sshll.u32 %s2284_s11, 4  ;;  %s2195_s15 = scalar_lea.hbm %s2886_s5, 512  ;;  %s2366_s12 = int_to_ptr.vmem [resolvable:$true] %s275_s12 }
   0xc   : > { %p2362_p6 = pnand %p2354_p4, %p2050_p5  ;;  %p2196_p7 = scmp.ne.s32.totalorder %s2886_s5, %s2195_s15 }
   0xd   : > { %p2202_p11 = scmp.lt.u32.totalorder %s2195_s15, %s2886_s5 }
   0xe   : > { %p2197_p8 = pneg %p2362_p6 }
  0x10   : > { %p2198_p9 = pnand %p2197_p8, %p2196_p7 }
  0x12   : > { %p2199_p10 = pneg %p2198_p9 }
  0x14   : > { %p2204_p12 = pnand %p2202_p11, %p2199_p10 }
  0x16   : > { %2207 = shalt.err (!%p2204_p12)
}
  0x17   : > { %s2208_s20 = scalar_lea.vmem %s262_s9, 512  ;;  %p2216_p2 = scmp.lt.s32.totalorder %s262_s9, %s262_s9 }
  0x18   : > { %p2209_p13 = scmp.ne.s32.totalorder %s262_s9, %s2208_s20  ;;  %p2217_p5 = scmp.lt.s32.totalorder %s2208_s20, %s2208_s20 }
  0x1a   : > { %p2211_p0 = pnand %p2209_p13, %p2197_p8  ;;  %p2218_p4 = por %p2217_p5, %p2216_p2 }
  0x1c   : > { %p2212_p1 = pneg %p2211_p0 }
  0x1e   : > { %p2219_p3 = pnand %p2218_p4, %p2212_p1 }
  0x20   : > { %2222 = shalt.err (!%p2219_p3)
}
  0x21   : > { %s2285_s21 = smov 128   ;;  %s2286_s22 = smov 8  }
  0x22   : > { %2053 = dma.hbm_to_vmem [thread:$0]  (!%p2362_p6), %s2886_s5, 512, %s262_s9, [#allocation3], %s2285_s21, %s2285_s21, %s2286_s22  }
  0x23   : > { %s2223_s13 = scalar_lea.hbm %s2887_s6, 16 }
  0x24   : > { %p2224_p7 = scmp.ne.s32.totalorder %s2887_s6, %s2223_s13  ;;  %p2230_p9 = scmp.lt.u32.totalorder %s2223_s13, %s2887_s6 }
  0x26   : > { %p2226_p3 = pnand %p2224_p7, %p2197_p8 }
  0x28   : > { %p2227_p4 = pneg %p2226_p3 }
  0x2a   : > { %p2232_p10 = pnand %p2230_p9, %p2227_p4 }
  0x2c   : > { %2235 = shalt.err (!%p2232_p10)
}
  0x2d   : > { %s2236_s9 = scalar_lea.vmem %s2366_s12, 16  ;;  %s2243_s18 = scalar_lea.vmem %s2366_s12, 32 }
  0x2e   : > { %p2237_p11 = scmp.ne.s32.totalorder %s2366_s12, %s2236_s9  ;;  %p2244_p0 = scmp.lt.s32.totalorder %s2366_s12, %s2366_s12 }
  0x2f   : > { %p2245_p1 = scmp.lt.s32.totalorder %s2243_s18, %s2236_s9 }
  0x30   : > { %p2239_p12 = pnand %p2237_p11, %p2197_p8 }
  0x31   : > { %p2246_p2 = por %p2245_p1, %p2244_p0 }
  0x32   : > { %p2240_p13 = pneg %p2239_p12 }
  0x34   : > { %p2247_p5 = pnand %p2246_p2, %p2240_p13 }
  0x36   : > { %2250 = shalt.err (!%p2247_p5)
}
  0x37   : > { %2056 = dma.hbm_to_vmem [thread:$0]  (!%p2362_p6), %s2887_s6, 16, %s2366_s12, [#allocation5]  }
  0x38   : > { %p2895_p7 = scmp.ne.s32.totalorder %s2892_s29, 0 }
  0x39   : > { %p2896_p8 = scmp.ne.s32.totalorder (!%p2895_p7), %s2893_s30, 0 }
  0x3a   : > { %330 = sbr.rel (%p2895_p7) target bundleno = 1868 (0x74c), region = 48 }
  0x41   : > { %2264 = dma.done.wait (%p2896_p8), [#allocation3], 512  }
  0x42   : > { %2266 = vsyncadd (%p2896_p8), [#allocation3], 4294966784 }
  0x43   : > { %2268 = dma.done.wait (%p2896_p8), [#allocation5], 16  }
  0x44   : > { %2270 = vsyncadd (%p2896_p8), [#allocation5], 4294967280  ;;  %p399_p3 = scmp.lt.s32.totalorder %s2273_s24, 1  ;;  %vm476_vm0 = vcmask 130048   ;;  %v468_v22 = vld [vmem:[%s2884_s3] sm:$0xff]  ;;  %v469_v24 = vld [vmem:[%s2884_s3 + $0x8] sm:$0xff] }
  0x45   : > { %vm2436_vm1 = vmpackc.low %vm476_vm0, %vm476_vm0  ;;  %vm630_vm2 = vcmask 523264   ;;  %v471_v27 = vld [vmem:[%s2884_s3 + $0x18] sm:$0xff]  ;;  %v470_v28 = vld [vmem:[%s2884_s3 + $0x10] sm:$0xff]  ;;  %s2288_s22 = smov 16   ;;  %vm1326_vm3 = vcmask 261120  }
  0x46   : > { %s2904_s24 = smov (!%p399_p3, %s2273_s24), 1  ;;  %v473_v35 = vld [vmem:[%s2884_s3 + $0x28] sm:$0xff]  ;;  %v472_v37 = vld [vmem:[%s2884_s3 + $0x20] sm:$0xff]  ;;  %v475_v44 = vld [vmem:[%s2884_s3 + $0x38] sm:$0xff] }
  0x47   : > { %s2428_s10 = sshll.u32 %s2904_s24, 6  ;;  %v474_v45 = vld [vmem:[%s2884_s3 + $0x30] sm:$0xff]  ;;  %s2287_s24 = smov 112  }
  0x48   : > { %s412_s21 = scalar_lea.vmem %s2882_s1, %s2428_s10  ;;  %s2444_s23 = scalar_lea.vmem %s2881_s0, %s2428_s10 }
  0x49   : > { %v2446_v1 = vld [vmem:[%s412_s21] sm:$0xff]  ;;  %v2448_v2 = vld [vmem:[%s412_s21 + $0x8] sm:$0xff]  ;;  %v2450_v3 = vld [vmem:[%s412_s21 + $0x10] sm:$0xff]  ;;  %s2840_s27 = scalar_lea.vmem %s2885_s4, %s2428_s10  ;;  %s2848_s13 = scalar_lea.vmem %s2888_s7, %s2428_s10 }
  0x4a   : > { %v2091_v4 = vpack.i.bf16 %v2448_v2, %v2446_v1  ;;  %v1946_v5 = vpack.c.bf16 %v2448_v2, %v2446_v1  ;;  %v2456_v6 = vld [vmem:[%s412_s21 + $0x18] sm:$0xff]  ;;  %v2461_v8 = vld [vmem:[%s2444_s23] sm:$0xff]  ;;  %v2473_v10 = vld [vmem:[%s412_s21 + $0x28] sm:$0xff] }
  0x4b   : > { %v1952_v7 = vpack.c.bf16 %v2456_v6, %v2450_v3  ;;  %1830 = vmatprep.mubr.msk.f32.mxu0 %vm476_vm0, %v2461_v8  ;;  %v2471_v9 = vld [vmem:[%s412_s21 + $0x20] sm:$0xff]  ;;  %v2481_v12 = vld [vmem:[%s412_s21 + $0x30] sm:$0xff]  ;;  %v2483_v13 = vld [vmem:[%s412_s21 + $0x38] sm:$0xff] }
  0x4c   : > { %1948 = vmatprep.subr.msk.bf16.mxu0 %vm2436_vm1, %v1946_v5  ;;  %v1958_v11 = vpack.c.bf16 %v2473_v10, %v2471_v9  ;;  %v1964_v14 = vpack.c.bf16 %v2483_v13, %v2481_v12  ;;  %v2494_v15 = vld [vmem:[%s2444_s23 + $0x8] sm:$0xff]  ;;  %v2497_v16 = vld [vmem:[%s2444_s23 + $0x10] sm:$0xff]  ;;  %v2504_v17 = vld [vmem:[%s2444_s23 + $0x18] sm:$0xff] }
  0x4d   : > { %1951 = vmatpush3.bf16.xpose.msk.msra.mxu0 %vm2436_vm1, %v1946_v5  ;;  %v2507_v18 = vld [vmem:[%s2444_s23 + $0x20] sm:$0xff]  ;;  %v2514_v19 = vld [vmem:[%s2444_s23 + $0x28] sm:$0xff]  ;;  %v2517_v20 = vld [vmem:[%s2444_s23 + $0x30] sm:$0xff] }
  0x4e   : > { %1954 = vmatprep.subr.msk.bf16.mxu0 %vm2436_vm1, %v1952_v7  ;;  %v2524_v21 = vld [vmem:[%s2444_s23 + $0x38] sm:$0xff]  ;;  %s417_s23 = scalar_lea.vmem %s2883_s2, %s2428_s10 }
  0x4f   : > { %v2582_v60 = vld [vmem:[%s417_s23] sm:$0xff]  ;;  %v2584_v61 = vld [vmem:[%s417_s23 + $0x8] sm:$0xff]  ;;  %v2586_v62 = vld [vmem:[%s417_s23 + $0x10] sm:$0xff] }
  0x50   : > { %v2111_v63 = vpack.i.bf16 %v2584_v61, %v2582_v60  ;;  %v1970_v5 = vpack.c.bf16 %v2584_v61, %v2582_v60 }
  0x52   : > { %1971 = vmatprep.subr.bf16.mxu1 %v1970_v5 }
  0x53   : > { %1973 = vmatpush3.bf16.msra.mxu1 %v1970_v5 }
  0x55   : > { %1957 = vmatpush3.bf16.xpose.msk.msra.mxu0 %vm2436_vm1, %v1952_v7  ;;  %v2592_v7 = vld [vmem:[%s417_s23 + $0x18] sm:$0xff] }
  0x56   : > { %1960 = vmatprep.subr.msk.bf16.mxu0 %vm2436_vm1, %v1958_v11 }
  0x5d   : > { %1963 = vmatpush3.bf16.xpose.msk.msra.mxu0 %vm2436_vm1, %v1958_v11  ;;  %v1974_v11 = vpack.c.bf16 %v2592_v7, %v2586_v62 }
  0x5e   : > { %1966 = vmatprep.subr.msk.bf16.mxu0 %vm2436_vm1, %v1964_v14 }
  0x5f   : > { %1975 = vmatprep.subr.bf16.mxu1 %v1974_v11 }
  0x60   : > { %1977 = vmatpush3.bf16.msra.mxu1 %v1974_v11 }
  0x65   : > { %1969 = vmatpush3.bf16.xpose.msk.msra.mxu0 %vm2436_vm1, %v1964_v14 }
  0x6c   : > { %1831 = vmatmul.mubr.msk.f32.vlgmr.msra.gmra.mrb[0].mxu0 %vm476_vm0, %v2494_v15 }
  0x6d   : > { %1833 = vmatprep.mubr.msk.f32.mxu0 %vm476_vm0, %v2497_v16 }
  0x70   : > { %1834 = vmatmul.mubr.msk.f32.gmra.mrb[2].mxu0 %vm476_vm0, %v2504_v17 }
  0x71   : > { %1836 = vmatprep.mubr.msk.f32.mxu0 %vm476_vm0, %v2507_v18 }
  0x74   : > { %1837 = vmatmul.mubr.msk.f32.gmra.mrb[4].mxu0 %vm476_vm0, %v2514_v19 }
  0x75   : > { %1839 = vmatprep.mubr.msk.f32.mxu0 %vm476_vm0, %v2517_v20 }
  0x78   : > { %1840 = vmatmul.mubr.msk.f32.gmra.mrb[6].mxu0 %vm476_vm0, %v2524_v21 }
 0x13f   : > { %v1832_v23 = vpop.f32.mrb[0].mxu0 }
 0x140   : > { %v591_v25 = vpop.f32.mrb[1].mxu0  ;;  %v597_v29 = vadd.f32 %v1832_v23, %v469_v24 }
 0x141   : > { %v592_v26 = vadd.f32 %v591_v25, %v468_v22  ;;  %v2604_v25 = vld [vmem:[%s417_s23 + $0x20] sm:$0xff] }
 0x142   : > { %v634_v39 = vsel %vm630_vm2, %v597_v29, -inf }
 0x143   : > { %v1835_v30 = vpop.f32.mrb[2].mxu0  ;;  %v631_v31 = vsel %vm630_vm2, %v592_v26, -inf }
 0x144   : > { %v2541_v32 = vadd.f32 %v1835_v30, %v471_v27  ;;  %632 = vmax.xlane.f32.xlu0 %v631_v31  ;;  %v601_v33 = vpop.f32.mrb[3].mxu0  ;;  %v2614_v30 = vld [vmem:[%s417_s23 + $0x38] sm:$0xff] }
 0x145   : > { %v2543_v34 = vadd.f32 %v601_v33, %v470_v28  ;;  %v2096_v28 = vpack.i.bf16 %v2456_v6, %v2450_v3 }
 0x146   : > { %v640_v36 = vsel %vm630_vm2, %v2541_v32, -inf }
 0x147   : > { %641 = vmax.xlane.f32.xlu1 %v640_v36  ;;  %v1838_v38 = vpop.f32.mrb[4].mxu0  ;;  %v637_v42 = vsel %vm630_vm2, %v2543_v34, -inf }
 0x148   : > { %v2554_v40 = vadd.f32 %v1838_v38, %v473_v35  ;;  %v611_v41 = vpop.f32.mrb[5].mxu0  ;;  %635 = vmax.xlane.f32.xlu0 %v634_v39 }
 0x149   : > { %v2558_v43 = vadd.f32 %v611_v41, %v472_v37 }
 0x14a   : > { %v646_v50 = vsel %vm630_vm2, %v2554_v40, -inf }
 0x14b   : > { %v1841_v46 = vpop.f32.mrb[6].mxu0  ;;  %638 = vmax.xlane.f32.xlu1 %v637_v42  ;;  %v643_v47 = vsel %vm630_vm2, %v2558_v43, -inf }
 0x14c   : > { %v2568_v48 = vadd.f32 %v1841_v46, %v475_v44  ;;  %v621_v49 = vpop.f32.mrb[7].mxu0  ;;  %644 = vmax.xlane.f32.xlu0 %v643_v47  ;;  %v2106_v47 = vpack.i.bf16 %v2483_v13, %v2481_v12 }
 0x14d   : > { %v2572_v51 = vadd.f32 %v621_v49, %v474_v45  ;;  %v2101_v49 = vpack.i.bf16 %v2473_v10, %v2471_v9 }
 0x14e   : > { %v652_v53 = vsel %vm630_vm2, %v2568_v48, -inf }
 0x14f   : > { %647 = vmax.xlane.f32.xlu1 %v646_v50  ;;  %v649_v52 = vsel %vm630_vm2, %v2572_v51, -inf }
 0x150   : > { %650 = vmax.xlane.f32.xlu0 %v649_v52 }
 0x153   : > { %653 = vmax.xlane.f32.xlu1 %v652_v53 }
 0x1d1   : > { %v633_v54 = vpop.xlane.xlu0 %632 }
 0x1d2   : > { %v655_v55 = vsub.f32 %v592_v26, %v633_v54  ;;  %v2606_v26 = vld [vmem:[%s417_s23 + $0x28] sm:$0xff] }
 0x1d3   : > { %v1978_v27 = vpack.c.bf16 %v2606_v26, %v2604_v25 }
 0x1d4   : > { %v663_v56 = vmul.f32 1.442695, %v655_v55  ;;  %v642_v33 = vpop.xlane.xlu1 %641 }
 0x1d5   : > { %v636_v57 = vpop.xlane.xlu0 %635  ;;  %1979 = vmatprep.subr.bf16.mxu1 %v1978_v27  ;;  %v658_v36 = vsub.f32 %v2541_v32, %v642_v33 }
 0x1d6   : > { %2131 = vpow2.f32 %v663_v56  ;;  %v656_v58 = vsub.f32 %v597_v29, %v636_v57  ;;  %1981 = vmatpush3.bf16.msra.mxu1 %v1978_v27  ;;  %v2612_v29 = vld [vmem:[%s417_s23 + $0x30] sm:$0xff] }
 0x1d7   : > { %v1982_v31 = vpack.c.bf16 %v2614_v30, %v2612_v29  ;;  %v669_v41 = vmul.f32 1.442695, %v658_v36 }
 0x1d8   : > { %v665_v59 = vmul.f32 1.442695, %v656_v58  ;;  %v639_v3 = vpop.xlane.xlu1 %638 }
 0x1d9   : > { %1983 = vmatprep.subr.bf16.mxu1 %v1982_v31  ;;  %v657_v6 = vsub.f32 %v2543_v34, %v639_v3  ;;  %v645_v35 = vpop.xlane.xlu0 %644 }
 0x1da   : > { %2133 = vpow2.f32 %v665_v59  ;;  %1985 = vmatpush3.bf16.msra.mxu1 %v1982_v31  ;;  %v659_v38 = vsub.f32 %v2558_v43, %v645_v35 }
 0x1db   : > { %v667_v37 = vmul.f32 1.442695, %v657_v6 }
 0x1dc   : > { %v648_v39 = vpop.xlane.xlu1 %647  ;;  %v671_v42 = vmul.f32 1.442695, %v659_v38 }
 0x1dd   : > { %2135 = vpow2.f32 %v667_v37  ;;  %v660_v44 = vsub.f32 %v2554_v40, %v648_v39  ;;  %v651_v10 = vpop.xlane.xlu0 %650 }
 0x1de   : > { %2137 = vpow2.f32 %v669_v41  ;;  %v661_v13 = vsub.f32 %v2572_v51, %v651_v10 }
 0x1df   : > { %2139 = vpow2.f32 %v671_v42  ;;  %v673_v1 = vmul.f32 1.442695, %v660_v44 }
 0x1e0   : > { %v2596_v14 = vpop.eup %2131  ;;  %v654_v12 = vpop.xlane.xlu1 %653 }
 0x1e1   : > { %v679_v22 = vsel %vm630_vm2, %v2596_v14, 0.0  ;;  %2141 = vpow2.f32 %v673_v1  ;;  %v662_v9 = vsub.f32 %v2568_v48, %v654_v12 }
 0x1e2   : > { %680 = vadd.xlane.f32.xlu0 %v679_v22 }
 0x1e3   : > { %v677_v50 = vmul.f32 1.442695, %v662_v9 }
 0x1e4   : > { %v2600_v23 = vpop.eup %2133 }
 0x1e5   : > { %v682_v24 = vsel %vm630_vm2, %v2600_v23, 0.0  ;;  %2143 = vpow2.f32 %v677_v50 }
 0x1e6   : > { %683 = vadd.xlane.f32.xlu1 %v682_v24 }
 0x1e7   : > { %v2627_v2 = vpop.eup %2135 }
 0x1e8   : > { %v685_v32 = vsel %vm630_vm2, %v2627_v2, 0.0 }
 0x1f7   : > { %2097 = vrot.lane.b32.xlu1 %v2096_v28, %s2287_s24 }
 0x1f8   : > { %2092 = vrot.lane.b32.xlu0 %v2091_v4, %s2287_s24  ;;  %v2629_v4 = vpop.eup %2137 }
 0x1f9   : > { %v2633_v34 = vpop.eup %2139  ;;  %v688_v43 = vsel %vm630_vm2, %v2629_v4, 0.0 }
 0x1fa   : > { %v691_v40 = vsel %vm630_vm2, %v2633_v34, 0.0  ;;  %v2639_v45 = vpop.eup %2141 }
 0x1fb   : > { %v694_v46 = vsel %vm630_vm2, %v2639_v45, 0.0 }
 0x217   : > { %686 = vadd.xlane.f32.xlu0 %v685_v32 }
 0x21b   : > { %689 = vadd.xlane.f32.xlu1 %v688_v43  ;;  %692 = vadd.xlane.f32.xlu0 %v691_v40 }
 0x21f   : > { %695 = vadd.xlane.f32.xlu1 %v694_v46 }
 0x230   : > { %2107 = vrot.lane.b32.xlu1 %v2106_v47, %s2287_s24 }
 0x231   : > { %2102 = vrot.lane.b32.xlu0 %v2101_v49, %s2287_s24 }
 0x234   : > { %859 = vrot.lane.b32.xlu1 %v2494_v15, %s2287_s24  ;;  %v675_v15 = vmul.f32 1.442695, %v661_v13 }
 0x235   : > { %857 = vrot.lane.b32.xlu0 %v2461_v8, %s2287_s24  ;;  %v2661_v8 = vpop.eup %2143 }
 0x236   : > { %2145 = vpow2.f32 %v675_v15 }
 0x239   : > { %861 = vrot.lane.b32.xlu0 %v2497_v16, %s2287_s24  ;;  %v700_v16 = vsel %vm630_vm2, %v2661_v8, 0.0 }
 0x23d   : > { %865 = vrot.lane.b32.xlu0 %v2507_v18, %s2287_s24 }
 0x240   : > { %v2665_v52 = vpop.eup %2145 }
 0x241   : > { %869 = vrot.lane.b32.xlu0 %v2517_v20, %s2287_s24  ;;  %v697_v18 = vsel %vm630_vm2, %v2665_v52, 0.0 }
 0x258   : > { %701 = vadd.xlane.f32.xlu1 %v700_v16 }
 0x25c   : > { %698 = vadd.xlane.f32.xlu1 %v697_v18 }
 0x26d   : > { %863 = vrot.lane.b32.xlu1 %v2504_v17, %s2287_s24 }
 0x26f   : > { %v681_v20 = vpop.xlane.xlu0 %680 }
 0x270   : > { %2147 = vrcp.f32 %v681_v20 }
 0x271   : > { %867 = vrot.lane.b32.xlu1 %v2514_v19, %s2287_s24 }
 0x273   : > { %v684_v48 = vpop.xlane.xlu1 %683  ;;  %v2093_v51 = vpop.permute.xlu0 %2092 }
 0x274   : > { %2149 = vrcp.f32 %v684_v48  ;;  %v2095_v53 = vunpack.i.h.bf16 %v2093_v51  ;;  %v2094_v54 = vunpack.i.l.bf16 %v2093_v51  ;;  %v1691_v48 = vld [vmem:[%s2884_s3 + $0x48] sm:$0xff]  ;;  %v1690_v51 = vld [vmem:[%s2884_s3 + $0x40] sm:$0xff] }
 0x275   : > { %871 = vrot.lane.b32.xlu1 %v2524_v21, %s2287_s24 }
 0x276   : > { %v1986_v55 = vpack.c.bf16 %v2095_v53, %v2094_v54 }
 0x277   : > { %v2098_v57 = vpop.permute.xlu1 %2097 }
 0x278   : > { %1988 = vmatprep.subr.msk.bf16.mxu1 %vm2436_vm1, %v1986_v55  ;;  %v2100_v58 = vunpack.i.h.bf16 %v2098_v57  ;;  %v2099_v59 = vunpack.i.l.bf16 %v2098_v57  ;;  %v1693_v57 = vld [vmem:[%s2884_s3 + $0x58] sm:$0xff] }
 0x27a   : > { %v2148_v56 = vpop.eup %2147  ;;  %v1992_v11 = vpack.c.bf16 %v2100_v58, %v2099_v59 }
 0x27b   : > { %v711_v17 = vmul.f32 %v2148_v56, %v2596_v14 }
 0x27d   : > { %1858 = vmatprep.mubr.msk.f32.mxu1 %vm630_vm2, %v711_v17 }
 0x27e   : > { %v2150_v19 = vpop.eup %2149 }
 0x27f   : > { %v712_v5 = vmul.f32 %v2150_v19, %v2600_v23 }
 0x281   : > { %1859 = vmatmul.mubr.msk.f32.vlgmr.msra.gmra.mrb[0].mxu1 %vm630_vm2, %v712_v5 }
 0x282   : > { %1991 = vmatpush3.bf16.xpose.msk.msra.mxu1 %vm2436_vm1, %v1986_v55 }
 0x283   : > { %1994 = vmatprep.subr.msk.bf16.mxu1 %vm2436_vm1, %v1992_v11 }
 0x28a   : > { %1997 = vmatpush3.bf16.xpose.msk.msra.mxu1 %vm2436_vm1, %v1992_v11  ;;  %v1692_v11 = vld [vmem:[%s2884_s3 + $0x50] sm:$0xff] }
 0x2a4   : > { %v687_v21 = vpop.xlane.xlu0 %686 }
 0x2a5   : > { %2151 = vrcp.f32 %v687_v21  ;;  %v1695_v21 = vld [vmem:[%s2884_s3 + $0x68] sm:$0xff] }
 0x2a8   : > { %v690_v14 = vpop.xlane.xlu1 %689  ;;  %v693_v22 = vpop.xlane.xlu0 %692 }
 0x2a9   : > { %2153 = vrcp.f32 %v690_v14 }
 0x2aa   : > { %2155 = vrcp.f32 %v693_v22 }
 0x2ac   : > { %v696_v24 = vpop.xlane.xlu1 %695  ;;  %v2103_v23 = vpop.permute.xlu0 %2102 }
 0x2ad   : > { %2157 = vrcp.f32 %v696_v24  ;;  %v2105_v27 = vunpack.i.h.bf16 %v2103_v23  ;;  %v2104_v28 = vunpack.i.l.bf16 %v2103_v23 }
 0x2af   : > { %v2152_v31 = vpop.eup %2151  ;;  %v1998_v33 = vpack.c.bf16 %v2105_v27, %v2104_v28  ;;  %v1694_v28 = vld [vmem:[%s2884_s3 + $0x60] sm:$0xff] }
 0x2b0   : > { %v2108_v3 = vpop.permute.xlu1 %2107  ;;  %v713_v6 = vmul.f32 %v2152_v31, %v2627_v2  ;;  %v858_v43 = vpop.permute.xlu0 %857  ;;  %v1697_v31 = vld [vmem:[%s2884_s3 + $0x78] sm:$0xff] }
 0x2b1   : > { %v2110_v35 = vunpack.i.h.bf16 %v2108_v3  ;;  %v2109_v36 = vunpack.i.l.bf16 %v2108_v3  ;;  %2000 = vmatprep.subr.msk.bf16.mxu1 %vm2436_vm1, %v1998_v33 }
 0x2b2   : > { %1861 = vmatprep.mubr.msk.f32.mxu1 %vm630_vm2, %v713_v6  ;;  %2003 = vmatpush3.bf16.xpose.msk.msra.mxu1 %vm2436_vm1, %v1998_v33 }
 0x2b3   : > { %v2154_v37 = vpop.eup %2153  ;;  %v2004_v38 = vpack.c.bf16 %v2110_v35, %v2109_v36 }
 0x2b4   : > { %v2156_v39 = vpop.eup %2155  ;;  %v714_v41 = vmul.f32 %v2154_v37, %v2629_v4  ;;  %v860_v2 = vpop.permute.xlu1 %859 }
 0x2b5   : > { %2006 = vmatprep.subr.msk.bf16.mxu1 %vm2436_vm1, %v2004_v38  ;;  %v715_v42 = vmul.f32 %v2156_v39, %v2633_v34  ;;  %v862_v49 = vpop.permute.xlu0 %861 }
 0x2b6   : > { %1862 = vmatmul.mubr.msk.f32.gmra.mrb[2].mxu1 %vm630_vm2, %v714_v41 }
 0x2b7   : > { %v2158_v44 = vpop.eup %2157  ;;  %1864 = vmatprep.mubr.msk.f32.mxu1 %vm630_vm2, %v715_v42 }
 0x2b8   : > { %v716_v1 = vmul.f32 %v2158_v44, %v2639_v45 }
 0x2b9   : > { %v866_v45 = vpop.permute.xlu0 %865 }
 0x2ba   : > { %1865 = vmatmul.mubr.msk.f32.gmra.mrb[4].mxu1 %vm630_vm2, %v716_v1  ;;  %v2116_v1 = vpack.i.bf16 %v2592_v7, %v2586_v62 }
 0x2bb   : > { %2009 = vmatpush3.bf16.xpose.msk.msra.mxu1 %vm2436_vm1, %v2004_v38  ;;  %v1696_v38 = vld [vmem:[%s2884_s3 + $0x70] sm:$0xff] }
 0x2bd   : > { %v870_v9 = vpop.permute.xlu0 %869 }
 0x2e5   : > { %v702_v32 = vpop.xlane.xlu1 %701 }
 0x2e6   : > { %2159 = vrcp.f32 %v702_v32 }
 0x2e9   : > { %v699_v4 = vpop.xlane.xlu1 %698 }
 0x2ea   : > { %2161 = vrcp.f32 %v699_v4 }
 0x2ed   : > { %v864_v0 = vpop.permute.xlu1 %863 }
 0x2f0   : > { %v2160_v40 = vpop.eup %2159 }
 0x2f1   : > { %v718_v47 = vmul.f32 %v2160_v40, %v2661_v8  ;;  %v868_v12 = vpop.permute.xlu1 %867 }
 0x2f4   : > { %v2162_v34 = vpop.eup %2161 }
 0x2f5   : > { %v717_v46 = vmul.f32 %v2162_v34, %v2665_v52  ;;  %v872_v10 = vpop.permute.xlu1 %871 }
 0x2f7   : > { %1867 = vmatprep.mubr.msk.f32.mxu1 %vm630_vm2, %v717_v46 }
 0x2f8   : > { %1868 = vmatmul.mubr.msk.f32.gmra.mrb[6].mxu1 %vm630_vm2, %v718_v47 }
 0x2f9   : > { %1886 = vmatprep.mubr.msk.f32.mxu1 %vm476_vm0, %v858_v43 }
 0x2fc   : > { %1887 = vmatmul.mubr.msk.f32.vlgmr.msra.gmra.mrb[8].mxu1 %vm476_vm0, %v860_v2 }
 0x2fd   : > { %1889 = vmatprep.mubr.msk.f32.mxu1 %vm476_vm0, %v862_v49 }
 0x300   : > { %1890 = vmatmul.mubr.msk.f32.gmra.mrb[10].mxu1 %vm476_vm0, %v864_v0 }
 0x301   : > { %1892 = vmatprep.mubr.msk.f32.mxu1 %vm476_vm0, %v866_v45 }
 0x304   : > { %1893 = vmatmul.mubr.msk.f32.gmra.mrb[12].mxu1 %vm476_vm0, %v868_v12 }
 0x305   : > { %1895 = vmatprep.mubr.msk.f32.mxu1 %vm476_vm0, %v870_v9 }
 0x308   : > { %1896 = vmatmul.mubr.msk.f32.gmra.mrb[14].mxu1 %vm476_vm0, %v872_v10 }
 0x354   : > { %v2715_v13 = vpop.f32.mrb[0].mxu1 }
 0x355   : > { %v2717_v50 = vpop.f32.mrb[1].mxu1 }
 0x389   : > { %v2719_v15 = vpop.f32.mrb[2].mxu1 }
 0x38a   : > { %v2721_v8 = vpop.f32.mrb[3].mxu1 }
 0x38d   : > { %v2723_v16 = vpop.f32.mrb[4].mxu1 }
 0x38e   : > { %v2725_v52 = vpop.f32.mrb[5].mxu1 }
 0x3cb   : > { %v2727_v18 = vpop.f32.mrb[6].mxu1 }
 0x3cc   : > { %v2729_v20 = vpop.f32.mrb[7].mxu1 }
 0x3cf   : > { %v1888_v53 = vpop.f32.mrb[8].mxu1 }
 0x3d0   : > { %v993_v54 = vadd.f32 %v1888_v53, %v1691_v48  ;;  %v987_v55 = vpop.f32.mrb[9].mxu1 }
 0x3d1   : > { %v988_v56 = vadd.f32 %v1690_v51, %v987_v55 }
 0x3d2   : > { %v1029_v17 = vsel %vm630_vm2, %v993_v54, -inf }
 0x3d3   : > { %1030 = vmax.xlane.f32.xlu1 %v1029_v17  ;;  %v1891_v58 = vpop.f32.mrb[10].mxu1  ;;  %v1026_v59 = vsel %vm630_vm2, %v988_v56, -inf }
 0x3d4   : > { %v1003_v19 = vadd.f32 %v1891_v58, %v1693_v57  ;;  %v997_v5 = vpop.f32.mrb[11].mxu1  ;;  %1027 = vmax.xlane.f32.xlu0 %v1026_v59 }
 0x3d5   : > { %v998_v22 = vadd.f32 %v1692_v11, %v997_v5 }
 0x3d6   : > { %v1035_v14 = vsel %vm630_vm2, %v1003_v19, -inf }
 0x3d7   : > { %v1894_v24 = vpop.f32.mrb[12].mxu1  ;;  %v1032_v35 = vsel %vm630_vm2, %v998_v22, -inf }
 0x3d8   : > { %v1013_v23 = vadd.f32 %v1894_v24, %v1695_v21  ;;  %v1007_v27 = vpop.f32.mrb[13].mxu1  ;;  %1036 = vmax.xlane.f32.xlu0 %v1035_v14 }
 0x3d9   : > { %v1008_v3 = vadd.f32 %v1694_v28, %v1007_v27 }
 0x3da   : > { %v1041_v33 = vsel %vm630_vm2, %v1013_v23, -inf }
 0x3db   : > { %1042 = vmax.xlane.f32.xlu1 %v1041_v33  ;;  %v1897_v6 = vpop.f32.mrb[14].mxu1  ;;  %v1038_v42 = vsel %vm630_vm2, %v1008_v3, -inf }
 0x3dc   : > { %v1023_v36 = vadd.f32 %v1897_v6, %v1697_v31  ;;  %v1017_v37 = vpop.f32.mrb[15].mxu1  ;;  %1033 = vmax.xlane.f32.xlu0 %v1032_v35 }
 0x3dd   : > { %v1018_v41 = vadd.f32 %v1696_v38, %v1017_v37 }
 0x3de   : > { %v1047_v39 = vsel %vm630_vm2, %v1023_v36, -inf }
 0x3df   : > { %1048 = vmax.xlane.f32.xlu1 %v1047_v39  ;;  %v1044_v44 = vsel %vm630_vm2, %v1018_v41, -inf }
 0x3e0   : > { %1039 = vmax.xlane.f32.xlu0 %v1038_v42  ;;  %v2121_v42 = vpack.i.bf16 %v2606_v26, %v2604_v25 }
 0x3e4   : > { %1045 = vmax.xlane.f32.xlu0 %v1044_v44 }
 0x3f0   : > { %2117 = vrot.lane.b32.xlu1 %v2116_v1, %s2287_s24 }
 0x3fa   : > { %2112 = vrot.lane.b32.xlu0 %v2111_v63, %s2287_s24 }
 0x460   : > { %v1031_v2 = vpop.xlane.xlu1 %1030 }
 0x461   : > { %v1051_v32 = vsub.f32 %v993_v54, %v1031_v2  ;;  %v1028_v4 = vpop.xlane.xlu0 %1027 }
 0x462   : > { %v1050_v43 = vsub.f32 %v988_v56, %v1028_v4 }
 0x463   : > { %v1060_v40 = vmul.f32 1.442695, %v1051_v32 }
 0x464   : > { %v1058_v34 = vmul.f32 1.442695, %v1050_v43 }
 0x465   : > { %2163 = vpow2.f32 %v1060_v40  ;;  %v1037_v46 = vpop.xlane.xlu0 %1036 }
 0x466   : > { %2165 = vpow2.f32 %v1058_v34  ;;  %v1053_v47 = vsub.f32 %v1003_v19, %v1037_v46 }
 0x468   : > { %v1064_v49 = vmul.f32 1.442695, %v1053_v47  ;;  %v1043_v0 = vpop.xlane.xlu1 %1042 }
 0x469   : > { %v1055_v62 = vsub.f32 %v1013_v23, %v1043_v0  ;;  %v1034_v7 = vpop.xlane.xlu0 %1033 }
 0x46a   : > { %2167 = vpow2.f32 %v1064_v49  ;;  %v1052_v45 = vsub.f32 %v998_v22, %v1034_v7 }
 0x46b   : > { %v1068_v12 = vmul.f32 1.442695, %v1055_v62 }
 0x46c   : > { %v1062_v9 = vmul.f32 1.442695, %v1052_v45  ;;  %v1049_v60 = vpop.xlane.xlu1 %1048 }
 0x46d   : > { %2169 = vpow2.f32 %v1068_v12  ;;  %v1057_v61 = vsub.f32 %v1023_v36, %v1049_v60  ;;  %v1040_v63 = vpop.xlane.xlu0 %1039 }
 0x46e   : > { %2171 = vpow2.f32 %v1062_v9  ;;  %v1054_v10 = vsub.f32 %v1008_v3, %v1040_v63 }
 0x46f   : > { %v2770_v48 = vpop.eup %2163  ;;  %v1072_v51 = vmul.f32 1.442695, %v1057_v61 }
 0x470   : > { %v2166_v53 = vpop.eup %2165  ;;  %v1066_v54 = vmul.f32 1.442695, %v1054_v10  ;;  %v1077_v55 = vsel %vm630_vm2, %v2770_v48, 0.0  ;;  %v2118_v58 = vpop.permute.xlu1 %2117 }
 0x471   : > { %2173 = vpow2.f32 %v1072_v51  ;;  %1078 = vadd.xlane.f32.xlu1 %v1077_v55  ;;  %v1046_v56 = vpop.xlane.xlu0 %1045  ;;  %v1074_v57 = vsel %vm630_vm2, %v2166_v53, 0.0  ;;  %v2120_v21 = vunpack.i.h.bf16 %v2118_v58  ;;  %v2119_v14 = vunpack.i.l.bf16 %v2118_v58  ;;  %v1316_v58 = vld [vmem:[#allocation2 + $0x8] sm:$0xff] }
 0x472   : > { %2175 = vpow2.f32 %v1066_v54  ;;  %v1056_v17 = vsub.f32 %v1018_v41, %v1046_v56  ;;  %1075 = vadd.xlane.f32.xlu0 %v1074_v57  ;;  %v2126_v41 = vpack.i.bf16 %v2614_v30, %v2612_v29 }
 0x473   : > { %v2014_v3 = vpack.c.bf16 %v2120_v21, %v2119_v14 }
 0x474   : > { %v2775_v59 = vpop.eup %2167  ;;  %v1070_v19 = vmul.f32 1.442695, %v1056_v17  ;;  %v1315_v17 = vld [vmem:[#allocation2] sm:$0xff] }
 0x475   : > { %v1083_v5 = vsel %vm630_vm2, %v2775_v59, 0.0  ;;  %v2113_v11 = vpop.permute.xlu0 %2112 }
 0x476   : > { %2177 = vpow2.f32 %v1070_v19  ;;  %1084 = vadd.xlane.f32.xlu1 %v1083_v5  ;;  %v2115_v22 = vunpack.i.h.bf16 %v2113_v11  ;;  %v2114_v24 = vunpack.i.l.bf16 %v2113_v11  ;;  %v1317_v19 = vld [vmem:[#allocation2 + $0x10] sm:$0xff]  ;;  %v2026_v5 = vpack.c.bf16 %v1316_v58, %v1315_v17  ;;  %v1318_v11 = vld [vmem:[#allocation2 + $0x18] sm:$0xff] }
 0x477   : > { %v2779_v23 = vpop.eup %2169  ;;  %v2030_v21 = vpack.c.bf16 %v1318_v11, %v1317_v19 }
 0x478   : > { %v2781_v27 = vpop.eup %2171  ;;  %v1089_v28 = vsel %vm630_vm2, %v2779_v23, 0.0  ;;  %v2010_v31 = vpack.c.bf16 %v2115_v22, %v2114_v24 }
 0x479   : > { %v1080_v33 = vsel %vm630_vm2, %v2781_v27, 0.0 }
 0x47a   : > { %1090 = vadd.xlane.f32.xlu1 %v1089_v28  ;;  %1081 = vadd.xlane.f32.xlu0 %v1080_v33 }
 0x47b   : > { %v2787_v6 = vpop.eup %2173  ;;  %2011 = vmatprep.subr.bf16.mxu0 %v2010_v31  ;;  %2034 = vmatprep.subr.bf16.mxu1 %v2010_v31 }
 0x47c   : > { %v2176_v35 = vpop.eup %2175  ;;  %v1095_v36 = vsel %vm630_vm2, %v2787_v6, 0.0  ;;  %2013 = vmatpush3.bf16.msra.mxu0 %v2010_v31  ;;  %2038 = vmatpush3.bf16.msra.mxu1 %v2010_v31 }
 0x47d   : > { %v1086_v37 = vsel %vm630_vm2, %v2176_v35, 0.0  ;;  %2015 = vmatprep.subr.bf16.mxu0 %v2014_v3  ;;  %2035 = vmatprep.subr.bf16.mxu1 %v2014_v3 }
 0x47e   : > { %1096 = vadd.xlane.f32.xlu1 %v1095_v36  ;;  %1087 = vadd.xlane.f32.xlu0 %v1086_v37 }
 0x480   : > { %v2178_v38 = vpop.eup %2177  ;;  %2017 = vmatpush3.bf16.msra.mxu0 %v2014_v3  ;;  %2039 = vmatpush3.bf16.msra.mxu1 %v2014_v3 }
 0x481   : > { %v1092_v39 = vsel %vm630_vm2, %v2178_v38, 0.0 }
 0x482   : > { %1093 = vadd.xlane.f32.xlu1 %v1092_v39 }
 0x493   : > { %2127 = vrot.lane.b32.xlu1 %v2126_v41, %s2287_s24 }
 0x494   : > { %2122 = vrot.lane.b32.xlu0 %v2121_v42, %s2287_s24 }
 0x4fe   : > { %v1079_v44 = vpop.xlane.xlu1 %1078 }
 0x4ff   : > { %v1076_v1 = vpop.xlane.xlu0 %1075 }
 0x500   : > { %2179 = vrcp.f32 %v1076_v1 }
 0x501   : > { %2181 = vrcp.f32 %v1079_v44 }
 0x503   : > { %v1085_v2 = vpop.xlane.xlu1 %1084 }
 0x507   : > { %v1091_v32 = vpop.xlane.xlu1 %1090  ;;  %v1082_v4 = vpop.xlane.xlu0 %1081 }
 0x508   : > { %2183 = vrcp.f32 %v1091_v32 }
 0x50a   : > { %v2180_v43 = vpop.eup %2179 }
 0x50b   : > { %v1097_v40 = vpop.xlane.xlu1 %1096  ;;  %v1088_v34 = vpop.xlane.xlu0 %1087  ;;  %v1106_v46 = vmul.f32 %v2180_v43, %v2166_v53 }
 0x50c   : > { %2185 = vrcp.f32 %v1088_v34  ;;  %v2182_v7 = vpop.eup %2181 }
 0x50d   : > { %1914 = vmatprep.mubr.msk.f32.mxu0 %vm630_vm2, %v1106_v46  ;;  %2187 = vrcp.f32 %v1082_v4  ;;  %v1107_v51 = vmul.f32 %v2182_v7, %v2770_v48  ;;  %v1456_v4 = vld [vmem:[%s2840_s27] sm:$0xff]  ;;  %v1459_v46 = vld [vmem:[%s2840_s27 + $0x18] sm:$0xff] }
 0x50e   : > { %2189 = vrcp.f32 %v1085_v2  ;;  %v1457_v2 = vld [vmem:[%s2840_s27 + $0x8] sm:$0xff] }
 0x50f   : > { %v1094_v25 = vpop.xlane.xlu1 %1093  ;;  %v2123_v26 = vpop.permute.xlu0 %2122 }
 0x510   : > { %2191 = vrcp.f32 %v1094_v25  ;;  %v2125_v29 = vunpack.i.h.bf16 %v2123_v26  ;;  %v2124_v30 = vunpack.i.l.bf16 %v2123_v26 }
 0x511   : > { %2193 = vrcp.f32 %v1097_v40 }
 0x512   : > { %v2018_v47 = vpack.c.bf16 %v2125_v29, %v2124_v30  ;;  %v2184_v45 = vpop.eup %2183  ;;  %v1458_v29 = vld [vmem:[%s2840_s27 + $0x10] sm:$0xff] }
 0x513   : > { %v2128_v49 = vpop.permute.xlu1 %2127  ;;  %v1111_v53 = vmul.f32 %v2184_v45, %v2779_v23 }
 0x514   : > { %v2130_v0 = vunpack.i.h.bf16 %v2128_v49  ;;  %v2129_v62 = vunpack.i.l.bf16 %v2128_v49  ;;  %2019 = vmatprep.subr.bf16.mxu0 %v2018_v47  ;;  %2036 = vmatprep.subr.bf16.mxu1 %v2018_v47 }
 0x515   : > { %2021 = vmatpush3.bf16.msra.mxu0 %v2018_v47  ;;  %2040 = vmatpush3.bf16.msra.mxu1 %v2018_v47 }
 0x516   : > { %v2022_v12 = vpack.c.bf16 %v2130_v0, %v2129_v62  ;;  %v2186_v9 = vpop.eup %2185  ;;  %v1461_v62 = vld [vmem:[%s2840_s27 + $0x28] sm:$0xff] }
 0x517   : > { %v2188_v60 = vpop.eup %2187  ;;  %v1110_v61 = vmul.f32 %v2186_v9, %v2176_v35 }
 0x518   : > { %2023 = vmatprep.subr.bf16.mxu0 %v2022_v12  ;;  %2037 = vmatprep.subr.bf16.mxu1 %v2022_v12  ;;  %v2190_v63 = vpop.eup %2189  ;;  %v1108_v55 = vmul.f32 %v2188_v60, %v2781_v27 }
 0x519   : > { %2025 = vmatpush3.bf16.msra.mxu0 %v2022_v12  ;;  %2041 = vmatpush3.bf16.msra.mxu1 %v2022_v12  ;;  %v1109_v57 = vmul.f32 %v2190_v63, %v2775_v59  ;;  %v1460_v12 = vld [vmem:[%s2840_s27 + $0x20] sm:$0xff] }
 0x51a   : > { %v2192_v10 = vpop.eup %2191  ;;  %1920 = vmatprep.mubr.msk.f32.mxu1 %vm630_vm2, %v1110_v61  ;;  %2027 = vmatprep.subr.bf16.mxu0 %v2026_v5 }
 0x51b   : > { %v2194_v54 = vpop.eup %2193  ;;  %v1112_v56 = vmul.f32 %v2192_v10, %v2178_v38  ;;  %v1463_v10 = vld [vmem:[%s2840_s27 + $0x38] sm:$0xff] }
 0x51c   : > { %1915 = vmatmul.mubr.msk.f32.vlgmr.msra.gmra.mrb[8].mxu0 %vm630_vm2, %v1107_v51  ;;  %1921 = vmatmul.mubr.msk.f32.vlgmr.msra.gmra.mrb[16].mxu1 %vm630_vm2, %v1111_v53  ;;  %v1113_v48 = vmul.f32 %v2194_v54, %v2787_v6  ;;  %v1462_v54 = vld [vmem:[%s2840_s27 + $0x30] sm:$0xff] }
 0x51d   : > { %1917 = vmatprep.mubr.msk.f32.mxu0 %vm630_vm2, %v1108_v55  ;;  %1923 = vmatprep.mubr.msk.f32.mxu1 %vm630_vm2, %v1112_v56 }
 0x51e   : > { %2029 = vmatpush3.bf16.msra.mxu0 %v2026_v5 }
 0x51f   : > { %2031 = vmatprep.subr.bf16.mxu0 %v2030_v21 }
 0x520   : > { %1918 = vmatmul.mubr.msk.f32.gmra.mrb[10].mxu0 %vm630_vm2, %v1109_v57  ;;  %1924 = vmatmul.mubr.msk.f32.gmra.mrb[18].mxu1 %vm630_vm2, %v1113_v48 }
 0x522   : > { %2033 = vmatpush3.bf16.msra.mxu0 %v2030_v21 }
 0x5ef   : > { %v1916_v14 = vpop.f32.mrb[8].mxu0  ;;  %v1922_v22 = vpop.f32.mrb[16].mxu1 }
 0x5f0   : > { %v1256_v24 = vpop.f32.mrb[17].mxu1  ;;  %1285 = vrot.lane.b32.xlu1 %v1916_v14, %s2288_s22  ;;  %v1236_v59 = vpop.f32.mrb[9].mxu0 }
 0x5f1   : > { %1283 = vrot.lane.b32.xlu0 %v1236_v59, %s2288_s22 }
 0x5f3   : > { %v1919_v23 = vpop.f32.mrb[10].mxu0  ;;  %v1925_v27 = vpop.f32.mrb[18].mxu1 }
 0x5f4   : > { %v1266_v28 = vpop.f32.mrb[19].mxu1  ;;  %1289 = vrot.lane.b32.xlu1 %v1919_v23, %s2288_s22  ;;  %v1246_v31 = vpop.f32.mrb[11].mxu0 }
 0x5f5   : > { %1287 = vrot.lane.b32.xlu0 %v1246_v31, %s2288_s22 }
 0x5f8   : > { %1293 = vrot.lane.b32.xlu1 %v1922_v22, %s2288_s22 }
 0x5f9   : > { %1291 = vrot.lane.b32.xlu0 %v1256_v24, %s2288_s22 }
 0x5fc   : > { %1297 = vrot.lane.b32.xlu1 %v1925_v27, %s2288_s22 }
 0x5fd   : > { %1295 = vrot.lane.b32.xlu0 %v1266_v28, %s2288_s22 }
 0x662   : > { %v1286_v33 = vpop.permute.xlu1 %1285 }
 0x663   : > { %v1284_v3 = vpop.permute.xlu0 %1283  ;;  %v1308_v35 = vsel %vm476_vm0, %v2715_v13, %v1286_v33 }
 0x664   : > { %v1307_v6 = vsel %vm476_vm0, %v2717_v50, %v1284_v3 }
 0x665   : > { %1934 = vmatprep.mubr.msk.f32.mxu0 %vm1326_vm3, %v1307_v6 }
 0x666   : > { %1935 = vmatmul.mubr.msk.f32.vlgmr.msra.gmra.mrb[12].mxu0 %vm1326_vm3, %v1308_v35  ;;  %v1290_v36 = vpop.permute.xlu1 %1289 }
 0x667   : > { %v1288_v37 = vpop.permute.xlu0 %1287  ;;  %v1310_v39 = vsel %vm476_vm0, %v2719_v15, %v1290_v36 }
 0x668   : > { %v1309_v38 = vsel %vm476_vm0, %v2721_v8, %v1288_v37 }
 0x669   : > { %1937 = vmatprep.mubr.msk.f32.mxu0 %vm1326_vm3, %v1309_v38 }
 0x66a   : > { %v1294_v41 = vpop.permute.xlu1 %1293  ;;  %1938 = vmatmul.mubr.msk.f32.gmra.mrb[14].mxu0 %vm1326_vm3, %v1310_v39 }
 0x66b   : > { %v1292_v50 = vpop.permute.xlu0 %1291  ;;  %v1312_v42 = vsel %vm476_vm0, %v2723_v16, %v1294_v41  ;;  %v1722_v16 = vld [vmem:[#allocation4] ss:$0 sm:$0xff] }
 0x66c   : > { %v1311_v13 = vsel %vm476_vm0, %v2725_v52, %v1292_v50 }
 0x66d   : > { %1940 = vmatprep.mubr.msk.f32.mxu0 %vm1326_vm3, %v1311_v13 }
 0x66e   : > { %v1298_v8 = vpop.permute.xlu1 %1297  ;;  %1941 = vmatmul.mubr.msk.f32.gmra.mrb[16].mxu0 %vm1326_vm3, %v1312_v42 }
 0x66f   : > { %v1296_v44 = vpop.permute.xlu0 %1295  ;;  %v1314_v1 = vsel %vm476_vm0, %v2727_v18, %v1298_v8 }
 0x670   : > { %v1313_v15 = vsel %vm476_vm0, %v2729_v20, %v1296_v44 }
 0x671   : > { %1943 = vmatprep.mubr.msk.f32.mxu0 %vm1326_vm3, %v1313_v15 }
 0x672   : > { %1944 = vmatmul.mubr.msk.f32.gmra.mrb[18].mxu0 %vm1326_vm3, %v1314_v1 }
 0x739   : > { %v1936_v52 = vpop.f32.mrb[12].mxu0 }
 0x73a   : > { %v1423_v20 = vadd.f32 %v1936_v52, %v1722_v16  ;;  %v1417_v32 = vpop.f32.mrb[13].mxu0 }
 0x73b   : > { %v1418_v18 = vadd.f32 %v1722_v16, %v1417_v32 }
 0x73c   : > { %v1465_v43 = vadd.f32 %v1457_v2, %v1423_v20 }
 0x73d   : > { %v1464_v40 = vadd.f32 %v1456_v4, %v1418_v18  ;;  %v1939_v34 = vpop.f32.mrb[14].mxu0 }
 0x73e   : > { %1473 = vst.msk [vmem:[%s2848_s13 + $0x8] sm:$0xff] %vm1326_vm3, %v1465_v43  ;;  %v1433_v25 = vadd.f32 %v1939_v34, %v1722_v16  ;;  %v1427_v26 = vpop.f32.mrb[15].mxu0 }
 0x73f   : > { %1472 = vst.msk [vmem:[%s2848_s13] sm:$0xff] %vm1326_vm3, %v1464_v40  ;;  %v1428_v30 = vadd.f32 %v1722_v16, %v1427_v26 }
 0x740   : > { %v1467_v47 = vadd.f32 %v1459_v46, %v1433_v25 }
 0x741   : > { %v1466_v49 = vadd.f32 %v1458_v29, %v1428_v30  ;;  %v1942_v0 = vpop.f32.mrb[16].mxu0 }
 0x742   : > { %1475 = vst.msk [vmem:[%s2848_s13 + $0x18] sm:$0xff] %vm1326_vm3, %v1467_v47  ;;  %v1443_v7 = vadd.f32 %v1942_v0, %v1722_v16  ;;  %v1437_v45 = vpop.f32.mrb[17].mxu0 }
 0x743   : > { %1474 = vst.msk [vmem:[%s2848_s13 + $0x10] sm:$0xff] %vm1326_vm3, %v1466_v49  ;;  %v1438_v9 = vadd.f32 %v1722_v16, %v1437_v45 }
 0x744   : > { %v1469_v60 = vadd.f32 %v1461_v62, %v1443_v7 }
 0x745   : > { %v1468_v61 = vadd.f32 %v1460_v12, %v1438_v9  ;;  %v1945_v63 = vpop.f32.mrb[18].mxu0 }
 0x746   : > { %1477 = vst.msk [vmem:[%s2848_s13 + $0x28] sm:$0xff] %vm1326_vm3, %v1469_v60  ;;  %v1453_v51 = vadd.f32 %v1945_v63, %v1722_v16  ;;  %v1447_v53 = vpop.f32.mrb[19].mxu0 }
 0x747   : > { %1476 = vst.msk [vmem:[%s2848_s13 + $0x20] sm:$0xff] %vm1326_vm3, %v1468_v61  ;;  %v1448_v55 = vadd.f32 %v1722_v16, %v1447_v53 }
 0x748   : > { %v1471_v56 = vadd.f32 %v1463_v10, %v1453_v51 }
 0x749   : > { %v1470_v57 = vadd.f32 %v1462_v54, %v1448_v55 }
 0x74a   : > { %1479 = vst.msk [vmem:[%s2848_s13 + $0x38] sm:$0xff] %vm1326_vm3, %v1471_v56 }
 0x74b   : > { %1478 = vst.msk [vmem:[%s2848_s13 + $0x30] sm:$0xff] %vm1326_vm3, %v1470_v57 }
 0x74c PF: > { %s19_s26 = sadd.s32 1, %s2281_s26   ;;  %s2899_s24 = smov %s2277_s25 }
 0x74d   : > { %p16_p6 = scmp.ge.s32.totalorder %s19_s26, 4   ;;  %s2900_s25 = smov %s2902_s28 }
 0x74f   :  { %18 = sbr.rel (!%p16_p6) target bundleno = 3 (0x3), region = 100 }
 0x756   :  { %1510 = vsyncpa [#allocation3], 1 }
 0x757   :  { %1512 = vsyncpa [#allocation3 + $0x1], 1 }
 0x758   :  { %1513 = vsyncpa [#allocation5], 1 }

// kernel: _lambda_.8
= control target key start
LH: loop header
LB: loop body
LE: loop exit
PB: predicated region body
PF: predicated region fallthrough
CT: control target
= control target key end

     0   :  { %vm42_vm0 = vcmask 261120   ;;  %s1625_s0 = inlined_call_operand.vmem [shape: f32[128,32], index: 0, kind: input, shape index: {}]   ;;  %s1626_s3 = inlined_call_operand.vmem [shape: f32[32,128], index: 3, kind: input, shape index: {}]   ;;  %s1627_s5 = inlined_call_operand.vmem [shape: f32[128,32], index: 5, kind: input, shape index: {}]   ;;  %s1628_s1 = inlined_call_operand.vmem [shape: f32[1,32], index: 1, kind: input, shape index: {}]   ;;  %s1629_s2 = inlined_call_operand.vmem [shape: f32[1,32], index: 2, kind: input, shape index: {}, may-alias: {2,6}]   ;;  %s1630_s4 = inlined_call_operand.vmem [shape: f32[1,128], index: 4, kind: input, shape index: {}]   ;;  %s1631_s6 = inlined_call_operand.vmem [shape: f32[1,32], index: 6, kind: input, shape index: {}, may-alias: {2,6}]   ;;  %s1632_s7 = inlined_call_operand.vmem [shape: f32[128,32], index: 7, kind: output, shape index: {}]  }
   0x1   :  { %v26_v0 = vld [vmem:[%s1625_s0] sm:$0xff]  ;;  %v28_v1 = vld [vmem:[%s1625_s0 + $0x10] sm:$0xff]  ;;  %v1130_v2 = vld [vmem:[%s1625_s0 + $0x8] sm:$0xff] }
   0x2   :  { %v43_v3 = vsel %vm42_vm0, %v26_v0, 0.0  ;;  %v49_v4 = vsel %vm42_vm0, %v28_v1, 0.0  ;;  %v29_v5 = vld [vmem:[%s1625_s0 + $0x18] sm:$0xff]  ;;  %v46_v6 = vsel %vm42_vm0, %v1130_v2, 0.0  ;;  %v30_v8 = vld [vmem:[%s1625_s0 + $0x20] sm:$0xff]  ;;  %v31_v9 = vld [vmem:[%s1625_s0 + $0x28] sm:$0xff] }
   0x3   :  { %44 = vadd.xlane.f32.xlu0 %v43_v3  ;;  %50 = vadd.xlane.f32.xlu1 %v49_v4  ;;  %v52_v7 = vsel %vm42_vm0, %v29_v5, 0.0  ;;  %v55_v10 = vsel %vm42_vm0, %v30_v8, 0.0  ;;  %v58_v11 = vsel %vm42_vm0, %v31_v9, 0.0  ;;  %v1151_v12 = vld [vmem:[%s1625_s0 + $0x30] sm:$0xff]  ;;  %v1156_v13 = vld [vmem:[%s1625_s0 + $0x38] sm:$0xff]  ;;  %v1165_v16 = vld [vmem:[%s1625_s0 + $0x40] sm:$0xff] }
   0x4   :  { %v61_v14 = vsel %vm42_vm0, %v1151_v12, 0.0  ;;  %v64_v15 = vsel %vm42_vm0, %v1156_v13, 0.0  ;;  %v1170_v17 = vld [vmem:[%s1625_s0 + $0x48] sm:$0xff]  ;;  %v67_v18 = vsel %vm42_vm0, %v1165_v16, 0.0  ;;  %v1179_v20 = vld [vmem:[%s1625_s0 + $0x50] sm:$0xff]  ;;  %v1184_v21 = vld [vmem:[%s1625_s0 + $0x58] sm:$0xff] }
   0x5   :  { %v70_v19 = vsel %vm42_vm0, %v1170_v17, 0.0  ;;  %v73_v22 = vsel %vm42_vm0, %v1179_v20, 0.0  ;;  %v76_v23 = vsel %vm42_vm0, %v1184_v21, 0.0  ;;  %v1193_v24 = vld [vmem:[%s1625_s0 + $0x60] sm:$0xff]  ;;  %v1198_v25 = vld [vmem:[%s1625_s0 + $0x68] sm:$0xff]  ;;  %v1207_v28 = vld [vmem:[%s1625_s0 + $0x70] sm:$0xff] }
   0x6   :  { %v79_v26 = vsel %vm42_vm0, %v1193_v24, 0.0  ;;  %v82_v27 = vsel %vm42_vm0, %v1198_v25, 0.0  ;;  %v1212_v29 = vld [vmem:[%s1625_s0 + $0x78] sm:$0xff]  ;;  %v85_v30 = vsel %vm42_vm0, %v1207_v28, 0.0 }
   0x7   :  { %47 = vadd.xlane.f32.xlu0 %v46_v6  ;;  %53 = vadd.xlane.f32.xlu1 %v52_v7  ;;  %v88_v31 = vsel %vm42_vm0, %v1212_v29, 0.0 }
   0xb   :  { %56 = vadd.xlane.f32.xlu0 %v55_v10  ;;  %59 = vadd.xlane.f32.xlu1 %v58_v11 }
   0xf   :  { %62 = vadd.xlane.f32.xlu0 %v61_v14  ;;  %65 = vadd.xlane.f32.xlu1 %v64_v15 }
  0x13   :  { %68 = vadd.xlane.f32.xlu0 %v67_v18  ;;  %71 = vadd.xlane.f32.xlu1 %v70_v19 }
  0x17   :  { %74 = vadd.xlane.f32.xlu0 %v73_v22  ;;  %77 = vadd.xlane.f32.xlu1 %v76_v23 }
  0x1b   :  { %80 = vadd.xlane.f32.xlu0 %v79_v26  ;;  %83 = vadd.xlane.f32.xlu1 %v82_v27 }
  0x1f   :  { %86 = vadd.xlane.f32.xlu0 %v85_v30  ;;  %89 = vadd.xlane.f32.xlu1 %v88_v31 }
  0x90   :  { %v45_v32 = vpop.xlane.xlu0 %44  ;;  %v51_v33 = vpop.xlane.xlu1 %50 }
  0x91   :  { %v92_v34 = vmul.f32 0.03125, %v45_v32  ;;  %v94_v35 = vmul.f32 0.03125, %v51_v33 }
  0x93   :  { %v1218_v36 = vsub.f32 %v26_v0, %v92_v34  ;;  %v1220_v37 = vsub.f32 %v28_v1, %v94_v35 }
  0x94   :  { %v48_v38 = vpop.xlane.xlu0 %47  ;;  %v54_v39 = vpop.xlane.xlu1 %53 }
  0x95   :  { %v93_v40 = vmul.f32 0.03125, %v48_v38  ;;  %v95_v41 = vmul.f32 0.03125, %v54_v39  ;;  %v124_v42 = vmul.f32 %v1218_v36, %v1218_v36  ;;  %v126_v43 = vmul.f32 %v1220_v37, %v1220_v37 }
  0x97   :  { %v1227_v44 = vsub.f32 %v1130_v2, %v93_v40  ;;  %v1229_v45 = vsub.f32 %v29_v5, %v95_v41  ;;  %v140_v46 = vsel %vm42_vm0, %v124_v42, 0.0  ;;  %v146_v49 = vsel %vm42_vm0, %v126_v43, 0.0 }
  0x98   :  { %141 = vadd.xlane.f32.xlu0 %v140_v46  ;;  %v57_v47 = vpop.xlane.xlu0 %56  ;;  %v60_v48 = vpop.xlane.xlu1 %59 }
  0x99   :  { %v96_v50 = vmul.f32 0.03125, %v57_v47  ;;  %v97_v51 = vmul.f32 0.03125, %v60_v48  ;;  %v125_v52 = vmul.f32 %v1227_v44, %v1227_v44  ;;  %v127_v53 = vmul.f32 %v1229_v45, %v1229_v45 }
  0x9b   :  { %v1237_v54 = vsub.f32 %v30_v8, %v96_v50  ;;  %v1239_v55 = vsub.f32 %v31_v9, %v97_v51  ;;  %v143_v56 = vsel %vm42_vm0, %v125_v52, 0.0  ;;  %v149_v59 = vsel %vm42_vm0, %v127_v53, 0.0 }
  0x9c   :  { %147 = vadd.xlane.f32.xlu0 %v146_v49  ;;  %144 = vadd.xlane.f32.xlu1 %v143_v56  ;;  %v63_v57 = vpop.xlane.xlu0 %62  ;;  %v66_v58 = vpop.xlane.xlu1 %65  ;;  %v299_v56 = vld [vmem:[%s1626_s3 + $0x8] sm:$0xff] }
  0x9d   :  { %v98_v60 = vmul.f32 0.03125, %v63_v57  ;;  %v99_v61 = vmul.f32 0.03125, %v66_v58  ;;  %v128_v62 = vmul.f32 %v1237_v54, %v1237_v54  ;;  %v129_v63 = vmul.f32 %v1239_v55, %v1239_v55  ;;  %v300_v58 = vld [vmem:[%s1626_s3 + $0x10] sm:$0xff] }
  0x9f   :  { %v1248_v0 = vsub.f32 %v1151_v12, %v98_v60  ;;  %v1251_v1 = vsub.f32 %v1156_v13, %v99_v61  ;;  %v152_v3 = vsel %vm42_vm0, %v128_v62, 0.0  ;;  %v155_v6 = vsel %vm42_vm0, %v129_v63, 0.0  ;;  %v582_v61 = vld [vmem:[%s1627_s5] sm:$0xff]  ;;  %v583_v62 = vld [vmem:[%s1627_s5 + $0x8] sm:$0xff]  ;;  %v584_v63 = vld [vmem:[%s1627_s5 + $0x10] sm:$0xff] }
  0xa0   :  { %150 = vadd.xlane.f32.xlu1 %v149_v59  ;;  %153 = vadd.xlane.f32.xlu0 %v152_v3  ;;  %v69_v4 = vpop.xlane.xlu0 %68  ;;  %v72_v5 = vpop.xlane.xlu1 %71  ;;  %v301_v59 = vld [vmem:[%s1626_s3 + $0x18] sm:$0xff]  ;;  %v1330_v3 = vpack.c.bf16 %v583_v62, %v582_v61 }
  0xa1   :  { %v100_v7 = vmul.f32 0.03125, %v69_v4  ;;  %v101_v8 = vmul.f32 0.03125, %v72_v5  ;;  %v130_v9 = vmul.f32 %v1248_v0, %v1248_v0  ;;  %v131_v10 = vmul.f32 %v1251_v1, %v1251_v1  ;;  %v585_v4 = vld [vmem:[%s1627_s5 + $0x18] sm:$0xff] }
  0xa2   :  { %v950_v60 = vpack.c.bf16 %v301_v59, %v300_v58  ;;  %v1336_v5 = vpack.c.bf16 %v585_v4, %v584_v63  ;;  %986 = vmatprep.subr.bf16.mxu1 %v1330_v3 }
  0xa3   :  { %v1260_v11 = vsub.f32 %v1165_v16, %v100_v7  ;;  %v1263_v12 = vsub.f32 %v1170_v17, %v101_v8  ;;  %v158_v13 = vsel %vm42_vm0, %v130_v9, 0.0  ;;  %v161_v18 = vsel %vm42_vm0, %v131_v10, 0.0  ;;  %v587_v7 = vld [vmem:[%s1627_s5 + $0x28] sm:$0xff]  ;;  %994 = vmatpush3.bf16.msra.mxu1 %v1330_v3 }
  0xa4   :  { %156 = vadd.xlane.f32.xlu1 %v155_v6  ;;  %159 = vadd.xlane.f32.xlu0 %v158_v13  ;;  %v75_v14 = vpop.xlane.xlu0 %74  ;;  %v78_v15 = vpop.xlane.xlu1 %77  ;;  %v586_v6 = vld [vmem:[%s1627_s5 + $0x20] sm:$0xff] }
  0xa5   :  { %v102_v19 = vmul.f32 0.03125, %v75_v14  ;;  %v103_v22 = vmul.f32 0.03125, %v78_v15  ;;  %v132_v23 = vmul.f32 %v1260_v11, %v1260_v11  ;;  %v133_v16 = vmul.f32 %v1263_v12, %v1263_v12  ;;  %987 = vmatprep.subr.bf16.mxu1 %v1336_v5 }
  0xa6   :  { %v1347_v8 = vpack.c.bf16 %v587_v7, %v586_v6 }
  0xa7   :  { %v1272_v26 = vsub.f32 %v1179_v20, %v102_v19  ;;  %v1275_v17 = vsub.f32 %v1184_v21, %v103_v22  ;;  %v164_v27 = vsel %vm42_vm0, %v132_v23, 0.0  ;;  %v167_v32 = vsel %vm42_vm0, %v133_v16, 0.0  ;;  %995 = vmatpush3.bf16.msra.mxu1 %v1336_v5 }
  0xa8   :  { %162 = vadd.xlane.f32.xlu1 %v161_v18  ;;  %165 = vadd.xlane.f32.xlu0 %v164_v27  ;;  %v81_v30 = vpop.xlane.xlu0 %80  ;;  %v84_v31 = vpop.xlane.xlu1 %83 }
  0xa9   :  { %v104_v33 = vmul.f32 0.03125, %v81_v30  ;;  %v105_v34 = vmul.f32 0.03125, %v84_v31  ;;  %v134_v35 = vmul.f32 %v1272_v26, %v1272_v26  ;;  %v135_v20 = vmul.f32 %v1275_v17, %v1275_v17  ;;  %988 = vmatprep.subr.bf16.mxu1 %v1347_v8 }
  0xab   :  { %v1284_v38 = vsub.f32 %v1193_v24, %v104_v33  ;;  %v1287_v21 = vsub.f32 %v1198_v25, %v105_v34  ;;  %v170_v39 = vsel %vm42_vm0, %v134_v35, 0.0  ;;  %v173_v42 = vsel %vm42_vm0, %v135_v20, 0.0  ;;  %996 = vmatpush3.bf16.msra.mxu1 %v1347_v8 }
  0xac   :  { %168 = vadd.xlane.f32.xlu1 %v167_v32  ;;  %171 = vadd.xlane.f32.xlu0 %v170_v39  ;;  %v87_v40 = vpop.xlane.xlu0 %86  ;;  %v90_v41 = vpop.xlane.xlu1 %89 }
  0xad   :  { %v106_v43 = vmul.f32 0.03125, %v87_v40  ;;  %v107_v46 = vmul.f32 0.03125, %v90_v41  ;;  %v136_v47 = vmul.f32 %v1284_v38, %v1284_v38  ;;  %v137_v24 = vmul.f32 %v1287_v21, %v1287_v21 }
  0xaf   :  { %v1296_v48 = vsub.f32 %v1207_v28, %v106_v43  ;;  %v1299_v25 = vsub.f32 %v1212_v29, %v107_v46  ;;  %v176_v49 = vsel %vm42_vm0, %v136_v47, 0.0  ;;  %v179_v50 = vsel %vm42_vm0, %v137_v24, 0.0  ;;  %v298_v29 = vld [vmem:[%s1626_s3] sm:$0xff] }
  0xb0   :  { %174 = vadd.xlane.f32.xlu1 %v173_v42  ;;  %177 = vadd.xlane.f32.xlu0 %v176_v49  ;;  %v946_v57 = vpack.c.bf16 %v299_v56, %v298_v29  ;;  %v1355_v43 = vld [vmem:[%s1628_s1] ss:$0 sm:$0xff] }
  0xb1   :  { %v138_v51 = vmul.f32 %v1296_v48, %v1296_v48  ;;  %v139_v52 = vmul.f32 %v1299_v25, %v1299_v25 }
  0xb2   :  { %947 = vmatprep.subr.bf16.mxu0 %v946_v57 }
  0xb3   :  { %v182_v53 = vsel %vm42_vm0, %v138_v51, 0.0  ;;  %v185_v28 = vsel %vm42_vm0, %v139_v52, 0.0  ;;  %949 = vmatpush3.bf16.msra.mxu0 %v946_v57  ;;  %v1361_v51 = vld [vmem:[%s1629_s2] ss:$0 sm:$0xff] }
  0xb4   :  { %180 = vadd.xlane.f32.xlu1 %v179_v50  ;;  %183 = vadd.xlane.f32.xlu0 %v182_v53 }
  0xb5   :  { %951 = vmatprep.subr.bf16.mxu0 %v950_v60 }
  0xb7   :  { %953 = vmatpush3.bf16.msra.mxu0 %v950_v60 }
  0xb8   :  { %186 = vadd.xlane.f32.xlu1 %v185_v28  ;;  %955 = vmatprep.subr.bf16.mxu0 %v1330_v3 }
 0x125   :  { %v142_v9 = vpop.xlane.xlu0 %141 }
 0x126   :  { %v188_v10 = vmul.f32 0.03125, %v142_v9 }
 0x128   :  { %v204_v13 = vadd.f32 1e-05, %v188_v10 }
 0x129   :  { %v145_v14 = vpop.xlane.xlu1 %144  ;;  %v148_v15 = vpop.xlane.xlu0 %147 }
 0x12a   :  { %1002 = vrsqrt.f32 %v204_v13  ;;  %v189_v18 = vmul.f32 0.03125, %v145_v14  ;;  %v190_v19 = vmul.f32 0.03125, %v148_v15 }
 0x12c   :  { %v205_v22 = vadd.f32 1e-05, %v189_v18  ;;  %v206_v23 = vadd.f32 1e-05, %v190_v19 }
 0x12d   :  { %v151_v16 = vpop.xlane.xlu1 %150  ;;  %v154_v27 = vpop.xlane.xlu0 %153 }
 0x12e   :  { %1004 = vrsqrt.f32 %v205_v22  ;;  %v191_v30 = vmul.f32 0.03125, %v151_v16  ;;  %v192_v31 = vmul.f32 0.03125, %v154_v27 }
 0x12f   :  { %1006 = vrsqrt.f32 %v206_v23 }
 0x130   :  { %v207_v32 = vadd.f32 1e-05, %v191_v30  ;;  %v208_v33 = vadd.f32 1e-05, %v192_v31 }
 0x131   :  { %v157_v34 = vpop.xlane.xlu1 %156  ;;  %v160_v35 = vpop.xlane.xlu0 %159 }
 0x132   :  { %1008 = vrsqrt.f32 %v207_v32  ;;  %v193_v20 = vmul.f32 0.03125, %v157_v34  ;;  %v194_v39 = vmul.f32 0.03125, %v160_v35 }
 0x133   :  { %1010 = vrsqrt.f32 %v208_v33 }
 0x134   :  { %v1003_v40 = vpop.eup %1002  ;;  %v209_v41 = vadd.f32 1e-05, %v193_v20  ;;  %v210_v42 = vadd.f32 1e-05, %v194_v39 }
 0x135   :  { %v163_v46 = vpop.xlane.xlu1 %162  ;;  %v166_v47 = vpop.xlane.xlu0 %165  ;;  %v236_v24 = vmul.f32 %v1003_v40, %v1218_v36 }
 0x136   :  { %1012 = vrsqrt.f32 %v209_v41  ;;  %v195_v49 = vmul.f32 0.03125, %v163_v46  ;;  %v196_v50 = vmul.f32 0.03125, %v166_v47 }
 0x137   :  { %1014 = vrsqrt.f32 %v210_v42  ;;  %v259_v52 = vmul.f32 %v1355_v43, %v236_v24 }
 0x138   :  { %v1005_v53 = vpop.eup %1004  ;;  %v211_v28 = vadd.f32 1e-05, %v195_v49  ;;  %v212_v29 = vadd.f32 1e-05, %v196_v50 }
 0x139   :  { %v1007_v56 = vpop.eup %1006  ;;  %v169_v57 = vpop.xlane.xlu1 %168  ;;  %v282_v59 = vadd.f32 %v1361_v51, %v259_v52  ;;  %v237_v36 = vmul.f32 %v1005_v53, %v1227_v44 }
 0x13a   :  { %v172_v58 = vpop.xlane.xlu0 %171  ;;  %1016 = vrsqrt.f32 %v211_v28  ;;  %v197_v60 = vmul.f32 0.03125, %v169_v57  ;;  %v238_v62 = vmul.f32 %v1007_v56, %v1220_v37 }
 0x13b   :  { %v198_v61 = vmul.f32 0.03125, %v172_v58  ;;  %1018 = vrsqrt.f32 %v212_v29  ;;  %866 = vmatprep.mubr.msk.f32.mxu0 %vm42_vm0, %v282_v59  ;;  %v260_v63 = vmul.f32 %v1355_v43, %v237_v36 }
 0x13c   :  { %v1009_v4 = vpop.eup %1008  ;;  %v213_v6 = vadd.f32 1e-05, %v197_v60  ;;  %v261_v9 = vmul.f32 %v1355_v43, %v238_v62 }
 0x13d   :  { %v214_v7 = vadd.f32 1e-05, %v198_v61  ;;  %v1011_v10 = vpop.eup %1010  ;;  %v175_v13 = vpop.xlane.xlu1 %174  ;;  %v283_v44 = vadd.f32 %v1361_v51, %v260_v63  ;;  %v239_v15 = vmul.f32 %v1009_v4, %v1229_v45 }
 0x13e   :  { %v178_v14 = vpop.xlane.xlu0 %177  ;;  %1020 = vrsqrt.f32 %v213_v6  ;;  %v199_v18 = vmul.f32 0.03125, %v175_v13  ;;  %v284_v19 = vadd.f32 %v1361_v51, %v261_v9  ;;  %v240_v23 = vmul.f32 %v1011_v10, %v1237_v54 }
 0x13f   :  { %v200_v37 = vmul.f32 0.03125, %v178_v14  ;;  %1022 = vrsqrt.f32 %v214_v7  ;;  %867 = vmatmul.mubr.msk.f32.vlgmr.msra.gmra.mrb[0].mxu0 %vm42_vm0, %v283_v44  ;;  %v262_v22 = vmul.f32 %v1355_v43, %v239_v15 }
 0x140   :  { %v1013_v16 = vpop.eup %1012  ;;  %v215_v27 = vadd.f32 1e-05, %v199_v18  ;;  %869 = vmatprep.mubr.msk.f32.mxu0 %vm42_vm0, %v284_v19  ;;  %957 = vmatpush3.bf16.msra.mxu0 %v1330_v3  ;;  %v263_v34 = vmul.f32 %v1355_v43, %v240_v23 }
 0x141   :  { %v216_v30 = vadd.f32 1e-05, %v200_v37  ;;  %v1015_v45 = vpop.eup %1014  ;;  %v181_v31 = vpop.xlane.xlu1 %180  ;;  %v285_v33 = vadd.f32 %v1361_v51, %v262_v22  ;;  %v241_v35 = vmul.f32 %v1013_v16, %v1239_v55  ;;  %959 = vmatprep.subr.bf16.mxu0 %v1336_v5  ;;  %v588_v22 = vld [vmem:[%s1627_s5 + $0x30] sm:$0xff] }
 0x142   :  { %v184_v32 = vpop.xlane.xlu0 %183  ;;  %1024 = vrsqrt.f32 %v215_v27  ;;  %v201_v54 = vmul.f32 0.03125, %v181_v31  ;;  %v242_v39 = vmul.f32 %v1015_v45, %v1248_v0  ;;  %v286_v3 = vadd.f32 %v1361_v51, %v263_v34  ;;  %v592_v27 = vld [vmem:[%s1627_s5 + $0x50] sm:$0xff]  ;;  %v594_v31 = vld [vmem:[%s1627_s5 + $0x60] sm:$0xff] }
 0x143   :  { %v202_v20 = vmul.f32 0.03125, %v184_v32  ;;  %1026 = vrsqrt.f32 %v216_v30  ;;  %870 = vmatmul.mubr.msk.f32.gmra.mrb[2].mxu0 %vm42_vm0, %v285_v33  ;;  %v264_v40 = vmul.f32 %v1355_v43, %v241_v35  ;;  %v593_v30 = vld [vmem:[%s1627_s5 + $0x58] sm:$0xff]  ;;  %v595_v32 = vld [vmem:[%s1627_s5 + $0x68] sm:$0xff]  ;;  %v596_v34 = vld [vmem:[%s1627_s5 + $0x70] sm:$0xff] }
 0x144   :  { %v1017_v41 = vpop.eup %1016  ;;  %v217_v42 = vadd.f32 1e-05, %v201_v54  ;;  %v265_v47 = vmul.f32 %v1355_v43, %v242_v39  ;;  %961 = vmatpush3.bf16.msra.mxu0 %v1336_v5  ;;  %872 = vmatprep.mubr.msk.f32.mxu0 %vm42_vm0, %v286_v3  ;;  %v974_v45 = vpack.c.bf16 %v593_v30, %v592_v27  ;;  %v978_v33 = vpack.c.bf16 %v595_v32, %v594_v31  ;;  %v597_v35 = vld [vmem:[%s1627_s5 + $0x78] sm:$0xff] }
 0x145   :  { %v218_v46 = vadd.f32 1e-05, %v202_v20  ;;  %v1019_v55 = vpop.eup %1018  ;;  %v187_v24 = vpop.xlane.xlu1 %186  ;;  %v287_v0 = vadd.f32 %v1361_v51, %v264_v40  ;;  %v243_v49 = vmul.f32 %v1017_v41, %v1251_v1  ;;  %963 = vmatprep.subr.bf16.mxu0 %v1347_v8  ;;  %v982_v54 = vpack.c.bf16 %v597_v35, %v596_v34  ;;  %v1464_v20 = vld [vmem:[%s1630_s4] ss:$0 sm:$0xff] }
 0x146   :  { %1028 = vrsqrt.f32 %v217_v42  ;;  %v203_v50 = vmul.f32 0.03125, %v187_v24  ;;  %v288_v52 = vadd.f32 %v1361_v51, %v265_v47  ;;  %v244_v53 = vmul.f32 %v1019_v55, %v1260_v11 }
 0x147   :  { %1030 = vrsqrt.f32 %v218_v46  ;;  %873 = vmatmul.mubr.msk.f32.gmra.mrb[4].mxu0 %vm42_vm0, %v287_v0  ;;  %v266_v5 = vmul.f32 %v1355_v43, %v243_v49 }
 0x148   :  { %v1021_v28 = vpop.eup %1020  ;;  %v219_v29 = vadd.f32 1e-05, %v203_v50  ;;  %875 = vmatprep.mubr.msk.f32.mxu0 %vm42_vm0, %v288_v52  ;;  %v267_v56 = vmul.f32 %v1355_v43, %v244_v53  ;;  %965 = vmatpush3.bf16.msra.mxu0 %v1347_v8 }
 0x149   :  { %v1023_v1 = vpop.eup %1022  ;;  %v289_v57 = vadd.f32 %v1361_v51, %v266_v5  ;;  %v245_v58 = vmul.f32 %v1021_v28, %v1263_v12 }
 0x14a   :  { %1032 = vrsqrt.f32 %v219_v29  ;;  %v290_v11 = vadd.f32 %v1361_v51, %v267_v56  ;;  %v246_v59 = vmul.f32 %v1023_v1, %v1272_v26 }
 0x14b   :  { %876 = vmatmul.mubr.msk.f32.gmra.mrb[6].mxu0 %vm42_vm0, %v289_v57  ;;  %v268_v36 = vmul.f32 %v1355_v43, %v245_v58 }
 0x14c   :  { %v1025_v60 = vpop.eup %1024  ;;  %878 = vmatprep.mubr.msk.f32.mxu0 %vm42_vm0, %v290_v11  ;;  %v269_v61 = vmul.f32 %v1355_v43, %v246_v59 }
 0x14d   :  { %v1027_v8 = vpop.eup %1026  ;;  %v291_v62 = vadd.f32 %v1361_v51, %v268_v36  ;;  %v247_v63 = vmul.f32 %v1025_v60, %v1275_v17 }
 0x14e   :  { %v292_v12 = vadd.f32 %v1361_v51, %v269_v61  ;;  %v248_v4 = vmul.f32 %v1027_v8, %v1284_v38 }
 0x14f   :  { %879 = vmatmul.mubr.msk.f32.gmra.mrb[8].mxu0 %vm42_vm0, %v291_v62  ;;  %v270_v26 = vmul.f32 %v1355_v43, %v247_v63 }
 0x150   :  { %v1029_v6 = vpop.eup %1028  ;;  %881 = vmatprep.mubr.msk.f32.mxu0 %vm42_vm0, %v292_v12  ;;  %v271_v7 = vmul.f32 %v1355_v43, %v248_v4 }
 0x151   :  { %v1031_v9 = vpop.eup %1030  ;;  %v293_v10 = vadd.f32 %v1361_v51, %v270_v26  ;;  %v249_v13 = vmul.f32 %v1029_v6, %v1287_v21 }
 0x152   :  { %v294_v17 = vadd.f32 %v1361_v51, %v271_v7  ;;  %v250_v14 = vmul.f32 %v1031_v9, %v1296_v48 }
 0x153   :  { %882 = vmatmul.mubr.msk.f32.gmra.mrb[10].mxu0 %vm42_vm0, %v293_v10  ;;  %v272_v38 = vmul.f32 %v1355_v43, %v249_v13 }
 0x154   :  { %v1033_v44 = vpop.eup %1032  ;;  %884 = vmatprep.mubr.msk.f32.mxu0 %vm42_vm0, %v294_v17  ;;  %v273_v15 = vmul.f32 %v1355_v43, %v250_v14 }
 0x155   :  { %v295_v18 = vadd.f32 %v1361_v51, %v272_v38  ;;  %v251_v37 = vmul.f32 %v1033_v44, %v1299_v25  ;;  %v589_v25 = vld [vmem:[%s1627_s5 + $0x38] sm:$0xff] }
 0x156   :  { %v296_v19 = vadd.f32 %v1361_v51, %v273_v15  ;;  %v966_v23 = vpack.c.bf16 %v589_v25, %v588_v22 }
 0x157   :  { %885 = vmatmul.mubr.msk.f32.gmra.mrb[12].mxu0 %vm42_vm0, %v295_v18  ;;  %v274_v21 = vmul.f32 %v1355_v43, %v251_v37  ;;  %v590_v43 = vld [vmem:[%s1627_s5 + $0x40] sm:$0xff] }
 0x158   :  { %887 = vmatprep.mubr.msk.f32.mxu0 %vm42_vm0, %v296_v19  ;;  %967 = vmatprep.subr.bf16.mxu0 %v966_v23 }
 0x159   :  { %v297_v48 = vadd.f32 %v1361_v51, %v274_v21  ;;  %989 = vmatprep.subr.bf16.mxu1 %v966_v23  ;;  %969 = vmatpush3.bf16.msra.mxu0 %v966_v23  ;;  %v591_v51 = vld [vmem:[%s1627_s5 + $0x48] sm:$0xff] }
 0x15a   :  { %997 = vmatpush3.bf16.msra.mxu1 %v966_v23  ;;  %v970_v16 = vpack.c.bf16 %v591_v51, %v590_v43 }
 0x15b   :  { %888 = vmatmul.mubr.msk.f32.gmra.mrb[14].mxu0 %vm42_vm0, %v297_v48 }
 0x15c   :  { %971 = vmatprep.subr.bf16.mxu0 %v970_v16  ;;  %990 = vmatprep.subr.bf16.mxu1 %v970_v16 }
 0x15d   :  { %973 = vmatpush3.bf16.msra.mxu0 %v970_v16 }
 0x15e   :  { %998 = vmatpush3.bf16.msra.mxu1 %v970_v16  ;;  %975 = vmatprep.subr.bf16.mxu0 %v974_v45 }
 0x15f   :  { %991 = vmatprep.subr.bf16.mxu1 %v974_v45 }
 0x161   :  { %977 = vmatpush3.bf16.msra.mxu0 %v974_v45 }
 0x162   :  { %999 = vmatpush3.bf16.msra.mxu1 %v974_v45  ;;  %979 = vmatprep.subr.bf16.mxu0 %v978_v33 }
 0x163   :  { %992 = vmatprep.subr.bf16.mxu1 %v978_v33 }
 0x165   :  { %981 = vmatpush3.bf16.msra.mxu0 %v978_v33 }
 0x166   :  { %1000 = vmatpush3.bf16.msra.mxu1 %v978_v33  ;;  %983 = vmatprep.subr.bf16.mxu0 %v982_v54 }
 0x167   :  { %993 = vmatprep.subr.bf16.mxu1 %v982_v54 }
 0x169   :  { %985 = vmatpush3.bf16.msra.mxu0 %v982_v54 }
 0x16a   :  { %1001 = vmatpush3.bf16.msra.mxu1 %v982_v54 }
 0x212   :  { %v868_v39 = vpop.f32.mrb[0].mxu0 }
 0x213   :  { %v429_v3 = vadd.f32 %v868_v39, %v1464_v20  ;;  %v423_v40 = vpop.f32.mrb[1].mxu0 }
 0x214   :  { %v424_v41 = vadd.f32 %v1464_v20, %v423_v40 }
 0x215   :  { %v519_v42 = vmul.f32 0.70710677, %v429_v3  ;;  %v503_v6 = vmul.f32 0.5, %v429_v3 }
 0x216   :  { %v518_v46 = vmul.f32 0.70710677, %v424_v41  ;;  %v871_v47 = vpop.f32.mrb[2].mxu0  ;;  %v502_v63 = vmul.f32 0.5, %v424_v41 }
 0x217   :  { %1034 = verf.f32 %v519_v42  ;;  %v439_v55 = vadd.f32 %v871_v47, %v1464_v20  ;;  %v433_v24 = vpop.f32.mrb[3].mxu0 }
 0x218   :  { %1036 = verf.f32 %v518_v46  ;;  %v434_v0 = vadd.f32 %v1464_v20, %v433_v24 }
 0x219   :  { %v521_v49 = vmul.f32 0.70710677, %v439_v55  ;;  %v505_v48 = vmul.f32 0.5, %v439_v55 }
 0x21a   :  { %v520_v50 = vmul.f32 0.70710677, %v434_v0  ;;  %v874_v52 = vpop.f32.mrb[4].mxu0  ;;  %v504_v18 = vmul.f32 0.5, %v434_v0 }
 0x21b   :  { %1038 = verf.f32 %v521_v49  ;;  %v449_v53 = vadd.f32 %v874_v52, %v1464_v20  ;;  %v443_v5 = vpop.f32.mrb[5].mxu0 }
 0x21c   :  { %1040 = verf.f32 %v520_v50  ;;  %v444_v28 = vadd.f32 %v1464_v20, %v443_v5 }
 0x21d   :  { %v523_v29 = vmul.f32 0.70710677, %v449_v53  ;;  %v507_v35 = vmul.f32 0.5, %v449_v53 }
 0x21e   :  { %v522_v56 = vmul.f32 0.70710677, %v444_v28  ;;  %v877_v1 = vpop.f32.mrb[6].mxu0  ;;  %v506_v31 = vmul.f32 0.5, %v444_v28 }
 0x21f   :  { %1042 = verf.f32 %v523_v29  ;;  %v1473_v57 = vadd.f32 %v877_v1, %v1464_v20  ;;  %v453_v58 = vpop.f32.mrb[7].mxu0 }
 0x220   :  { %1044 = verf.f32 %v522_v56  ;;  %v454_v11 = vadd.f32 %v1464_v20, %v453_v58 }
 0x221   :  { %v1035_v59 = vpop.eup %1034  ;;  %v525_v36 = vmul.f32 0.70710677, %v1473_v57  ;;  %v509_v52 = vmul.f32 0.5, %v1473_v57 }
 0x222   :  { %v1037_v60 = vpop.eup %1036  ;;  %v551_v61 = vadd.f32 1.0, %v1035_v59  ;;  %v524_v8 = vmul.f32 0.70710677, %v454_v11  ;;  %v880_v62 = vpop.f32.mrb[8].mxu0  ;;  %v508_v49 = vmul.f32 0.5, %v454_v11 }
 0x223   :  { %v550_v12 = vadd.f32 1.0, %v1037_v60  ;;  %1046 = verf.f32 %v525_v36  ;;  %v1478_v4 = vadd.f32 %v880_v62, %v1464_v20  ;;  %v463_v26 = vpop.f32.mrb[9].mxu0 }
 0x224   :  { %1048 = verf.f32 %v524_v8  ;;  %v464_v7 = vadd.f32 %v1464_v20, %v463_v26  ;;  %v567_v14 = vmul.f32 %v551_v61, %v503_v6 }
 0x225   :  { %v1039_v9 = vpop.eup %1038  ;;  %v527_v10 = vmul.f32 0.70710677, %v1478_v4  ;;  %v566_v13 = vmul.f32 %v550_v12, %v502_v63  ;;  %v511_v11 = vmul.f32 0.5, %v1478_v4 }
 0x226   :  { %v1041_v17 = vpop.eup %1040  ;;  %v553_v38 = vadd.f32 1.0, %v1039_v9  ;;  %v526_v44 = vmul.f32 0.70710677, %v464_v7  ;;  %v883_v15 = vpop.f32.mrb[10].mxu0  ;;  %v510_v36 = vmul.f32 0.5, %v464_v7 }
 0x227   :  { %v552_v37 = vadd.f32 1.0, %v1041_v17  ;;  %1050 = verf.f32 %v527_v10  ;;  %v1483_v19 = vadd.f32 %v883_v15, %v1464_v20  ;;  %v473_v21 = vpop.f32.mrb[11].mxu0  ;;  %922 = vmatprep.mubr.f32.mxu0 %v566_v13 }
 0x228   :  { %1052 = verf.f32 %v526_v44  ;;  %v474_v22 = vadd.f32 %v1464_v20, %v473_v21  ;;  %923 = vmatmul.mubr.f32.vlgmr.msra.gmra.mrb[16].mxu0 %v567_v14  ;;  %v569_v45 = vmul.f32 %v553_v38, %v505_v48 }
 0x229   :  { %v1043_v25 = vpop.eup %1042  ;;  %v529_v23 = vmul.f32 0.70710677, %v1483_v19  ;;  %v568_v43 = vmul.f32 %v552_v37, %v504_v18  ;;  %v513_v26 = vmul.f32 0.5, %v1483_v19 }
 0x22a   :  { %v1045_v51 = vpop.eup %1044  ;;  %v555_v16 = vadd.f32 1.0, %v1043_v25  ;;  %v528_v27 = vmul.f32 0.70710677, %v474_v22  ;;  %v886_v30 = vpop.f32.mrb[12].mxu0  ;;  %v512_v63 = vmul.f32 0.5, %v474_v22 }
 0x22b   :  { %v554_v32 = vadd.f32 1.0, %v1045_v51  ;;  %1054 = verf.f32 %v529_v23  ;;  %v489_v33 = vadd.f32 %v886_v30, %v1464_v20  ;;  %v483_v34 = vpop.f32.mrb[13].mxu0  ;;  %925 = vmatprep.mubr.f32.mxu0 %v568_v43  ;;  %v1497_v23 = vld [vmem:[%s1631_s6] ss:$0 sm:$0xff] }
 0x22c   :  { %1056 = verf.f32 %v528_v27  ;;  %v484_v54 = vadd.f32 %v1464_v20, %v483_v34  ;;  %926 = vmatmul.mubr.f32.gmra.mrb[18].mxu0 %v569_v45  ;;  %v571_v55 = vmul.f32 %v555_v16, %v507_v35  ;;  %v1066_v45 = vld [vmem:[%s1625_s0] sm:$0xff]  ;;  %v1067_v35 = vld [vmem:[%s1625_s0 + $0x18] sm:$0xff] }
 0x22d   :  { %v1047_v39 = vpop.eup %1046  ;;  %v531_v3 = vmul.f32 0.70710677, %v489_v33  ;;  %v570_v40 = vmul.f32 %v554_v32, %v506_v31  ;;  %v515_v14 = vmul.f32 0.5, %v489_v33 }
 0x22e   :  { %v1049_v41 = vpop.eup %1048  ;;  %v557_v42 = vadd.f32 1.0, %v1047_v39  ;;  %v530_v46 = vmul.f32 0.70710677, %v484_v54  ;;  %v889_v47 = vpop.f32.mrb[14].mxu0  ;;  %v514_v17 = vmul.f32 0.5, %v484_v54  ;;  %v1068_v39 = vld [vmem:[%s1625_s0 + $0x10] sm:$0xff] }
 0x22f   :  { %1058 = verf.f32 %v531_v3  ;;  %v499_v24 = vadd.f32 %v889_v47, %v1464_v20  ;;  %v493_v0 = vpop.f32.mrb[15].mxu0  ;;  %928 = vmatprep.mubr.f32.mxu0 %v570_v40  ;;  %v556_v50 = vadd.f32 1.0, %v1049_v41  ;;  %v1069_v47 = vld [vmem:[%s1625_s0 + $0x28] sm:$0xff] }
 0x230   :  { %1060 = verf.f32 %v530_v46  ;;  %v494_v53 = vadd.f32 %v1464_v20, %v493_v0  ;;  %929 = vmatmul.mubr.f32.gmra.mrb[20].mxu0 %v571_v55  ;;  %v573_v59 = vmul.f32 %v557_v42, %v509_v52 }
 0x231   :  { %v1051_v5 = vpop.eup %1050  ;;  %v533_v28 = vmul.f32 0.70710677, %v499_v24  ;;  %v572_v29 = vmul.f32 %v556_v50, %v508_v49  ;;  %v517_v19 = vmul.f32 0.5, %v499_v24  ;;  %v1070_v24 = vld [vmem:[%s1625_s0 + $0x20] sm:$0xff] }
 0x232   :  { %v1053_v56 = vpop.eup %1052  ;;  %v559_v1 = vadd.f32 1.0, %v1051_v5  ;;  %v532_v58 = vmul.f32 0.70710677, %v494_v53  ;;  %v516_v21 = vmul.f32 0.5, %v494_v53  ;;  %v1071_v5 = vld [vmem:[%s1625_s0 + $0x38] sm:$0xff] }
 0x233   :  { %v558_v60 = vadd.f32 1.0, %v1053_v56  ;;  %1062 = verf.f32 %v533_v28  ;;  %931 = vmatprep.mubr.f32.mxu1 %v572_v29  ;;  %v1072_v29 = vld [vmem:[%s1625_s0 + $0x30] sm:$0xff] }
 0x234   :  { %1064 = verf.f32 %v532_v58  ;;  %932 = vmatmul.mubr.f32.vlgmr.msra.gmra.mrb[0].mxu1 %v573_v59  ;;  %v575_v62 = vmul.f32 %v559_v1, %v511_v11 }
 0x235   :  { %v1055_v57 = vpop.eup %1054  ;;  %v574_v61 = vmul.f32 %v558_v60, %v510_v36  ;;  %v1073_v60 = vld [vmem:[%s1625_s0 + $0x48] sm:$0xff] }
 0x236   :  { %v1057_v8 = vpop.eup %1056  ;;  %v561_v20 = vadd.f32 1.0, %v1055_v57  ;;  %v1074_v57 = vld [vmem:[%s1625_s0 + $0x40] sm:$0xff] }
 0x237   :  { %v560_v12 = vadd.f32 1.0, %v1057_v8  ;;  %934 = vmatprep.mubr.f32.mxu1 %v574_v61 }
 0x238   :  { %935 = vmatmul.mubr.f32.gmra.mrb[2].mxu1 %v575_v62  ;;  %v577_v13 = vmul.f32 %v561_v20, %v513_v26 }
 0x239   :  { %v1059_v6 = vpop.eup %1058  ;;  %v576_v7 = vmul.f32 %v560_v12, %v512_v63  ;;  %v1075_v12 = vld [vmem:[%s1625_s0 + $0x58] sm:$0xff] }
 0x23a   :  { %v1061_v9 = vpop.eup %1060  ;;  %v563_v10 = vadd.f32 1.0, %v1059_v6  ;;  %v1076_v6 = vld [vmem:[%s1625_s0 + $0x50] sm:$0xff] }
 0x23b   :  { %v562_v4 = vadd.f32 1.0, %v1061_v9  ;;  %937 = vmatprep.mubr.f32.mxu1 %v576_v7 }
 0x23c   :  { %938 = vmatmul.mubr.f32.gmra.mrb[4].mxu1 %v577_v13  ;;  %v579_v37 = vmul.f32 %v563_v10, %v515_v14 }
 0x23d   :  { %v1063_v38 = vpop.eup %1062  ;;  %v578_v44 = vmul.f32 %v562_v4, %v514_v17  ;;  %v1077_v4 = vld [vmem:[%s1625_s0 + $0x68] sm:$0xff] }
 0x23e   :  { %v1065_v15 = vpop.eup %1064  ;;  %v565_v18 = vadd.f32 1.0, %v1063_v38  ;;  %v1078_v38 = vld [vmem:[%s1625_s0 + $0x60] sm:$0xff] }
 0x23f   :  { %v564_v48 = vadd.f32 1.0, %v1065_v15  ;;  %940 = vmatprep.mubr.f32.mxu1 %v578_v44 }
 0x240   :  { %941 = vmatmul.mubr.f32.gmra.mrb[6].mxu1 %v579_v37  ;;  %v581_v25 = vmul.f32 %v565_v18, %v517_v19 }
 0x241   :  { %v580_v22 = vmul.f32 %v564_v48, %v516_v21  ;;  %v1079_v48 = vld [vmem:[%s1625_s0 + $0x78] sm:$0xff] }
 0x243   :  { %943 = vmatprep.mubr.f32.mxu1 %v580_v22  ;;  %v1080_v22 = vld [vmem:[%s1625_s0 + $0x70] sm:$0xff] }
 0x244   :  { %944 = vmatmul.mubr.f32.gmra.mrb[8].mxu1 %v581_v25 }
 0x2fb   :  { %v924_v43 = vpop.f32.mrb[16].mxu0 }
 0x2fc   :  { %v677_v51 = vadd.f32 %v924_v43, %v1497_v23  ;;  %v671_v16 = vpop.f32.mrb[17].mxu0 }
 0x2fd   :  { %v672_v27 = vadd.f32 %v1497_v23, %v671_v16 }
 0x2fe   :  { %v751_v30 = vadd.f32 %v677_v51, %v1130_v2 }
 0x2ff   :  { %v750_v31 = vadd.f32 %v1066_v45, %v672_v27  ;;  %v927_v32 = vpop.f32.mrb[18].mxu0 }
 0x300   :  { %767 = vst.msk [vmem:[%s1632_s7 + $0x8] sm:$0xff] %vm42_vm0, %v751_v30  ;;  %v687_v33 = vadd.f32 %v927_v32, %v1497_v23  ;;  %v681_v34 = vpop.f32.mrb[19].mxu0 }
 0x301   :  { %766 = vst.msk [vmem:[%s1632_s7] sm:$0xff] %vm42_vm0, %v750_v31  ;;  %v682_v2 = vadd.f32 %v1497_v23, %v681_v34 }
 0x302   :  { %v753_v54 = vadd.f32 %v1067_v35, %v687_v33 }
 0x303   :  { %v752_v3 = vadd.f32 %v1068_v39, %v682_v2  ;;  %v930_v40 = vpop.f32.mrb[20].mxu0 }
 0x304   :  { %769 = vst.msk [vmem:[%s1632_s7 + $0x18] sm:$0xff] %vm42_vm0, %v753_v54  ;;  %v697_v41 = vadd.f32 %v930_v40, %v1497_v23  ;;  %v691_v42 = vpop.f32.mrb[21].mxu0 }
 0x305   :  { %768 = vst.msk [vmem:[%s1632_s7 + $0x10] sm:$0xff] %vm42_vm0, %v752_v3  ;;  %v692_v46 = vadd.f32 %v1497_v23, %v691_v42 }
 0x306   :  { %v755_v55 = vadd.f32 %v1069_v47, %v697_v41 }
 0x307   :  { %v754_v0 = vadd.f32 %v1070_v24, %v692_v46  ;;  %v933_v49 = vpop.f32.mrb[0].mxu1 }
 0x308   :  { %771 = vst.msk [vmem:[%s1632_s7 + $0x28] sm:$0xff] %vm42_vm0, %v755_v55  ;;  %v707_v50 = vadd.f32 %v933_v49, %v1497_v23  ;;  %v701_v52 = vpop.f32.mrb[1].mxu1 }
 0x309   :  { %770 = vst.msk [vmem:[%s1632_s7 + $0x20] sm:$0xff] %vm42_vm0, %v754_v0  ;;  %v702_v53 = vadd.f32 %v1497_v23, %v701_v52 }
 0x30a   :  { %v757_v28 = vadd.f32 %v1071_v5, %v707_v50 }
 0x30b   :  { %v756_v56 = vadd.f32 %v1072_v29, %v702_v53  ;;  %v936_v1 = vpop.f32.mrb[2].mxu1 }
 0x30c   :  { %773 = vst.msk [vmem:[%s1632_s7 + $0x38] sm:$0xff] %vm42_vm0, %v757_v28  ;;  %v717_v58 = vadd.f32 %v936_v1, %v1497_v23  ;;  %v711_v59 = vpop.f32.mrb[3].mxu1 }
 0x30d   :  { %772 = vst.msk [vmem:[%s1632_s7 + $0x30] sm:$0xff] %vm42_vm0, %v756_v56  ;;  %v712_v36 = vadd.f32 %v1497_v23, %v711_v59 }
 0x30e   :  { %v759_v11 = vadd.f32 %v1073_v60, %v717_v58 }
 0x30f   :  { %v758_v61 = vadd.f32 %v1074_v57, %v712_v36  ;;  %v939_v8 = vpop.f32.mrb[4].mxu1 }
 0x310   :  { %775 = vst.msk [vmem:[%s1632_s7 + $0x48] sm:$0xff] %vm42_vm0, %v759_v11  ;;  %v727_v20 = vadd.f32 %v939_v8, %v1497_v23  ;;  %v721_v62 = vpop.f32.mrb[5].mxu1 }
 0x311   :  { %774 = vst.msk [vmem:[%s1632_s7 + $0x40] sm:$0xff] %vm42_vm0, %v758_v61  ;;  %v722_v63 = vadd.f32 %v1497_v23, %v721_v62 }
 0x312   :  { %v761_v26 = vadd.f32 %v1075_v12, %v727_v20 }
 0x313   :  { %v760_v7 = vadd.f32 %v1076_v6, %v722_v63  ;;  %v942_v9 = vpop.f32.mrb[6].mxu1 }
 0x314   :  { %777 = vst.msk [vmem:[%s1632_s7 + $0x58] sm:$0xff] %vm42_vm0, %v761_v26  ;;  %v737_v10 = vadd.f32 %v942_v9, %v1497_v23  ;;  %v731_v13 = vpop.f32.mrb[7].mxu1 }
 0x315   :  { %776 = vst.msk [vmem:[%s1632_s7 + $0x50] sm:$0xff] %vm42_vm0, %v760_v7  ;;  %v732_v17 = vadd.f32 %v1497_v23, %v731_v13 }
 0x316   :  { %v763_v14 = vadd.f32 %v1077_v4, %v737_v10 }
 0x317   :  { %v762_v44 = vadd.f32 %v1078_v38, %v732_v17  ;;  %v945_v15 = vpop.f32.mrb[8].mxu1 }
 0x318   :  { %779 = vst.msk [vmem:[%s1632_s7 + $0x68] sm:$0xff] %vm42_vm0, %v763_v14  ;;  %v747_v18 = vadd.f32 %v945_v15, %v1497_v23  ;;  %v741_v37 = vpop.f32.mrb[9].mxu1 }
 0x319   :  { %778 = vst.msk [vmem:[%s1632_s7 + $0x60] sm:$0xff] %vm42_vm0, %v762_v44  ;;  %v742_v21 = vadd.f32 %v1497_v23, %v741_v37 }
 0x31a   :  { %v765_v19 = vadd.f32 %v1079_v48, %v747_v18 }
 0x31b   :  { %v764_v25 = vadd.f32 %v1080_v22, %v742_v21 }
 0x31c   :  { %781 = vst.msk [vmem:[%s1632_s7 + $0x78] sm:$0xff] %vm42_vm0, %v765_v19 }
 0x31d   :  { %780 = vst.msk [vmem:[%s1632_s7 + $0x70] sm:$0xff] %vm42_vm0, %v764_v25 }

// kernel: _lambda_.9
= control target key start
LH: loop header
LB: loop body
LE: loop exit
PB: predicated region body
PF: predicated region fallthrough
CT: control target
= control target key end

     0   :  { %vm51_vm0 = vcmask 261120   ;;  %s1813_s0 = inlined_call_operand.vmem [shape: f32[128,32], index: 0, kind: input, shape index: {}]   ;;  %s1814_s3 = inlined_call_operand.vmem [shape: f32[32,32], index: 3, kind: input, shape index: {}]   ;;  %s1815_s4 = inlined_call_operand.vmem [shape: f32[32,32], index: 4, kind: input, shape index: {}]   ;;  %s1816_s5 = inlined_call_operand.vmem [shape: f32[32,32], index: 5, kind: input, shape index: {}]   ;;  %s1817_s1 = inlined_call_operand.vmem [shape: f32[1,32], index: 1, kind: input, shape index: {}]   ;;  %s1818_s2 = inlined_call_operand.vmem [shape: f32[1,32], index: 2, kind: input, shape index: {}]   ;;  %s1819_s6 = inlined_call_operand.vmem [shape: f32[1,32], index: 6, kind: input, shape index: {}]   ;;  %s1820_s9 = inlined_call_operand.vmem [shape: f32[128,32], index: 9, kind: output, shape index: {0}]   ;;  %s1821_s8 = inlined_call_operand.vmem [shape: f32[1,32], index: 8, kind: input, shape index: {}]   ;;  %s1822_s7 = inlined_call_operand.vmem [shape: f32[1,32], index: 7, kind: input, shape index: {}]   ;;  %s1823_s11 = inlined_call_operand.vmem [shape: f32[128,32], index: 11, kind: output, shape index: {2}]   ;;  %s1824_s10 = inlined_call_operand.vmem [shape: f32[128,32], index: 10, kind: output, shape index: {1}]  }
   0x1   :  { %v35_v0 = vld [vmem:[%s1813_s0] sm:$0xff]  ;;  %v36_v1 = vld [vmem:[%s1813_s0 + $0x8] sm:$0xff]  ;;  %v37_v8 = vld [vmem:[%s1813_s0 + $0x10] sm:$0xff] }
   0x2   :  { %v43_v2 = vld [vmem:[%s1813_s0 + $0x40] sm:$0xff]  ;;  %v52_v3 = vsel %vm51_vm0, %v35_v0, 0.0  ;;  %v55_v4 = vsel %vm51_vm0, %v36_v1, 0.0  ;;  %v44_v5 = vld [vmem:[%s1813_s0 + $0x48] sm:$0xff]  ;;  %v45_v9 = vld [vmem:[%s1813_s0 + $0x50] sm:$0xff]  ;;  %v58_v10 = vsel %vm51_vm0, %v37_v8, 0.0 }
   0x3   :  { %53 = vadd.xlane.f32.xlu0 %v52_v3  ;;  %56 = vadd.xlane.f32.xlu1 %v55_v4  ;;  %v76_v6 = vsel %vm51_vm0, %v43_v2, 0.0  ;;  %v79_v7 = vsel %vm51_vm0, %v44_v5, 0.0  ;;  %v82_v11 = vsel %vm51_vm0, %v45_v9, 0.0  ;;  %v1239_v12 = vld [vmem:[%s1813_s0 + $0x18] sm:$0xff]  ;;  %v1253_v16 = vld [vmem:[%s1813_s0 + $0x20] sm:$0xff]  ;;  %v1267_v20 = vld [vmem:[%s1813_s0 + $0x28] sm:$0xff] }
   0x4   :  { %v1244_v13 = vld [vmem:[%s1813_s0 + $0x58] sm:$0xff]  ;;  %v61_v14 = vsel %vm51_vm0, %v1239_v12, 0.0  ;;  %v1258_v17 = vld [vmem:[%s1813_s0 + $0x60] sm:$0xff]  ;;  %v64_v18 = vsel %vm51_vm0, %v1253_v16, 0.0  ;;  %v1272_v21 = vld [vmem:[%s1813_s0 + $0x68] sm:$0xff]  ;;  %v67_v22 = vsel %vm51_vm0, %v1267_v20, 0.0 }
   0x5   :  { %v85_v15 = vsel %vm51_vm0, %v1244_v13, 0.0  ;;  %v88_v19 = vsel %vm51_vm0, %v1258_v17, 0.0  ;;  %v91_v23 = vsel %vm51_vm0, %v1272_v21, 0.0  ;;  %v1281_v24 = vld [vmem:[%s1813_s0 + $0x30] sm:$0xff]  ;;  %v1295_v28 = vld [vmem:[%s1813_s0 + $0x38] sm:$0xff] }
   0x6   :  { %v1286_v25 = vld [vmem:[%s1813_s0 + $0x70] sm:$0xff]  ;;  %v70_v26 = vsel %vm51_vm0, %v1281_v24, 0.0  ;;  %v1300_v29 = vld [vmem:[%s1813_s0 + $0x78] sm:$0xff]  ;;  %v73_v30 = vsel %vm51_vm0, %v1295_v28, 0.0 }
   0x7   :  { %77 = vadd.xlane.f32.xlu0 %v76_v6  ;;  %80 = vadd.xlane.f32.xlu1 %v79_v7  ;;  %v94_v27 = vsel %vm51_vm0, %v1286_v25, 0.0  ;;  %v97_v31 = vsel %vm51_vm0, %v1300_v29, 0.0 }
   0xb   :  { %59 = vadd.xlane.f32.xlu0 %v58_v10  ;;  %83 = vadd.xlane.f32.xlu1 %v82_v11 }
   0xf   :  { %62 = vadd.xlane.f32.xlu0 %v61_v14  ;;  %86 = vadd.xlane.f32.xlu1 %v85_v15 }
  0x13   :  { %65 = vadd.xlane.f32.xlu0 %v64_v18  ;;  %89 = vadd.xlane.f32.xlu1 %v88_v19 }
  0x17   :  { %68 = vadd.xlane.f32.xlu0 %v67_v22  ;;  %92 = vadd.xlane.f32.xlu1 %v91_v23 }
  0x1b   :  { %71 = vadd.xlane.f32.xlu0 %v70_v26  ;;  %95 = vadd.xlane.f32.xlu1 %v94_v27 }
  0x1f   :  { %74 = vadd.xlane.f32.xlu0 %v73_v30  ;;  %98 = vadd.xlane.f32.xlu1 %v97_v31 }
  0x90   :  { %v54_v32 = vpop.xlane.xlu0 %53  ;;  %v57_v33 = vpop.xlane.xlu1 %56 }
  0x91   :  { %v101_v34 = vmul.f32 0.03125, %v54_v32  ;;  %v102_v35 = vmul.f32 0.03125, %v57_v33 }
  0x93   :  { %v1306_v36 = vsub.f32 %v35_v0, %v101_v34  ;;  %v1308_v37 = vsub.f32 %v36_v1, %v102_v35 }
  0x94   :  { %v78_v38 = vpop.xlane.xlu0 %77  ;;  %v81_v39 = vpop.xlane.xlu1 %80 }
  0x95   :  { %v109_v40 = vmul.f32 0.03125, %v78_v38  ;;  %v110_v41 = vmul.f32 0.03125, %v81_v39  ;;  %v133_v42 = vmul.f32 %v1306_v36, %v1306_v36  ;;  %v134_v43 = vmul.f32 %v1308_v37, %v1308_v37 }
  0x97   :  { %v1314_v44 = vsub.f32 %v43_v2, %v109_v40  ;;  %v1316_v45 = vsub.f32 %v44_v5, %v110_v41  ;;  %v149_v46 = vsel %vm51_vm0, %v133_v42, 0.0  ;;  %v152_v49 = vsel %vm51_vm0, %v134_v43, 0.0 }
  0x98   :  { %150 = vadd.xlane.f32.xlu0 %v149_v46  ;;  %v60_v47 = vpop.xlane.xlu0 %59  ;;  %v84_v48 = vpop.xlane.xlu1 %83 }
  0x99   :  { %v103_v50 = vmul.f32 0.03125, %v60_v47  ;;  %v111_v51 = vmul.f32 0.03125, %v84_v48  ;;  %v141_v52 = vmul.f32 %v1314_v44, %v1314_v44  ;;  %v142_v53 = vmul.f32 %v1316_v45, %v1316_v45 }
  0x9b   :  { %v1324_v54 = vsub.f32 %v37_v8, %v103_v50  ;;  %v1326_v55 = vsub.f32 %v45_v9, %v111_v51  ;;  %v173_v56 = vsel %vm51_vm0, %v141_v52, 0.0  ;;  %v176_v59 = vsel %vm51_vm0, %v142_v53, 0.0  ;;  %v308_v53 = vld [vmem:[%s1814_s3 + $0x8] sm:$0xff] }
  0x9c   :  { %153 = vadd.xlane.f32.xlu0 %v152_v49  ;;  %174 = vadd.xlane.f32.xlu1 %v173_v56  ;;  %v63_v57 = vpop.xlane.xlu0 %62  ;;  %v87_v58 = vpop.xlane.xlu1 %86 }
  0x9d   :  { %v104_v60 = vmul.f32 0.03125, %v63_v57  ;;  %v112_v61 = vmul.f32 0.03125, %v87_v58  ;;  %v135_v62 = vmul.f32 %v1324_v54, %v1324_v54  ;;  %v143_v63 = vmul.f32 %v1326_v55, %v1326_v55  ;;  %v309_v57 = vld [vmem:[%s1814_s3 + $0x10] sm:$0xff]  ;;  %v310_v58 = vld [vmem:[%s1814_s3 + $0x18] sm:$0xff] }
  0x9f   :  { %v1335_v0 = vsub.f32 %v1239_v12, %v104_v60  ;;  %v1338_v1 = vsub.f32 %v1244_v13, %v112_v61  ;;  %v155_v2 = vsel %vm51_vm0, %v135_v62, 0.0  ;;  %v179_v5 = vsel %vm51_vm0, %v143_v63, 0.0  ;;  %v511_v60 = vld [vmem:[%s1815_s4] sm:$0xff]  ;;  %v512_v61 = vld [vmem:[%s1815_s4 + $0x8] sm:$0xff] }
  0xa0   :  { %177 = vadd.xlane.f32.xlu1 %v176_v59  ;;  %156 = vadd.xlane.f32.xlu0 %v155_v2  ;;  %v66_v3 = vpop.xlane.xlu0 %65  ;;  %v90_v4 = vpop.xlane.xlu1 %89  ;;  %v1096_v59 = vpack.c.bf16 %v310_v58, %v309_v57  ;;  %v667_v62 = vld [vmem:[%s1816_s5] sm:$0xff]  ;;  %v1417_v63 = vpack.c.bf16 %v512_v61, %v511_v60  ;;  %v668_v2 = vld [vmem:[%s1816_s5 + $0x8] sm:$0xff]  ;;  %v669_v58 = vld [vmem:[%s1816_s5 + $0x10] sm:$0xff] }
  0xa1   :  { %v105_v6 = vmul.f32 0.03125, %v66_v3  ;;  %v113_v7 = vmul.f32 0.03125, %v90_v4  ;;  %v136_v8 = vmul.f32 %v1335_v0, %v1335_v0  ;;  %v144_v9 = vmul.f32 %v1338_v1, %v1338_v1 }
  0xa2   :  { %v1422_v3 = vpack.c.bf16 %v668_v2, %v667_v62 }
  0xa3   :  { %v1347_v10 = vsub.f32 %v1253_v16, %v105_v6  ;;  %v1350_v11 = vsub.f32 %v1258_v17, %v113_v7  ;;  %v158_v12 = vsel %vm51_vm0, %v136_v8, 0.0  ;;  %v182_v15 = vsel %vm51_vm0, %v144_v9, 0.0 }
  0xa4   :  { %180 = vadd.xlane.f32.xlu1 %v179_v5  ;;  %159 = vadd.xlane.f32.xlu0 %v158_v12  ;;  %v69_v13 = vpop.xlane.xlu0 %68  ;;  %v93_v14 = vpop.xlane.xlu1 %92 }
  0xa5   :  { %v106_v18 = vmul.f32 0.03125, %v69_v13  ;;  %v114_v19 = vmul.f32 0.03125, %v93_v14  ;;  %v137_v22 = vmul.f32 %v1347_v10, %v1347_v10  ;;  %v145_v16 = vmul.f32 %v1350_v11, %v1350_v11 }
  0xa7   :  { %v1359_v23 = vsub.f32 %v1267_v20, %v106_v18  ;;  %v1362_v17 = vsub.f32 %v1272_v21, %v114_v19  ;;  %v161_v26 = vsel %vm51_vm0, %v137_v22, 0.0  ;;  %v185_v31 = vsel %vm51_vm0, %v145_v16, 0.0 }
  0xa8   :  { %183 = vadd.xlane.f32.xlu1 %v182_v15  ;;  %162 = vadd.xlane.f32.xlu0 %v161_v26  ;;  %v72_v27 = vpop.xlane.xlu0 %71  ;;  %v96_v30 = vpop.xlane.xlu1 %95 }
  0xa9   :  { %v107_v32 = vmul.f32 0.03125, %v72_v27  ;;  %v115_v33 = vmul.f32 0.03125, %v96_v30  ;;  %v138_v34 = vmul.f32 %v1359_v23, %v1359_v23  ;;  %v146_v20 = vmul.f32 %v1362_v17, %v1362_v17 }
  0xab   :  { %v1371_v35 = vsub.f32 %v1281_v24, %v107_v32  ;;  %v1374_v21 = vsub.f32 %v1286_v25, %v115_v33  ;;  %v164_v38 = vsel %vm51_vm0, %v138_v34, 0.0  ;;  %v188_v41 = vsel %vm51_vm0, %v146_v20, 0.0 }
  0xac   :  { %186 = vadd.xlane.f32.xlu1 %v185_v31  ;;  %165 = vadd.xlane.f32.xlu0 %v164_v38  ;;  %v75_v39 = vpop.xlane.xlu0 %74  ;;  %v99_v40 = vpop.xlane.xlu1 %98  ;;  %v1429_v38 = vld [vmem:[%s1817_s1] ss:$0 sm:$0xff] }
  0xad   :  { %v108_v42 = vmul.f32 0.03125, %v75_v39  ;;  %v116_v43 = vmul.f32 0.03125, %v99_v40  ;;  %v139_v46 = vmul.f32 %v1371_v35, %v1371_v35  ;;  %v147_v24 = vmul.f32 %v1374_v21, %v1374_v21 }
  0xaf   :  { %v1383_v47 = vsub.f32 %v1295_v28, %v108_v42  ;;  %v1386_v25 = vsub.f32 %v1300_v29, %v116_v43  ;;  %v167_v48 = vsel %vm51_vm0, %v139_v46, 0.0  ;;  %v191_v49 = vsel %vm51_vm0, %v147_v24, 0.0  ;;  %v307_v29 = vld [vmem:[%s1814_s3] sm:$0xff] }
  0xb0   :  { %189 = vadd.xlane.f32.xlu1 %v188_v41  ;;  %168 = vadd.xlane.f32.xlu0 %v167_v48  ;;  %v1092_v56 = vpack.c.bf16 %v308_v53, %v307_v29  ;;  %v1435_v46 = vld [vmem:[%s1818_s2] ss:$0 sm:$0xff] }
  0xb1   :  { %v140_v50 = vmul.f32 %v1383_v47, %v1383_v47  ;;  %v148_v51 = vmul.f32 %v1386_v25, %v1386_v25 }
  0xb2   :  { %1093 = vmatprep.subr.bf16.mxu0 %v1092_v56  ;;  %1116 = vmatprep.subr.bf16.mxu1 %v1092_v56 }
  0xb3   :  { %v170_v52 = vsel %vm51_vm0, %v140_v50, 0.0  ;;  %v194_v28 = vsel %vm51_vm0, %v148_v51, 0.0  ;;  %1095 = vmatpush3.bf16.msra.mxu0 %v1092_v56  ;;  %1118 = vmatpush3.bf16.msra.mxu1 %v1092_v56 }
  0xb4   :  { %192 = vadd.xlane.f32.xlu1 %v191_v49  ;;  %171 = vadd.xlane.f32.xlu0 %v170_v52 }
  0xb5   :  { %1097 = vmatprep.subr.bf16.mxu0 %v1096_v59  ;;  %1117 = vmatprep.subr.bf16.mxu1 %v1096_v59 }
  0xb7   :  { %1099 = vmatpush3.bf16.msra.mxu0 %v1096_v59  ;;  %1119 = vmatpush3.bf16.msra.mxu1 %v1096_v59  ;;  %v670_v59 = vld [vmem:[%s1816_s5 + $0x18] sm:$0xff] }
  0xb8   :  { %195 = vadd.xlane.f32.xlu1 %v194_v28  ;;  %1101 = vmatprep.subr.bf16.mxu1 %v1417_v63 }
  0xb9   :  { %1109 = vmatprep.subr.bf16.mxu0 %v1422_v3 }
 0x125   :  { %v151_v4 = vpop.xlane.xlu0 %150 }
 0x126   :  { %v197_v5 = vmul.f32 0.03125, %v151_v4 }
 0x128   :  { %v213_v6 = vadd.f32 1e-05, %v197_v5 }
 0x129   :  { %v175_v7 = vpop.xlane.xlu1 %174  ;;  %v154_v8 = vpop.xlane.xlu0 %153 }
 0x12a   :  { %1120 = vrsqrt.f32 %v213_v6  ;;  %v205_v9 = vmul.f32 0.03125, %v175_v7  ;;  %v198_v12 = vmul.f32 0.03125, %v154_v8  ;;  %v1112_v8 = vpack.c.bf16 %v670_v59, %v669_v58 }
 0x12c   :  { %v221_v13 = vadd.f32 1e-05, %v205_v9  ;;  %v214_v14 = vadd.f32 1e-05, %v198_v12 }
 0x12d   :  { %v178_v15 = vpop.xlane.xlu1 %177  ;;  %v157_v18 = vpop.xlane.xlu0 %156 }
 0x12e   :  { %1122 = vrsqrt.f32 %v221_v13  ;;  %v206_v19 = vmul.f32 0.03125, %v178_v15  ;;  %v199_v22 = vmul.f32 0.03125, %v157_v18  ;;  %v514_v15 = vld [vmem:[%s1815_s4 + $0x18] sm:$0xff] }
 0x12f   :  { %1124 = vrsqrt.f32 %v214_v14  ;;  %v513_v14 = vld [vmem:[%s1815_s4 + $0x10] sm:$0xff] }
 0x130   :  { %v222_v16 = vadd.f32 1e-05, %v206_v19  ;;  %v215_v26 = vadd.f32 1e-05, %v199_v22 }
 0x131   :  { %v181_v27 = vpop.xlane.xlu1 %180  ;;  %v160_v30 = vpop.xlane.xlu0 %159 }
 0x132   :  { %1126 = vrsqrt.f32 %v222_v16  ;;  %v207_v31 = vmul.f32 0.03125, %v181_v27  ;;  %v200_v32 = vmul.f32 0.03125, %v160_v30 }
 0x133   :  { %1128 = vrsqrt.f32 %v215_v26 }
 0x134   :  { %v1121_v33 = vpop.eup %1120  ;;  %v223_v34 = vadd.f32 1e-05, %v207_v31  ;;  %v216_v20 = vadd.f32 1e-05, %v200_v32 }
 0x135   :  { %v184_v39 = vpop.xlane.xlu1 %183  ;;  %v163_v40 = vpop.xlane.xlu0 %162  ;;  %v245_v41 = vmul.f32 %v1121_v33, %v1306_v36 }
 0x136   :  { %1130 = vrsqrt.f32 %v223_v34  ;;  %v208_v42 = vmul.f32 0.03125, %v184_v39  ;;  %v201_v43 = vmul.f32 0.03125, %v163_v40 }
 0x137   :  { %1132 = vrsqrt.f32 %v216_v20  ;;  %v268_v24 = vmul.f32 %v1429_v38, %v245_v41 }
 0x138   :  { %v1123_v48 = vpop.eup %1122  ;;  %v224_v49 = vadd.f32 1e-05, %v208_v42  ;;  %v217_v50 = vadd.f32 1e-05, %v201_v43 }
 0x139   :  { %v1125_v51 = vpop.eup %1124  ;;  %v187_v52 = vpop.xlane.xlu1 %186  ;;  %v1439_v29 = vadd.f32 %v1435_v46, %v268_v24  ;;  %v253_v36 = vmul.f32 %v1123_v48, %v1314_v44 }
 0x13a   :  { %v166_v28 = vpop.xlane.xlu0 %165  ;;  %1134 = vrsqrt.f32 %v224_v49  ;;  %v209_v53 = vmul.f32 0.03125, %v187_v52  ;;  %v246_v57 = vmul.f32 %v1125_v51, %v1308_v37 }
 0x13b   :  { %v202_v56 = vmul.f32 0.03125, %v166_v28  ;;  %1136 = vrsqrt.f32 %v217_v50  ;;  %1004 = vmatprep.mubr.msk.f32.mxu0 %vm51_vm0, %v1439_v29  ;;  %v276_v60 = vmul.f32 %v1429_v38, %v253_v36 }
 0x13c   :  { %v1127_v44 = vpop.eup %1126  ;;  %v225_v61 = vadd.f32 1e-05, %v209_v53  ;;  %v269_v2 = vmul.f32 %v1429_v38, %v246_v57 }
 0x13d   :  { %v218_v62 = vadd.f32 1e-05, %v202_v56  ;;  %v1129_v37 = vpop.eup %1128  ;;  %v190_v4 = vpop.xlane.xlu1 %189  ;;  %v1454_v6 = vadd.f32 %v1435_v46, %v276_v60  ;;  %v254_v7 = vmul.f32 %v1127_v44, %v1316_v45 }
 0x13e   :  { %v169_v5 = vpop.xlane.xlu0 %168  ;;  %1138 = vrsqrt.f32 %v225_v61  ;;  %v210_v9 = vmul.f32 0.03125, %v190_v4  ;;  %v1458_v13 = vadd.f32 %v1435_v46, %v269_v2  ;;  %v247_v45 = vmul.f32 %v1129_v37, %v1324_v54 }
 0x13f   :  { %v203_v12 = vmul.f32 0.03125, %v169_v5  ;;  %1140 = vrsqrt.f32 %v218_v62  ;;  %1016 = vmatprep.mubr.msk.f32.mxu1 %vm51_vm0, %v1454_v6  ;;  %v277_v18 = vmul.f32 %v1429_v38, %v254_v7  ;;  %v1104_v54 = vpack.c.bf16 %v514_v15, %v513_v14 }
 0x140   :  { %v1131_v19 = vpop.eup %1130  ;;  %v226_v22 = vadd.f32 1e-05, %v210_v9  ;;  %1005 = vmatmul.mubr.msk.f32.vlgmr.msra.gmra.mrb[0].mxu0 %vm51_vm0, %v1458_v13  ;;  %v270_v31 = vmul.f32 %v1429_v38, %v247_v45 }
 0x141   :  { %v219_v16 = vadd.f32 1e-05, %v203_v12  ;;  %v1133_v26 = vpop.eup %1132  ;;  %v193_v27 = vpop.xlane.xlu1 %192  ;;  %v1474_v32 = vadd.f32 %v1435_v46, %v277_v18  ;;  %v255_v33 = vmul.f32 %v1131_v19, %v1326_v55  ;;  %1111 = vmatpush3.bf16.msra.mxu0 %v1422_v3 }
 0x142   :  { %v172_v30 = vpop.xlane.xlu0 %171  ;;  %1142 = vrsqrt.f32 %v226_v22  ;;  %v211_v34 = vmul.f32 0.03125, %v193_v27  ;;  %v248_v39 = vmul.f32 %v1133_v26, %v1335_v0  ;;  %1113 = vmatprep.subr.bf16.mxu0 %v1112_v8  ;;  %v1480_v40 = vadd.f32 %v1435_v46, %v270_v31 }
 0x143   :  { %v204_v20 = vmul.f32 0.03125, %v172_v30  ;;  %1144 = vrsqrt.f32 %v219_v16  ;;  %1017 = vmatmul.mubr.msk.f32.vlgmr.msra.gmra.mrb[0].mxu1 %vm51_vm0, %v1474_v32  ;;  %v278_v41 = vmul.f32 %v1429_v38, %v255_v33 }
 0x144   :  { %v1135_v42 = vpop.eup %1134  ;;  %v227_v55 = vadd.f32 1e-05, %v211_v34  ;;  %v271_v3 = vmul.f32 %v1429_v38, %v248_v39  ;;  %1103 = vmatpush3.bf16.msra.mxu1 %v1417_v63  ;;  %1007 = vmatprep.mubr.msk.f32.mxu0 %vm51_vm0, %v1480_v40 }
 0x145   :  { %v220_v43 = vadd.f32 1e-05, %v204_v20  ;;  %v1137_v24 = vpop.eup %1136  ;;  %v196_v0 = vpop.xlane.xlu1 %195  ;;  %v1490_v48 = vadd.f32 %v1435_v46, %v278_v41  ;;  %v256_v49 = vmul.f32 %v1135_v42, %v1338_v1  ;;  %1105 = vmatprep.subr.bf16.mxu1 %v1104_v54  ;;  %1115 = vmatpush3.bf16.msra.mxu0 %v1112_v8 }
 0x146   :  { %1146 = vrsqrt.f32 %v227_v55  ;;  %v212_v50 = vmul.f32 0.03125, %v196_v0  ;;  %v294_v51 = vadd.f32 %v1435_v46, %v271_v3  ;;  %v249_v52 = vmul.f32 %v1137_v24, %v1347_v10 }
 0x147   :  { %1148 = vrsqrt.f32 %v220_v43  ;;  %1019 = vmatprep.mubr.msk.f32.mxu1 %vm51_vm0, %v1490_v48  ;;  %v279_v63 = vmul.f32 %v1429_v38, %v256_v49 }
 0x148   :  { %v1139_v28 = vpop.eup %1138  ;;  %v228_v36 = vadd.f32 1e-05, %v212_v50  ;;  %1008 = vmatmul.mubr.msk.f32.gmra.mrb[2].mxu0 %vm51_vm0, %v294_v51  ;;  %v272_v1 = vmul.f32 %v1429_v38, %v249_v52  ;;  %1107 = vmatpush3.bf16.msra.mxu1 %v1104_v54 }
 0x149   :  { %v1141_v53 = vpop.eup %1140  ;;  %v302_v56 = vadd.f32 %v1435_v46, %v279_v63  ;;  %v257_v57 = vmul.f32 %v1139_v28, %v1350_v11 }
 0x14a   :  { %1150 = vrsqrt.f32 %v228_v36  ;;  %v295_v10 = vadd.f32 %v1435_v46, %v272_v1  ;;  %v250_v58 = vmul.f32 %v1141_v53, %v1359_v23 }
 0x14b   :  { %1020 = vmatmul.mubr.msk.f32.gmra.mrb[2].mxu1 %vm51_vm0, %v302_v56  ;;  %v280_v59 = vmul.f32 %v1429_v38, %v257_v57  ;;  %v1644_v57 = vld [vmem:[%s1822_s7] ss:$0 sm:$0xff] }
 0x14c   :  { %v1143_v60 = vpop.eup %1142  ;;  %1010 = vmatprep.mubr.msk.f32.mxu0 %vm51_vm0, %v295_v10  ;;  %v273_v44 = vmul.f32 %v1429_v38, %v250_v58 }
 0x14d   :  { %v1145_v61 = vpop.eup %1144  ;;  %v303_v62 = vadd.f32 %v1435_v46, %v280_v59  ;;  %v258_v2 = vmul.f32 %v1143_v60, %v1362_v17 }
 0x14e   :  { %v296_v11 = vadd.f32 %v1435_v46, %v273_v44  ;;  %v251_v37 = vmul.f32 %v1145_v61, %v1371_v35 }
 0x14f   :  { %1022 = vmatprep.mubr.msk.f32.mxu1 %vm51_vm0, %v303_v62  ;;  %v281_v23 = vmul.f32 %v1429_v38, %v258_v2 }
 0x150   :  { %v1147_v4 = vpop.eup %1146  ;;  %1011 = vmatmul.mubr.msk.f32.gmra.mrb[4].mxu0 %vm51_vm0, %v296_v11  ;;  %v274_v5 = vmul.f32 %v1429_v38, %v251_v37 }
 0x151   :  { %v1149_v7 = vpop.eup %1148  ;;  %v304_v8 = vadd.f32 %v1435_v46, %v281_v23  ;;  %v259_v9 = vmul.f32 %v1147_v4, %v1374_v21 }
 0x152   :  { %v297_v17 = vadd.f32 %v1435_v46, %v274_v5  ;;  %v252_v12 = vmul.f32 %v1149_v7, %v1383_v47 }
 0x153   :  { %1023 = vmatmul.mubr.msk.f32.gmra.mrb[4].mxu1 %vm51_vm0, %v304_v8  ;;  %v282_v35 = vmul.f32 %v1429_v38, %v259_v9 }
 0x154   :  { %v1151_v14 = vpop.eup %1150  ;;  %1013 = vmatprep.mubr.msk.f32.mxu0 %vm51_vm0, %v297_v17  ;;  %v275_v15 = vmul.f32 %v1429_v38, %v252_v12 }
 0x155   :  { %v305_v45 = vadd.f32 %v1435_v46, %v282_v35  ;;  %v260_v18 = vmul.f32 %v1151_v14, %v1386_v25  ;;  %v885_v25 = vld [vmem:[%s1819_s6] ss:$0 sm:$0xff] }
 0x156   :  { %v298_v19 = vadd.f32 %v1435_v46, %v275_v15 }
 0x157   :  { %1025 = vmatprep.mubr.msk.f32.mxu1 %vm51_vm0, %v305_v45  ;;  %v283_v21 = vmul.f32 %v1429_v38, %v260_v18 }
 0x158   :  { %1014 = vmatmul.mubr.msk.f32.gmra.mrb[6].mxu0 %vm51_vm0, %v298_v19 }
 0x159   :  { %1068 = vmatprep.mubr.msk.f32.mxu0 %vm51_vm0, %v1439_v29  ;;  %v306_v47 = vadd.f32 %v1435_v46, %v283_v21 }
 0x15b   :  { %1026 = vmatmul.mubr.msk.f32.gmra.mrb[6].mxu1 %vm51_vm0, %v306_v47 }
 0x15c   :  { %1069 = vmatmul.mubr.msk.f32.vlgmr.msra.gmra.mrb[8].mxu0 %vm51_vm0, %v1458_v13  ;;  %1036 = vmatprep.mubr.msk.f32.mxu1 %vm51_vm0, %v1439_v29 }
 0x15d   :  { %1071 = vmatprep.mubr.msk.f32.mxu0 %vm51_vm0, %v1480_v40 }
 0x15f   :  { %1037 = vmatmul.mubr.msk.f32.vlgmr.msra.gmra.mrb[8].mxu1 %vm51_vm0, %v1458_v13 }
 0x160   :  { %1072 = vmatmul.mubr.msk.f32.gmra.mrb[10].mxu0 %vm51_vm0, %v294_v51  ;;  %1039 = vmatprep.mubr.msk.f32.mxu1 %vm51_vm0, %v1480_v40 }
 0x161   :  { %1074 = vmatprep.mubr.msk.f32.mxu0 %vm51_vm0, %v295_v10 }
 0x163   :  { %1040 = vmatmul.mubr.msk.f32.gmra.mrb[10].mxu1 %vm51_vm0, %v294_v51  ;;  %v1630_v51 = vld [vmem:[%s1821_s8] ss:$0 sm:$0xff] }
 0x164   :  { %1075 = vmatmul.mubr.msk.f32.gmra.mrb[12].mxu0 %vm51_vm0, %v296_v11  ;;  %1042 = vmatprep.mubr.msk.f32.mxu1 %vm51_vm0, %v295_v10 }
 0x165   :  { %1077 = vmatprep.mubr.msk.f32.mxu0 %vm51_vm0, %v297_v17 }
 0x167   :  { %1043 = vmatmul.mubr.msk.f32.gmra.mrb[12].mxu1 %vm51_vm0, %v296_v11 }
 0x168   :  { %1078 = vmatmul.mubr.msk.f32.gmra.mrb[14].mxu0 %vm51_vm0, %v298_v19  ;;  %1045 = vmatprep.mubr.msk.f32.mxu1 %vm51_vm0, %v297_v17 }
 0x169   :  { %1080 = vmatprep.mubr.msk.f32.mxu0 %vm51_vm0, %v1454_v6 }
 0x16b   :  { %1046 = vmatmul.mubr.msk.f32.gmra.mrb[14].mxu1 %vm51_vm0, %v298_v19 }
 0x16c   :  { %1081 = vmatmul.mubr.msk.f32.gmra.mrb[16].mxu0 %vm51_vm0, %v1474_v32  ;;  %1048 = vmatprep.mubr.msk.f32.mxu1 %vm51_vm0, %v1454_v6 }
 0x16d   :  { %1083 = vmatprep.mubr.msk.f32.mxu0 %vm51_vm0, %v1490_v48 }
 0x16f   :  { %1049 = vmatmul.mubr.msk.f32.gmra.mrb[16].mxu1 %vm51_vm0, %v1474_v32 }
 0x170   :  { %1084 = vmatmul.mubr.msk.f32.gmra.mrb[18].mxu0 %vm51_vm0, %v302_v56  ;;  %1051 = vmatprep.mubr.msk.f32.mxu1 %vm51_vm0, %v1490_v48 }
 0x171   :  { %1086 = vmatprep.mubr.msk.f32.mxu0 %vm51_vm0, %v303_v62 }
 0x173   :  { %1052 = vmatmul.mubr.msk.f32.gmra.mrb[18].mxu1 %vm51_vm0, %v302_v56 }
 0x174   :  { %1087 = vmatmul.mubr.msk.f32.gmra.mrb[20].mxu0 %vm51_vm0, %v304_v8  ;;  %1054 = vmatprep.mubr.msk.f32.mxu1 %vm51_vm0, %v303_v62 }
 0x175   :  { %1089 = vmatprep.mubr.msk.f32.mxu0 %vm51_vm0, %v305_v45 }
 0x177   :  { %1055 = vmatmul.mubr.msk.f32.gmra.mrb[20].mxu1 %vm51_vm0, %v304_v8 }
 0x178   :  { %1090 = vmatmul.mubr.msk.f32.gmra.mrb[22].mxu0 %vm51_vm0, %v306_v47  ;;  %1057 = vmatprep.mubr.msk.f32.mxu1 %vm51_vm0, %v305_v45 }
 0x17b   :  { %1058 = vmatmul.mubr.msk.f32.gmra.mrb[22].mxu1 %vm51_vm0, %v306_v47 }
 0x213   :  { %v1006_v38 = vpop.f32.mrb[0].mxu0 }
 0x214   :  { %v438_v46 = vadd.f32 %v1006_v38, %v885_v25  ;;  %v432_v29 = vpop.f32.mrb[1].mxu0 }
 0x215   :  { %v433_v6 = vadd.f32 %v885_v25, %v432_v29 }
 0x216   :  { %824 = vst.msk [vmem:[%s1820_s9 + $0x8] sm:$0xff] %vm51_vm0, %v438_v46  ;;  %v1018_v13 = vpop.f32.mrb[0].mxu1 }
 0x217   :  { %823 = vst.msk [vmem:[%s1820_s9] sm:$0xff] %vm51_vm0, %v433_v6  ;;  %v478_v22 = vadd.f32 %v1018_v13, %v885_v25  ;;  %v472_v16 = vpop.f32.mrb[1].mxu1 }
 0x218   :  { %v473_v26 = vadd.f32 %v885_v25, %v472_v16 }
 0x219   :  { %832 = vst.msk [vmem:[%s1820_s9 + $0x48] sm:$0xff] %vm51_vm0, %v478_v22 }
 0x21a   :  { %831 = vst.msk [vmem:[%s1820_s9 + $0x40] sm:$0xff] %vm51_vm0, %v473_v26 }
 0x21b   :  { %v1009_v27 = vpop.f32.mrb[2].mxu0 }
 0x21c   :  { %v448_v30 = vadd.f32 %v1009_v27, %v885_v25  ;;  %v442_v31 = vpop.f32.mrb[3].mxu0 }
 0x21d   :  { %v443_v32 = vadd.f32 %v885_v25, %v442_v31 }
 0x21e   :  { %826 = vst.msk [vmem:[%s1820_s9 + $0x18] sm:$0xff] %vm51_vm0, %v448_v30  ;;  %v1021_v33 = vpop.f32.mrb[2].mxu1 }
 0x21f   :  { %825 = vst.msk [vmem:[%s1820_s9 + $0x10] sm:$0xff] %vm51_vm0, %v443_v32  ;;  %v488_v54 = vadd.f32 %v1021_v33, %v885_v25  ;;  %v482_v34 = vpop.f32.mrb[3].mxu1 }
 0x220   :  { %v483_v20 = vadd.f32 %v885_v25, %v482_v34 }
 0x221   :  { %834 = vst.msk [vmem:[%s1820_s9 + $0x58] sm:$0xff] %vm51_vm0, %v488_v54 }
 0x222   :  { %833 = vst.msk [vmem:[%s1820_s9 + $0x50] sm:$0xff] %vm51_vm0, %v483_v20 }
 0x223   :  { %v1012_v39 = vpop.f32.mrb[4].mxu0 }
 0x224   :  { %v458_v40 = vadd.f32 %v1012_v39, %v885_v25  ;;  %v452_v41 = vpop.f32.mrb[5].mxu0 }
 0x225   :  { %v453_v42 = vadd.f32 %v885_v25, %v452_v41 }
 0x226   :  { %828 = vst.msk [vmem:[%s1820_s9 + $0x28] sm:$0xff] %vm51_vm0, %v458_v40  ;;  %v1024_v55 = vpop.f32.mrb[4].mxu1 }
 0x227   :  { %827 = vst.msk [vmem:[%s1820_s9 + $0x20] sm:$0xff] %vm51_vm0, %v453_v42  ;;  %v498_v43 = vadd.f32 %v1024_v55, %v885_v25  ;;  %v492_v3 = vpop.f32.mrb[5].mxu1 }
 0x228   :  { %v493_v24 = vadd.f32 %v885_v25, %v492_v3 }
 0x229   :  { %836 = vst.msk [vmem:[%s1820_s9 + $0x68] sm:$0xff] %vm51_vm0, %v498_v43 }
 0x22a   :  { %835 = vst.msk [vmem:[%s1820_s9 + $0x60] sm:$0xff] %vm51_vm0, %v493_v24 }
 0x22b   :  { %v1015_v0 = vpop.f32.mrb[6].mxu0 }
 0x22c   :  { %v468_v48 = vadd.f32 %v1015_v0, %v885_v25  ;;  %v462_v49 = vpop.f32.mrb[7].mxu0 }
 0x22d   :  { %v463_v50 = vadd.f32 %v885_v25, %v462_v49 }
 0x22e   :  { %830 = vst.msk [vmem:[%s1820_s9 + $0x38] sm:$0xff] %vm51_vm0, %v468_v48  ;;  %v1027_v52 = vpop.f32.mrb[6].mxu1 }
 0x22f   :  { %829 = vst.msk [vmem:[%s1820_s9 + $0x30] sm:$0xff] %vm51_vm0, %v463_v50  ;;  %v508_v63 = vadd.f32 %v1027_v52, %v885_v25  ;;  %v1070_v28 = vpop.f32.mrb[8].mxu0  ;;  %v502_v36 = vpop.f32.mrb[7].mxu1 }
 0x230   :  { %v750_v1 = vadd.f32 %v1070_v28, %v1630_v51  ;;  %v503_v53 = vadd.f32 %v885_v25, %v502_v36  ;;  %v744_v56 = vpop.f32.mrb[9].mxu0 }
 0x231   :  { %838 = vst.msk [vmem:[%s1820_s9 + $0x78] sm:$0xff] %vm51_vm0, %v508_v63  ;;  %v745_v10 = vadd.f32 %v1630_v51, %v744_v56 }
 0x232   :  { %856 = vst.msk [vmem:[%s1823_s11 + $0x8] sm:$0xff] %vm51_vm0, %v750_v1  ;;  %837 = vst.msk [vmem:[%s1820_s9 + $0x70] sm:$0xff] %vm51_vm0, %v503_v53  ;;  %v1038_v58 = vpop.f32.mrb[8].mxu1 }
 0x233   :  { %855 = vst.msk [vmem:[%s1823_s11] sm:$0xff] %vm51_vm0, %v745_v10  ;;  %v594_v59 = vadd.f32 %v1038_v58, %v1644_v57  ;;  %v1073_v60 = vpop.f32.mrb[10].mxu0  ;;  %v588_v44 = vpop.f32.mrb[9].mxu1 }
 0x234   :  { %v760_v61 = vadd.f32 %v1073_v60, %v1630_v51  ;;  %v589_v62 = vadd.f32 %v1644_v57, %v588_v44  ;;  %v754_v2 = vpop.f32.mrb[11].mxu0 }
 0x235   :  { %840 = vst.msk [vmem:[%s1824_s10 + $0x8] sm:$0xff] %vm51_vm0, %v594_v59  ;;  %v755_v11 = vadd.f32 %v1630_v51, %v754_v2 }
 0x236   :  { %858 = vst.msk [vmem:[%s1823_s11 + $0x18] sm:$0xff] %vm51_vm0, %v760_v61  ;;  %839 = vst.msk [vmem:[%s1824_s10] sm:$0xff] %vm51_vm0, %v589_v62  ;;  %v1041_v37 = vpop.f32.mrb[10].mxu1 }
 0x237   :  { %857 = vst.msk [vmem:[%s1823_s11 + $0x10] sm:$0xff] %vm51_vm0, %v755_v11  ;;  %v604_v23 = vadd.f32 %v1041_v37, %v1644_v57  ;;  %v1076_v4 = vpop.f32.mrb[12].mxu0  ;;  %v598_v5 = vpop.f32.mrb[11].mxu1 }
 0x238   :  { %v770_v7 = vadd.f32 %v1076_v4, %v1630_v51  ;;  %v599_v8 = vadd.f32 %v1644_v57, %v598_v5  ;;  %v764_v9 = vpop.f32.mrb[13].mxu0 }
 0x239   :  { %842 = vst.msk [vmem:[%s1824_s10 + $0x18] sm:$0xff] %vm51_vm0, %v604_v23  ;;  %v765_v17 = vadd.f32 %v1630_v51, %v764_v9 }
 0x23a   :  { %860 = vst.msk [vmem:[%s1823_s11 + $0x28] sm:$0xff] %vm51_vm0, %v770_v7  ;;  %841 = vst.msk [vmem:[%s1824_s10 + $0x10] sm:$0xff] %vm51_vm0, %v599_v8  ;;  %v1044_v12 = vpop.f32.mrb[12].mxu1 }
 0x23b   :  { %859 = vst.msk [vmem:[%s1823_s11 + $0x20] sm:$0xff] %vm51_vm0, %v765_v17  ;;  %v614_v35 = vadd.f32 %v1044_v12, %v1644_v57  ;;  %v1079_v14 = vpop.f32.mrb[14].mxu0  ;;  %v608_v15 = vpop.f32.mrb[13].mxu1 }
 0x23c   :  { %v780_v45 = vadd.f32 %v1079_v14, %v1630_v51  ;;  %v609_v18 = vadd.f32 %v1644_v57, %v608_v15  ;;  %v774_v19 = vpop.f32.mrb[15].mxu0 }
 0x23d   :  { %844 = vst.msk [vmem:[%s1824_s10 + $0x28] sm:$0xff] %vm51_vm0, %v614_v35  ;;  %v775_v21 = vadd.f32 %v1630_v51, %v774_v19 }
 0x23e   :  { %862 = vst.msk [vmem:[%s1823_s11 + $0x38] sm:$0xff] %vm51_vm0, %v780_v45  ;;  %843 = vst.msk [vmem:[%s1824_s10 + $0x20] sm:$0xff] %vm51_vm0, %v609_v18  ;;  %v1047_v47 = vpop.f32.mrb[14].mxu1 }
 0x23f   :  { %861 = vst.msk [vmem:[%s1823_s11 + $0x30] sm:$0xff] %vm51_vm0, %v775_v21  ;;  %v624_v25 = vadd.f32 %v1047_v47, %v1644_v57  ;;  %v1082_v38 = vpop.f32.mrb[16].mxu0  ;;  %v618_v46 = vpop.f32.mrb[15].mxu1 }
 0x240   :  { %v790_v29 = vadd.f32 %v1082_v38, %v1630_v51  ;;  %v619_v6 = vadd.f32 %v1644_v57, %v618_v46  ;;  %v784_v13 = vpop.f32.mrb[17].mxu0 }
 0x241   :  { %846 = vst.msk [vmem:[%s1824_s10 + $0x38] sm:$0xff] %vm51_vm0, %v624_v25  ;;  %v785_v22 = vadd.f32 %v1630_v51, %v784_v13 }
 0x242   :  { %864 = vst.msk [vmem:[%s1823_s11 + $0x48] sm:$0xff] %vm51_vm0, %v790_v29  ;;  %845 = vst.msk [vmem:[%s1824_s10 + $0x30] sm:$0xff] %vm51_vm0, %v619_v6  ;;  %v1050_v16 = vpop.f32.mrb[16].mxu1 }
 0x243   :  { %863 = vst.msk [vmem:[%s1823_s11 + $0x40] sm:$0xff] %vm51_vm0, %v785_v22  ;;  %v634_v26 = vadd.f32 %v1050_v16, %v1644_v57  ;;  %v1085_v27 = vpop.f32.mrb[18].mxu0  ;;  %v628_v30 = vpop.f32.mrb[17].mxu1 }
 0x244   :  { %v800_v31 = vadd.f32 %v1085_v27, %v1630_v51  ;;  %v629_v32 = vadd.f32 %v1644_v57, %v628_v30  ;;  %v794_v33 = vpop.f32.mrb[19].mxu0 }
 0x245   :  { %848 = vst.msk [vmem:[%s1824_s10 + $0x48] sm:$0xff] %vm51_vm0, %v634_v26  ;;  %v795_v54 = vadd.f32 %v1630_v51, %v794_v33 }
 0x246   :  { %866 = vst.msk [vmem:[%s1823_s11 + $0x58] sm:$0xff] %vm51_vm0, %v800_v31  ;;  %847 = vst.msk [vmem:[%s1824_s10 + $0x40] sm:$0xff] %vm51_vm0, %v629_v32  ;;  %v1053_v34 = vpop.f32.mrb[18].mxu1 }
 0x247   :  { %865 = vst.msk [vmem:[%s1823_s11 + $0x50] sm:$0xff] %vm51_vm0, %v795_v54  ;;  %v644_v20 = vadd.f32 %v1053_v34, %v1644_v57  ;;  %v1088_v39 = vpop.f32.mrb[20].mxu0  ;;  %v638_v40 = vpop.f32.mrb[19].mxu1 }
 0x248   :  { %v810_v41 = vadd.f32 %v1088_v39, %v1630_v51  ;;  %v639_v42 = vadd.f32 %v1644_v57, %v638_v40  ;;  %v804_v55 = vpop.f32.mrb[21].mxu0 }
 0x249   :  { %850 = vst.msk [vmem:[%s1824_s10 + $0x58] sm:$0xff] %vm51_vm0, %v644_v20  ;;  %v805_v43 = vadd.f32 %v1630_v51, %v804_v55 }
 0x24a   :  { %868 = vst.msk [vmem:[%s1823_s11 + $0x68] sm:$0xff] %vm51_vm0, %v810_v41  ;;  %849 = vst.msk [vmem:[%s1824_s10 + $0x50] sm:$0xff] %vm51_vm0, %v639_v42  ;;  %v1056_v3 = vpop.f32.mrb[20].mxu1 }
 0x24b   :  { %867 = vst.msk [vmem:[%s1823_s11 + $0x60] sm:$0xff] %vm51_vm0, %v805_v43  ;;  %v654_v24 = vadd.f32 %v1056_v3, %v1644_v57  ;;  %v1091_v0 = vpop.f32.mrb[22].mxu0  ;;  %v648_v48 = vpop.f32.mrb[21].mxu1 }
 0x24c   :  { %v820_v49 = vadd.f32 %v1091_v0, %v1630_v51  ;;  %v649_v50 = vadd.f32 %v1644_v57, %v648_v48  ;;  %v814_v52 = vpop.f32.mrb[23].mxu0 }
 0x24d   :  { %852 = vst.msk [vmem:[%s1824_s10 + $0x68] sm:$0xff] %vm51_vm0, %v654_v24  ;;  %v815_v63 = vadd.f32 %v1630_v51, %v814_v52 }
 0x24e   :  { %870 = vst.msk [vmem:[%s1823_s11 + $0x78] sm:$0xff] %vm51_vm0, %v820_v49  ;;  %851 = vst.msk [vmem:[%s1824_s10 + $0x60] sm:$0xff] %vm51_vm0, %v649_v50  ;;  %v1059_v28 = vpop.f32.mrb[22].mxu1 }
 0x24f   :  { %869 = vst.msk [vmem:[%s1823_s11 + $0x70] sm:$0xff] %vm51_vm0, %v815_v63  ;;  %v664_v36 = vadd.f32 %v1059_v28, %v1644_v57  ;;  %v658_v1 = vpop.f32.mrb[23].mxu1 }
 0x250   :  { %v659_v51 = vadd.f32 %v1644_v57, %v658_v1 }
 0x251   :  { %854 = vst.msk [vmem:[%s1824_s10 + $0x78] sm:$0xff] %vm51_vm0, %v664_v36 }
 0x252   :  { %853 = vst.msk [vmem:[%s1824_s10 + $0x70] sm:$0xff] %vm51_vm0, %v659_v51 }

// kernel: _lambda_.10
= control target key start
LH: loop header
LB: loop body
LE: loop exit
PB: predicated region body
PF: predicated region fallthrough
CT: control target
= control target key end

     0   :  { %s2184_s24 = smov 0   ;;  %s2186_s25 = smov 0   ;;  %s2670_s0 = inlined_call_operand.vmem [shape: f32[2,64,32], index: 0, kind: input, shape index: {}]   ;;  %s2671_s1 = inlined_call_operand.vmem [shape: f32[2,64,32], index: 1, kind: input, shape index: {}]   ;;  %s2672_s2 = inlined_call_operand.vmem [shape: f32[2,64,32], index: 2, kind: input, shape index: {}]   ;;  %s2673_s3 = inlined_call_operand.vmem [shape: f32[2,64,64], index: 3, kind: input, shape index: {}]   ;;  %s2674_s4 = inlined_call_operand.vmem [shape: f32[2,64,32], index: 4, kind: input, shape index: {}]   ;;  %s2675_s5 = inlined_call_operand.vmem [shape: f32[32,32], index: 5, kind: input, shape index: {}]   ;;  %s2676_s6 = inlined_call_operand.vmem [shape: f32[1,32], index: 6, kind: input, shape index: {}]   ;;  %s2677_s7 = inlined_call_operand.vmem [shape: f32[2,64,32], index: 7, kind: output, shape index: {}]  }
   0x1   :  { %s2188_s26 = smov 0  }
   0x2 LB: > { %s29_s27 = sadd.s32 1, %s2136_s25  ;;  %p1601_p0 = scmp.ge.s32.totalorder %s2140_s26, 1  ;;  %s2140_s26 = sphi %s2188_s26, %s17_s26   ;;  %s2136_s25 = sphi %s2186_s25, %s2681_s25   ;;  %s2132_s24 = sphi %s2184_s24, %s2680_s24  }
   0x3   : > { %p31_p1 = scmp.ge.s32.totalorder %s29_s27, 2  ;;  %p306_p2 = scmp.lt.s32.totalorder %s2140_s26, 3 }
   0x5   : > { %s2683_s27 = smov (%p31_p1, %s29_s27), 0  ;;  %p307_p3 = pnand %p1601_p0, %p306_p2 }
   0x6   : > { %p371_p4 = scmp.lt.s32.totalorder (!%p307_p3), %s2132_s24, 1  ;;  %vm448_vm0 = vcmask (!%p307_p3), 130048   ;;  %v440_v22 = vld [vmem:[%s2673_s3] sm:$0xff] (!%p307_p3)  ;;  %v441_v24 = vld [vmem:[%s2673_s3 + $0x8] sm:$0xff] (!%p307_p3)  ;;  %vm602_vm2 = vcmask (!%p307_p3), 523264   ;;  %v443_v27 = vld [vmem:[%s2673_s3 + $0x18] sm:$0xff] (!%p307_p3) }
   0x7   : > { %310 = sbr.rel (%p307_p3) target bundleno = 1812 (0x714), region = 48  ;;  %vm2210_vm1 = vmpackc.low (!%p307_p3), %vm448_vm0, %vm448_vm0  ;;  %v442_v28 = vld [vmem:[%s2673_s3 + $0x10] sm:$0xff] (!%p307_p3)  ;;  %v445_v35 = vld [vmem:[%s2673_s3 + $0x28] sm:$0xff] (!%p307_p3)  ;;  %s2142_s12 = smov (!%p307_p3), 112   ;;  %vm1298_vm3 = vcmask (!%p307_p3), 261120  }
   0x8   : > { %v444_v37 = vld [vmem:[%s2673_s3 + $0x20] sm:$0xff] (!%p307_p3)  ;;  %v447_v44 = vld [vmem:[%s2673_s3 + $0x38] sm:$0xff] (!%p307_p3)  ;;  %v446_v45 = vld [vmem:[%s2673_s3 + $0x30] sm:$0xff] (!%p307_p3)  ;;  %s2143_s18 = smov (!%p307_p3), 16  }
   0xe   : > { %s2685_s24 = smov (!%p371_p4, %s2132_s24), 1 }
   0xf   : > { %s2202_s28 = sshll.u32 %s2685_s24, 6 }
  0x10   : > { %s384_s8 = scalar_lea.vmem %s2671_s1, %s2202_s28  ;;  %s2218_s11 = scalar_lea.vmem %s2670_s0, %s2202_s28 }
  0x11   : > { %v2220_v1 = vld [vmem:[%s384_s8] sm:$0xff]  ;;  %v2222_v2 = vld [vmem:[%s384_s8 + $0x8] sm:$0xff]  ;;  %v2224_v3 = vld [vmem:[%s384_s8 + $0x10] sm:$0xff]  ;;  %s2626_s21 = scalar_lea.vmem %s2674_s4, %s2202_s28  ;;  %s2637_s30 = scalar_lea.vmem %s2677_s7, %s2202_s28 }
  0x12   : > { %v2014_v4 = vpack.i.bf16 %v2222_v2, %v2220_v1  ;;  %v1892_v5 = vpack.c.bf16 %v2222_v2, %v2220_v1  ;;  %v2230_v6 = vld [vmem:[%s384_s8 + $0x18] sm:$0xff]  ;;  %v2235_v8 = vld [vmem:[%s2218_s11] sm:$0xff]  ;;  %v2247_v10 = vld [vmem:[%s384_s8 + $0x28] sm:$0xff] }
  0x13   : > { %v1898_v7 = vpack.c.bf16 %v2230_v6, %v2224_v3  ;;  %1776 = vmatprep.mubr.msk.f32.mxu0 %vm448_vm0, %v2235_v8  ;;  %v2245_v9 = vld [vmem:[%s384_s8 + $0x20] sm:$0xff]  ;;  %v2255_v12 = vld [vmem:[%s384_s8 + $0x30] sm:$0xff]  ;;  %v2257_v13 = vld [vmem:[%s384_s8 + $0x38] sm:$0xff] }
  0x14   : > { %1894 = vmatprep.subr.msk.bf16.mxu0 %vm2210_vm1, %v1892_v5  ;;  %v1904_v11 = vpack.c.bf16 %v2247_v10, %v2245_v9  ;;  %v1910_v14 = vpack.c.bf16 %v2257_v13, %v2255_v12  ;;  %v2268_v15 = vld [vmem:[%s2218_s11 + $0x8] sm:$0xff]  ;;  %v2271_v16 = vld [vmem:[%s2218_s11 + $0x10] sm:$0xff]  ;;  %v2278_v17 = vld [vmem:[%s2218_s11 + $0x18] sm:$0xff] }
  0x15   : > { %1897 = vmatpush3.bf16.xpose.msk.msra.mxu0 %vm2210_vm1, %v1892_v5  ;;  %v2281_v18 = vld [vmem:[%s2218_s11 + $0x20] sm:$0xff]  ;;  %v2288_v19 = vld [vmem:[%s2218_s11 + $0x28] sm:$0xff]  ;;  %v2291_v20 = vld [vmem:[%s2218_s11 + $0x30] sm:$0xff] }
  0x16   : > { %1900 = vmatprep.subr.msk.bf16.mxu0 %vm2210_vm1, %v1898_v7  ;;  %v2298_v21 = vld [vmem:[%s2218_s11 + $0x38] sm:$0xff]  ;;  %s389_s11 = scalar_lea.vmem %s2672_s2, %s2202_s28 }
  0x17   : > { %v2356_v60 = vld [vmem:[%s389_s11] sm:$0xff]  ;;  %v2358_v61 = vld [vmem:[%s389_s11 + $0x8] sm:$0xff]  ;;  %v2360_v62 = vld [vmem:[%s389_s11 + $0x10] sm:$0xff] }
  0x18   : > { %v2034_v63 = vpack.i.bf16 %v2358_v61, %v2356_v60  ;;  %v1916_v5 = vpack.c.bf16 %v2358_v61, %v2356_v60 }
  0x1a   : > { %1917 = vmatprep.subr.bf16.mxu1 %v1916_v5 }
  0x1b   : > { %1919 = vmatpush3.bf16.msra.mxu1 %v1916_v5 }
  0x1d   : > { %1903 = vmatpush3.bf16.xpose.msk.msra.mxu0 %vm2210_vm1, %v1898_v7  ;;  %v2366_v7 = vld [vmem:[%s389_s11 + $0x18] sm:$0xff] }
  0x1e   : > { %1906 = vmatprep.subr.msk.bf16.mxu0 %vm2210_vm1, %v1904_v11 }
  0x25   : > { %1909 = vmatpush3.bf16.xpose.msk.msra.mxu0 %vm2210_vm1, %v1904_v11  ;;  %v1920_v11 = vpack.c.bf16 %v2366_v7, %v2360_v62 }
  0x26   : > { %1912 = vmatprep.subr.msk.bf16.mxu0 %vm2210_vm1, %v1910_v14 }
  0x27   : > { %1921 = vmatprep.subr.bf16.mxu1 %v1920_v11 }
  0x28   : > { %1923 = vmatpush3.bf16.msra.mxu1 %v1920_v11 }
  0x2d   : > { %1915 = vmatpush3.bf16.xpose.msk.msra.mxu0 %vm2210_vm1, %v1910_v14 }
  0x34   : > { %1777 = vmatmul.mubr.msk.f32.vlgmr.msra.gmra.mrb[0].mxu0 %vm448_vm0, %v2268_v15 }
  0x35   : > { %1779 = vmatprep.mubr.msk.f32.mxu0 %vm448_vm0, %v2271_v16 }
  0x38   : > { %1780 = vmatmul.mubr.msk.f32.gmra.mrb[2].mxu0 %vm448_vm0, %v2278_v17 }
  0x39   : > { %1782 = vmatprep.mubr.msk.f32.mxu0 %vm448_vm0, %v2281_v18 }
  0x3c   : > { %1783 = vmatmul.mubr.msk.f32.gmra.mrb[4].mxu0 %vm448_vm0, %v2288_v19 }
  0x3d   : > { %1785 = vmatprep.mubr.msk.f32.mxu0 %vm448_vm0, %v2291_v20 }
  0x40   : > { %1786 = vmatmul.mubr.msk.f32.gmra.mrb[6].mxu0 %vm448_vm0, %v2298_v21 }
 0x107   : > { %v1778_v23 = vpop.f32.mrb[0].mxu0 }
 0x108   : > { %v563_v25 = vpop.f32.mrb[1].mxu0  ;;  %v569_v29 = vadd.f32 %v1778_v23, %v441_v24 }
 0x109   : > { %v564_v26 = vadd.f32 %v563_v25, %v440_v22  ;;  %v2378_v25 = vld [vmem:[%s389_s11 + $0x20] sm:$0xff] }
 0x10a   : > { %v606_v39 = vsel %vm602_vm2, %v569_v29, -inf }
 0x10b   : > { %v1781_v30 = vpop.f32.mrb[2].mxu0  ;;  %v603_v31 = vsel %vm602_vm2, %v564_v26, -inf }
 0x10c   : > { %v2315_v32 = vadd.f32 %v1781_v30, %v443_v27  ;;  %604 = vmax.xlane.f32.xlu0 %v603_v31  ;;  %v573_v33 = vpop.f32.mrb[3].mxu0  ;;  %v2388_v30 = vld [vmem:[%s389_s11 + $0x38] sm:$0xff] }
 0x10d   : > { %v2317_v34 = vadd.f32 %v573_v33, %v442_v28  ;;  %v2019_v28 = vpack.i.bf16 %v2230_v6, %v2224_v3 }
 0x10e   : > { %v612_v36 = vsel %vm602_vm2, %v2315_v32, -inf }
 0x10f   : > { %613 = vmax.xlane.f32.xlu1 %v612_v36  ;;  %v1784_v38 = vpop.f32.mrb[4].mxu0  ;;  %v609_v42 = vsel %vm602_vm2, %v2317_v34, -inf }
 0x110   : > { %v2328_v40 = vadd.f32 %v1784_v38, %v445_v35  ;;  %v583_v41 = vpop.f32.mrb[5].mxu0  ;;  %607 = vmax.xlane.f32.xlu0 %v606_v39 }
 0x111   : > { %v2332_v43 = vadd.f32 %v583_v41, %v444_v37 }
 0x112   : > { %v618_v50 = vsel %vm602_vm2, %v2328_v40, -inf }
 0x113   : > { %v1787_v46 = vpop.f32.mrb[6].mxu0  ;;  %610 = vmax.xlane.f32.xlu1 %v609_v42  ;;  %v615_v47 = vsel %vm602_vm2, %v2332_v43, -inf }
 0x114   : > { %v2342_v48 = vadd.f32 %v1787_v46, %v447_v44  ;;  %v593_v49 = vpop.f32.mrb[7].mxu0  ;;  %616 = vmax.xlane.f32.xlu0 %v615_v47  ;;  %v2029_v47 = vpack.i.bf16 %v2257_v13, %v2255_v12 }
 0x115   : > { %v2346_v51 = vadd.f32 %v593_v49, %v446_v45  ;;  %v2024_v49 = vpack.i.bf16 %v2247_v10, %v2245_v9 }
 0x116   : > { %v624_v53 = vsel %vm602_vm2, %v2342_v48, -inf }
 0x117   : > { %619 = vmax.xlane.f32.xlu1 %v618_v50  ;;  %v621_v52 = vsel %vm602_vm2, %v2346_v51, -inf }
 0x118   : > { %622 = vmax.xlane.f32.xlu0 %v621_v52 }
 0x11b   : > { %625 = vmax.xlane.f32.xlu1 %v624_v53 }
 0x199   : > { %v605_v54 = vpop.xlane.xlu0 %604 }
 0x19a   : > { %v627_v55 = vsub.f32 %v564_v26, %v605_v54  ;;  %v2380_v26 = vld [vmem:[%s389_s11 + $0x28] sm:$0xff] }
 0x19b   : > { %v1924_v27 = vpack.c.bf16 %v2380_v26, %v2378_v25 }
 0x19c   : > { %v635_v56 = vmul.f32 1.442695, %v627_v55  ;;  %v614_v33 = vpop.xlane.xlu1 %613 }
 0x19d   : > { %v608_v57 = vpop.xlane.xlu0 %607  ;;  %1925 = vmatprep.subr.bf16.mxu1 %v1924_v27  ;;  %v630_v36 = vsub.f32 %v2315_v32, %v614_v33 }
 0x19e   : > { %2054 = vpow2.f32 %v635_v56  ;;  %v628_v58 = vsub.f32 %v569_v29, %v608_v57  ;;  %1927 = vmatpush3.bf16.msra.mxu1 %v1924_v27  ;;  %v2386_v29 = vld [vmem:[%s389_s11 + $0x30] sm:$0xff] }
 0x19f   : > { %v1928_v31 = vpack.c.bf16 %v2388_v30, %v2386_v29  ;;  %v641_v41 = vmul.f32 1.442695, %v630_v36 }
 0x1a0   : > { %v637_v59 = vmul.f32 1.442695, %v628_v58  ;;  %v611_v3 = vpop.xlane.xlu1 %610 }
 0x1a1   : > { %1929 = vmatprep.subr.bf16.mxu1 %v1928_v31  ;;  %v629_v6 = vsub.f32 %v2317_v34, %v611_v3  ;;  %v617_v35 = vpop.xlane.xlu0 %616 }
 0x1a2   : > { %2056 = vpow2.f32 %v637_v59  ;;  %1931 = vmatpush3.bf16.msra.mxu1 %v1928_v31  ;;  %v631_v38 = vsub.f32 %v2332_v43, %v617_v35 }
 0x1a3   : > { %v639_v37 = vmul.f32 1.442695, %v629_v6 }
 0x1a4   : > { %v620_v39 = vpop.xlane.xlu1 %619  ;;  %v643_v42 = vmul.f32 1.442695, %v631_v38 }
 0x1a5   : > { %2058 = vpow2.f32 %v639_v37  ;;  %v632_v44 = vsub.f32 %v2328_v40, %v620_v39  ;;  %v623_v10 = vpop.xlane.xlu0 %622 }
 0x1a6   : > { %2060 = vpow2.f32 %v641_v41  ;;  %v633_v13 = vsub.f32 %v2346_v51, %v623_v10 }
 0x1a7   : > { %2062 = vpow2.f32 %v643_v42  ;;  %v645_v1 = vmul.f32 1.442695, %v632_v44 }
 0x1a8   : > { %v2370_v14 = vpop.eup %2054  ;;  %v626_v12 = vpop.xlane.xlu1 %625 }
 0x1a9   : > { %v651_v22 = vsel %vm602_vm2, %v2370_v14, 0.0  ;;  %2064 = vpow2.f32 %v645_v1  ;;  %v634_v9 = vsub.f32 %v2342_v48, %v626_v12 }
 0x1aa   : > { %652 = vadd.xlane.f32.xlu0 %v651_v22 }
 0x1ab   : > { %v649_v50 = vmul.f32 1.442695, %v634_v9 }
 0x1ac   : > { %v2374_v23 = vpop.eup %2056 }
 0x1ad   : > { %v654_v24 = vsel %vm602_vm2, %v2374_v23, 0.0  ;;  %2066 = vpow2.f32 %v649_v50 }
 0x1ae   : > { %655 = vadd.xlane.f32.xlu1 %v654_v24 }
 0x1af   : > { %v2401_v2 = vpop.eup %2058 }
 0x1b0   : > { %v657_v32 = vsel %vm602_vm2, %v2401_v2, 0.0 }
 0x1bf   : > { %2020 = vrot.lane.b32.xlu1 %v2019_v28, %s2142_s12 }
 0x1c0   : > { %2015 = vrot.lane.b32.xlu0 %v2014_v4, %s2142_s12  ;;  %v2403_v4 = vpop.eup %2060 }
 0x1c1   : > { %v2407_v34 = vpop.eup %2062  ;;  %v660_v43 = vsel %vm602_vm2, %v2403_v4, 0.0 }
 0x1c2   : > { %v663_v40 = vsel %vm602_vm2, %v2407_v34, 0.0  ;;  %v2413_v45 = vpop.eup %2064 }
 0x1c3   : > { %v666_v46 = vsel %vm602_vm2, %v2413_v45, 0.0 }
 0x1df   : > { %658 = vadd.xlane.f32.xlu0 %v657_v32 }
 0x1e3   : > { %661 = vadd.xlane.f32.xlu1 %v660_v43  ;;  %664 = vadd.xlane.f32.xlu0 %v663_v40 }
 0x1e7   : > { %667 = vadd.xlane.f32.xlu1 %v666_v46 }
 0x1f8   : > { %2030 = vrot.lane.b32.xlu1 %v2029_v47, %s2142_s12 }
 0x1f9   : > { %2025 = vrot.lane.b32.xlu0 %v2024_v49, %s2142_s12 }
 0x1fc   : > { %831 = vrot.lane.b32.xlu1 %v2268_v15, %s2142_s12  ;;  %v647_v15 = vmul.f32 1.442695, %v633_v13 }
 0x1fd   : > { %829 = vrot.lane.b32.xlu0 %v2235_v8, %s2142_s12  ;;  %v2435_v8 = vpop.eup %2066 }
 0x1fe   : > { %2068 = vpow2.f32 %v647_v15 }
 0x201   : > { %833 = vrot.lane.b32.xlu0 %v2271_v16, %s2142_s12  ;;  %v672_v16 = vsel %vm602_vm2, %v2435_v8, 0.0 }
 0x205   : > { %837 = vrot.lane.b32.xlu0 %v2281_v18, %s2142_s12 }
 0x208   : > { %v2439_v52 = vpop.eup %2068 }
 0x209   : > { %841 = vrot.lane.b32.xlu0 %v2291_v20, %s2142_s12  ;;  %v669_v18 = vsel %vm602_vm2, %v2439_v52, 0.0 }
 0x220   : > { %673 = vadd.xlane.f32.xlu1 %v672_v16 }
 0x224   : > { %670 = vadd.xlane.f32.xlu1 %v669_v18 }
 0x235   : > { %835 = vrot.lane.b32.xlu1 %v2278_v17, %s2142_s12 }
 0x237   : > { %v653_v20 = vpop.xlane.xlu0 %652 }
 0x238   : > { %2070 = vrcp.f32 %v653_v20 }
 0x239   : > { %839 = vrot.lane.b32.xlu1 %v2288_v19, %s2142_s12 }
 0x23b   : > { %v656_v48 = vpop.xlane.xlu1 %655  ;;  %v2016_v51 = vpop.permute.xlu0 %2015 }
 0x23c   : > { %2072 = vrcp.f32 %v656_v48  ;;  %v2018_v53 = vunpack.i.h.bf16 %v2016_v51  ;;  %v2017_v54 = vunpack.i.l.bf16 %v2016_v51  ;;  %v1637_v48 = vld [vmem:[%s2673_s3 + $0x48] sm:$0xff]  ;;  %v1636_v51 = vld [vmem:[%s2673_s3 + $0x40] sm:$0xff] }
 0x23d   : > { %843 = vrot.lane.b32.xlu1 %v2298_v21, %s2142_s12 }
 0x23e   : > { %v1932_v55 = vpack.c.bf16 %v2018_v53, %v2017_v54 }
 0x23f   : > { %v2021_v57 = vpop.permute.xlu1 %2020 }
 0x240   : > { %1934 = vmatprep.subr.msk.bf16.mxu1 %vm2210_vm1, %v1932_v55  ;;  %v2023_v58 = vunpack.i.h.bf16 %v2021_v57  ;;  %v2022_v59 = vunpack.i.l.bf16 %v2021_v57  ;;  %v1639_v57 = vld [vmem:[%s2673_s3 + $0x58] sm:$0xff] }
 0x242   : > { %v2071_v56 = vpop.eup %2070  ;;  %v1938_v11 = vpack.c.bf16 %v2023_v58, %v2022_v59 }
 0x243   : > { %v683_v17 = vmul.f32 %v2071_v56, %v2370_v14 }
 0x245   : > { %1804 = vmatprep.mubr.msk.f32.mxu1 %vm602_vm2, %v683_v17 }
 0x246   : > { %v2073_v19 = vpop.eup %2072 }
 0x247   : > { %v684_v5 = vmul.f32 %v2073_v19, %v2374_v23 }
 0x249   : > { %1805 = vmatmul.mubr.msk.f32.vlgmr.msra.gmra.mrb[0].mxu1 %vm602_vm2, %v684_v5 }
 0x24a   : > { %1937 = vmatpush3.bf16.xpose.msk.msra.mxu1 %vm2210_vm1, %v1932_v55 }
 0x24b   : > { %1940 = vmatprep.subr.msk.bf16.mxu1 %vm2210_vm1, %v1938_v11 }
 0x252   : > { %1943 = vmatpush3.bf16.xpose.msk.msra.mxu1 %vm2210_vm1, %v1938_v11  ;;  %v1638_v11 = vld [vmem:[%s2673_s3 + $0x50] sm:$0xff] }
 0x26c   : > { %v659_v21 = vpop.xlane.xlu0 %658 }
 0x26d   : > { %2074 = vrcp.f32 %v659_v21  ;;  %v1641_v21 = vld [vmem:[%s2673_s3 + $0x68] sm:$0xff] }
 0x270   : > { %v662_v14 = vpop.xlane.xlu1 %661  ;;  %v665_v22 = vpop.xlane.xlu0 %664 }
 0x271   : > { %2076 = vrcp.f32 %v662_v14 }
 0x272   : > { %2078 = vrcp.f32 %v665_v22 }
 0x274   : > { %v668_v24 = vpop.xlane.xlu1 %667  ;;  %v2026_v23 = vpop.permute.xlu0 %2025 }
 0x275   : > { %2080 = vrcp.f32 %v668_v24  ;;  %v2028_v27 = vunpack.i.h.bf16 %v2026_v23  ;;  %v2027_v28 = vunpack.i.l.bf16 %v2026_v23 }
 0x277   : > { %v2075_v31 = vpop.eup %2074  ;;  %v1944_v33 = vpack.c.bf16 %v2028_v27, %v2027_v28  ;;  %v1640_v28 = vld [vmem:[%s2673_s3 + $0x60] sm:$0xff] }
 0x278   : > { %v2031_v3 = vpop.permute.xlu1 %2030  ;;  %v685_v6 = vmul.f32 %v2075_v31, %v2401_v2  ;;  %v830_v43 = vpop.permute.xlu0 %829  ;;  %v1643_v31 = vld [vmem:[%s2673_s3 + $0x78] sm:$0xff] }
 0x279   : > { %v2033_v35 = vunpack.i.h.bf16 %v2031_v3  ;;  %v2032_v36 = vunpack.i.l.bf16 %v2031_v3  ;;  %1946 = vmatprep.subr.msk.bf16.mxu1 %vm2210_vm1, %v1944_v33 }
 0x27a   : > { %1807 = vmatprep.mubr.msk.f32.mxu1 %vm602_vm2, %v685_v6  ;;  %1949 = vmatpush3.bf16.xpose.msk.msra.mxu1 %vm2210_vm1, %v1944_v33 }
 0x27b   : > { %v2077_v37 = vpop.eup %2076  ;;  %v1950_v38 = vpack.c.bf16 %v2033_v35, %v2032_v36 }
 0x27c   : > { %v2079_v39 = vpop.eup %2078  ;;  %v686_v41 = vmul.f32 %v2077_v37, %v2403_v4  ;;  %v832_v2 = vpop.permute.xlu1 %831 }
 0x27d   : > { %1952 = vmatprep.subr.msk.bf16.mxu1 %vm2210_vm1, %v1950_v38  ;;  %v687_v42 = vmul.f32 %v2079_v39, %v2407_v34  ;;  %v834_v49 = vpop.permute.xlu0 %833 }
 0x27e   : > { %1808 = vmatmul.mubr.msk.f32.gmra.mrb[2].mxu1 %vm602_vm2, %v686_v41 }
 0x27f   : > { %v2081_v44 = vpop.eup %2080  ;;  %1810 = vmatprep.mubr.msk.f32.mxu1 %vm602_vm2, %v687_v42 }
 0x280   : > { %v688_v1 = vmul.f32 %v2081_v44, %v2413_v45 }
 0x281   : > { %v838_v45 = vpop.permute.xlu0 %837 }
 0x282   : > { %1811 = vmatmul.mubr.msk.f32.gmra.mrb[4].mxu1 %vm602_vm2, %v688_v1  ;;  %v2039_v1 = vpack.i.bf16 %v2366_v7, %v2360_v62 }
 0x283   : > { %1955 = vmatpush3.bf16.xpose.msk.msra.mxu1 %vm2210_vm1, %v1950_v38  ;;  %v1642_v38 = vld [vmem:[%s2673_s3 + $0x70] sm:$0xff] }
 0x285   : > { %v842_v9 = vpop.permute.xlu0 %841 }
 0x2ad   : > { %v674_v32 = vpop.xlane.xlu1 %673 }
 0x2ae   : > { %2082 = vrcp.f32 %v674_v32 }
 0x2b1   : > { %v671_v4 = vpop.xlane.xlu1 %670 }
 0x2b2   : > { %2084 = vrcp.f32 %v671_v4 }
 0x2b5   : > { %v836_v0 = vpop.permute.xlu1 %835 }
 0x2b8   : > { %v2083_v40 = vpop.eup %2082 }
 0x2b9   : > { %v690_v47 = vmul.f32 %v2083_v40, %v2435_v8  ;;  %v840_v12 = vpop.permute.xlu1 %839 }
 0x2bc   : > { %v2085_v34 = vpop.eup %2084 }
 0x2bd   : > { %v689_v46 = vmul.f32 %v2085_v34, %v2439_v52  ;;  %v844_v10 = vpop.permute.xlu1 %843 }
 0x2bf   : > { %1813 = vmatprep.mubr.msk.f32.mxu1 %vm602_vm2, %v689_v46 }
 0x2c0   : > { %1814 = vmatmul.mubr.msk.f32.gmra.mrb[6].mxu1 %vm602_vm2, %v690_v47 }
 0x2c1   : > { %1832 = vmatprep.mubr.msk.f32.mxu1 %vm448_vm0, %v830_v43 }
 0x2c4   : > { %1833 = vmatmul.mubr.msk.f32.vlgmr.msra.gmra.mrb[8].mxu1 %vm448_vm0, %v832_v2 }
 0x2c5   : > { %1835 = vmatprep.mubr.msk.f32.mxu1 %vm448_vm0, %v834_v49 }
 0x2c8   : > { %1836 = vmatmul.mubr.msk.f32.gmra.mrb[10].mxu1 %vm448_vm0, %v836_v0 }
 0x2c9   : > { %1838 = vmatprep.mubr.msk.f32.mxu1 %vm448_vm0, %v838_v45 }
 0x2cc   : > { %1839 = vmatmul.mubr.msk.f32.gmra.mrb[12].mxu1 %vm448_vm0, %v840_v12 }
 0x2cd   : > { %1841 = vmatprep.mubr.msk.f32.mxu1 %vm448_vm0, %v842_v9 }
 0x2d0   : > { %1842 = vmatmul.mubr.msk.f32.gmra.mrb[14].mxu1 %vm448_vm0, %v844_v10 }
 0x31c   : > { %v2489_v13 = vpop.f32.mrb[0].mxu1 }
 0x31d   : > { %v2491_v50 = vpop.f32.mrb[1].mxu1 }
 0x351   : > { %v2493_v15 = vpop.f32.mrb[2].mxu1 }
 0x352   : > { %v2495_v8 = vpop.f32.mrb[3].mxu1 }
 0x355   : > { %v2497_v16 = vpop.f32.mrb[4].mxu1 }
 0x356   : > { %v2499_v52 = vpop.f32.mrb[5].mxu1 }
 0x393   : > { %v2501_v18 = vpop.f32.mrb[6].mxu1 }
 0x394   : > { %v2503_v20 = vpop.f32.mrb[7].mxu1 }
 0x397   : > { %v1834_v53 = vpop.f32.mrb[8].mxu1 }
 0x398   : > { %v965_v54 = vadd.f32 %v1834_v53, %v1637_v48  ;;  %v959_v55 = vpop.f32.mrb[9].mxu1 }
 0x399   : > { %v960_v56 = vadd.f32 %v1636_v51, %v959_v55 }
 0x39a   : > { %v1001_v17 = vsel %vm602_vm2, %v965_v54, -inf }
 0x39b   : > { %1002 = vmax.xlane.f32.xlu1 %v1001_v17  ;;  %v1837_v58 = vpop.f32.mrb[10].mxu1  ;;  %v998_v59 = vsel %vm602_vm2, %v960_v56, -inf }
 0x39c   : > { %v975_v19 = vadd.f32 %v1837_v58, %v1639_v57  ;;  %v969_v5 = vpop.f32.mrb[11].mxu1  ;;  %999 = vmax.xlane.f32.xlu0 %v998_v59 }
 0x39d   : > { %v970_v22 = vadd.f32 %v1638_v11, %v969_v5 }
 0x39e   : > { %v1007_v14 = vsel %vm602_vm2, %v975_v19, -inf }
 0x39f   : > { %v1840_v24 = vpop.f32.mrb[12].mxu1  ;;  %v1004_v35 = vsel %vm602_vm2, %v970_v22, -inf }
 0x3a0   : > { %v985_v23 = vadd.f32 %v1840_v24, %v1641_v21  ;;  %v979_v27 = vpop.f32.mrb[13].mxu1  ;;  %1008 = vmax.xlane.f32.xlu0 %v1007_v14 }
 0x3a1   : > { %v980_v3 = vadd.f32 %v1640_v28, %v979_v27 }
 0x3a2   : > { %v1013_v33 = vsel %vm602_vm2, %v985_v23, -inf }
 0x3a3   : > { %1014 = vmax.xlane.f32.xlu1 %v1013_v33  ;;  %v1843_v6 = vpop.f32.mrb[14].mxu1  ;;  %v1010_v42 = vsel %vm602_vm2, %v980_v3, -inf }
 0x3a4   : > { %v995_v36 = vadd.f32 %v1843_v6, %v1643_v31  ;;  %v989_v37 = vpop.f32.mrb[15].mxu1  ;;  %1005 = vmax.xlane.f32.xlu0 %v1004_v35 }
 0x3a5   : > { %v990_v41 = vadd.f32 %v1642_v38, %v989_v37 }
 0x3a6   : > { %v1019_v39 = vsel %vm602_vm2, %v995_v36, -inf }
 0x3a7   : > { %1020 = vmax.xlane.f32.xlu1 %v1019_v39  ;;  %v1016_v44 = vsel %vm602_vm2, %v990_v41, -inf }
 0x3a8   : > { %1011 = vmax.xlane.f32.xlu0 %v1010_v42  ;;  %v2044_v42 = vpack.i.bf16 %v2380_v26, %v2378_v25 }
 0x3ac   : > { %1017 = vmax.xlane.f32.xlu0 %v1016_v44 }
 0x3b8   : > { %2040 = vrot.lane.b32.xlu1 %v2039_v1, %s2142_s12 }
 0x3c2   : > { %2035 = vrot.lane.b32.xlu0 %v2034_v63, %s2142_s12 }
 0x428   : > { %v1003_v2 = vpop.xlane.xlu1 %1002 }
 0x429   : > { %v1023_v32 = vsub.f32 %v965_v54, %v1003_v2  ;;  %v1000_v4 = vpop.xlane.xlu0 %999 }
 0x42a   : > { %v1022_v43 = vsub.f32 %v960_v56, %v1000_v4 }
 0x42b   : > { %v1032_v40 = vmul.f32 1.442695, %v1023_v32 }
 0x42c   : > { %v1030_v34 = vmul.f32 1.442695, %v1022_v43 }
 0x42d   : > { %2086 = vpow2.f32 %v1032_v40  ;;  %v1009_v46 = vpop.xlane.xlu0 %1008 }
 0x42e   : > { %2088 = vpow2.f32 %v1030_v34  ;;  %v1025_v47 = vsub.f32 %v975_v19, %v1009_v46 }
 0x430   : > { %v1036_v49 = vmul.f32 1.442695, %v1025_v47  ;;  %v1015_v0 = vpop.xlane.xlu1 %1014 }
 0x431   : > { %v1027_v62 = vsub.f32 %v985_v23, %v1015_v0  ;;  %v1006_v7 = vpop.xlane.xlu0 %1005 }
 0x432   : > { %2090 = vpow2.f32 %v1036_v49  ;;  %v1024_v45 = vsub.f32 %v970_v22, %v1006_v7 }
 0x433   : > { %v1040_v12 = vmul.f32 1.442695, %v1027_v62 }
 0x434   : > { %v1034_v9 = vmul.f32 1.442695, %v1024_v45  ;;  %v1021_v60 = vpop.xlane.xlu1 %1020 }
 0x435   : > { %2092 = vpow2.f32 %v1040_v12  ;;  %v1029_v61 = vsub.f32 %v995_v36, %v1021_v60  ;;  %v1012_v63 = vpop.xlane.xlu0 %1011 }
 0x436   : > { %2094 = vpow2.f32 %v1034_v9  ;;  %v1026_v10 = vsub.f32 %v980_v3, %v1012_v63 }
 0x437   : > { %v2544_v48 = vpop.eup %2086  ;;  %v1044_v51 = vmul.f32 1.442695, %v1029_v61 }
 0x438   : > { %v2089_v53 = vpop.eup %2088  ;;  %v1038_v54 = vmul.f32 1.442695, %v1026_v10  ;;  %v1049_v55 = vsel %vm602_vm2, %v2544_v48, 0.0  ;;  %v2041_v58 = vpop.permute.xlu1 %2040 }
 0x439   : > { %2096 = vpow2.f32 %v1044_v51  ;;  %1050 = vadd.xlane.f32.xlu1 %v1049_v55  ;;  %v1018_v56 = vpop.xlane.xlu0 %1017  ;;  %v1046_v57 = vsel %vm602_vm2, %v2089_v53, 0.0  ;;  %v2043_v21 = vunpack.i.h.bf16 %v2041_v58  ;;  %v2042_v14 = vunpack.i.l.bf16 %v2041_v58  ;;  %v1288_v58 = vld [vmem:[%s2675_s5 + $0x8] sm:$0xff] }
 0x43a   : > { %2098 = vpow2.f32 %v1038_v54  ;;  %v1028_v17 = vsub.f32 %v990_v41, %v1018_v56  ;;  %1047 = vadd.xlane.f32.xlu0 %v1046_v57  ;;  %v2049_v41 = vpack.i.bf16 %v2388_v30, %v2386_v29 }
 0x43b   : > { %v1960_v3 = vpack.c.bf16 %v2043_v21, %v2042_v14 }
 0x43c   : > { %v2549_v59 = vpop.eup %2090  ;;  %v1042_v19 = vmul.f32 1.442695, %v1028_v17  ;;  %v1287_v17 = vld [vmem:[%s2675_s5] sm:$0xff] }
 0x43d   : > { %v1055_v5 = vsel %vm602_vm2, %v2549_v59, 0.0  ;;  %v2036_v11 = vpop.permute.xlu0 %2035 }
 0x43e   : > { %2100 = vpow2.f32 %v1042_v19  ;;  %1056 = vadd.xlane.f32.xlu1 %v1055_v5  ;;  %v2038_v22 = vunpack.i.h.bf16 %v2036_v11  ;;  %v2037_v24 = vunpack.i.l.bf16 %v2036_v11  ;;  %v1289_v19 = vld [vmem:[%s2675_s5 + $0x10] sm:$0xff]  ;;  %v1972_v5 = vpack.c.bf16 %v1288_v58, %v1287_v17 }
 0x43f   : > { %v2553_v23 = vpop.eup %2092 }
 0x440   : > { %v2555_v27 = vpop.eup %2094  ;;  %v1061_v28 = vsel %vm602_vm2, %v2553_v23, 0.0  ;;  %v1956_v31 = vpack.c.bf16 %v2038_v22, %v2037_v24 }
 0x441   : > { %v1052_v33 = vsel %vm602_vm2, %v2555_v27, 0.0 }
 0x442   : > { %1062 = vadd.xlane.f32.xlu1 %v1061_v28  ;;  %1053 = vadd.xlane.f32.xlu0 %v1052_v33 }
 0x443   : > { %v2561_v6 = vpop.eup %2096  ;;  %1957 = vmatprep.subr.bf16.mxu0 %v1956_v31  ;;  %1980 = vmatprep.subr.bf16.mxu1 %v1956_v31 }
 0x444   : > { %v2099_v35 = vpop.eup %2098  ;;  %v1067_v36 = vsel %vm602_vm2, %v2561_v6, 0.0  ;;  %1959 = vmatpush3.bf16.msra.mxu0 %v1956_v31  ;;  %1984 = vmatpush3.bf16.msra.mxu1 %v1956_v31 }
 0x445   : > { %v1058_v37 = vsel %vm602_vm2, %v2099_v35, 0.0  ;;  %1961 = vmatprep.subr.bf16.mxu0 %v1960_v3  ;;  %1981 = vmatprep.subr.bf16.mxu1 %v1960_v3 }
 0x446   : > { %1068 = vadd.xlane.f32.xlu1 %v1067_v36  ;;  %1059 = vadd.xlane.f32.xlu0 %v1058_v37 }
 0x448   : > { %v2101_v38 = vpop.eup %2100  ;;  %1963 = vmatpush3.bf16.msra.mxu0 %v1960_v3  ;;  %1985 = vmatpush3.bf16.msra.mxu1 %v1960_v3 }
 0x449   : > { %v1064_v39 = vsel %vm602_vm2, %v2101_v38, 0.0 }
 0x44a   : > { %1065 = vadd.xlane.f32.xlu1 %v1064_v39 }
 0x45b   : > { %2050 = vrot.lane.b32.xlu1 %v2049_v41, %s2142_s12 }
 0x45c   : > { %2045 = vrot.lane.b32.xlu0 %v2044_v42, %s2142_s12 }
 0x4c6   : > { %v1051_v44 = vpop.xlane.xlu1 %1050 }
 0x4c7   : > { %v1048_v1 = vpop.xlane.xlu0 %1047 }
 0x4c8   : > { %2102 = vrcp.f32 %v1048_v1 }
 0x4c9   : > { %2104 = vrcp.f32 %v1051_v44 }
 0x4cb   : > { %v1057_v2 = vpop.xlane.xlu1 %1056 }
 0x4cf   : > { %v1063_v32 = vpop.xlane.xlu1 %1062  ;;  %v1054_v4 = vpop.xlane.xlu0 %1053 }
 0x4d0   : > { %2106 = vrcp.f32 %v1063_v32  ;;  %v1428_v32 = vld [vmem:[%s2626_s21] sm:$0xff] }
 0x4d2   : > { %v2103_v43 = vpop.eup %2102 }
 0x4d3   : > { %v1069_v40 = vpop.xlane.xlu1 %1068  ;;  %v1060_v34 = vpop.xlane.xlu0 %1059  ;;  %v1078_v46 = vmul.f32 %v2103_v43, %v2089_v53 }
 0x4d4   : > { %2108 = vrcp.f32 %v1060_v34  ;;  %v2105_v7 = vpop.eup %2104 }
 0x4d5   : > { %1860 = vmatprep.mubr.msk.f32.mxu0 %vm602_vm2, %v1078_v46  ;;  %2110 = vrcp.f32 %v1054_v4  ;;  %v1079_v51 = vmul.f32 %v2105_v7, %v2544_v48  ;;  %v1431_v46 = vld [vmem:[%s2626_s21 + $0x18] sm:$0xff] }
 0x4d6   : > { %2112 = vrcp.f32 %v1057_v2 }
 0x4d7   : > { %v1066_v25 = vpop.xlane.xlu1 %1065  ;;  %v2046_v26 = vpop.permute.xlu0 %2045 }
 0x4d8   : > { %2114 = vrcp.f32 %v1066_v25  ;;  %v2048_v29 = vunpack.i.h.bf16 %v2046_v26  ;;  %v2047_v30 = vunpack.i.l.bf16 %v2046_v26 }
 0x4d9   : > { %2116 = vrcp.f32 %v1069_v40 }
 0x4da   : > { %v1964_v47 = vpack.c.bf16 %v2048_v29, %v2047_v30  ;;  %v2107_v45 = vpop.eup %2106  ;;  %v1430_v29 = vld [vmem:[%s2626_s21 + $0x10] sm:$0xff] }
 0x4db   : > { %v2051_v49 = vpop.permute.xlu1 %2050  ;;  %v1083_v53 = vmul.f32 %v2107_v45, %v2553_v23 }
 0x4dc   : > { %v2053_v0 = vunpack.i.h.bf16 %v2051_v49  ;;  %v2052_v62 = vunpack.i.l.bf16 %v2051_v49  ;;  %1965 = vmatprep.subr.bf16.mxu0 %v1964_v47  ;;  %1982 = vmatprep.subr.bf16.mxu1 %v1964_v47 }
 0x4dd   : > { %1967 = vmatpush3.bf16.msra.mxu0 %v1964_v47  ;;  %1986 = vmatpush3.bf16.msra.mxu1 %v1964_v47 }
 0x4de   : > { %v1968_v12 = vpack.c.bf16 %v2053_v0, %v2052_v62  ;;  %v2109_v9 = vpop.eup %2108  ;;  %v1433_v62 = vld [vmem:[%s2626_s21 + $0x28] sm:$0xff] }
 0x4df   : > { %v2111_v60 = vpop.eup %2110  ;;  %v1082_v61 = vmul.f32 %v2109_v9, %v2099_v35 }
 0x4e0   : > { %1969 = vmatprep.subr.bf16.mxu0 %v1968_v12  ;;  %1983 = vmatprep.subr.bf16.mxu1 %v1968_v12  ;;  %v2113_v63 = vpop.eup %2112  ;;  %v1080_v55 = vmul.f32 %v2111_v60, %v2555_v27 }
 0x4e1   : > { %1971 = vmatpush3.bf16.msra.mxu0 %v1968_v12  ;;  %1987 = vmatpush3.bf16.msra.mxu1 %v1968_v12  ;;  %v1081_v57 = vmul.f32 %v2113_v63, %v2549_v59  ;;  %v1290_v59 = vld [vmem:[%s2675_s5 + $0x18] sm:$0xff]  ;;  %v1432_v12 = vld [vmem:[%s2626_s21 + $0x20] sm:$0xff] }
 0x4e2   : > { %v2115_v10 = vpop.eup %2114  ;;  %1866 = vmatprep.mubr.msk.f32.mxu1 %vm602_vm2, %v1082_v61  ;;  %v1976_v11 = vpack.c.bf16 %v1290_v59, %v1289_v19  ;;  %1973 = vmatprep.subr.bf16.mxu0 %v1972_v5 }
 0x4e3   : > { %v2117_v54 = vpop.eup %2116  ;;  %v1084_v56 = vmul.f32 %v2115_v10, %v2101_v38  ;;  %v1435_v10 = vld [vmem:[%s2626_s21 + $0x38] sm:$0xff] }
 0x4e4   : > { %1861 = vmatmul.mubr.msk.f32.vlgmr.msra.gmra.mrb[8].mxu0 %vm602_vm2, %v1079_v51  ;;  %1867 = vmatmul.mubr.msk.f32.vlgmr.msra.gmra.mrb[16].mxu1 %vm602_vm2, %v1083_v53  ;;  %v1085_v48 = vmul.f32 %v2117_v54, %v2561_v6  ;;  %v1434_v54 = vld [vmem:[%s2626_s21 + $0x30] sm:$0xff] }
 0x4e5   : > { %1863 = vmatprep.mubr.msk.f32.mxu0 %vm602_vm2, %v1080_v55  ;;  %1869 = vmatprep.mubr.msk.f32.mxu1 %vm602_vm2, %v1084_v56 }
 0x4e6   : > { %1975 = vmatpush3.bf16.msra.mxu0 %v1972_v5 }
 0x4e7   : > { %1977 = vmatprep.subr.bf16.mxu0 %v1976_v11 }
 0x4e8   : > { %1864 = vmatmul.mubr.msk.f32.gmra.mrb[10].mxu0 %vm602_vm2, %v1081_v57  ;;  %1870 = vmatmul.mubr.msk.f32.gmra.mrb[18].mxu1 %vm602_vm2, %v1085_v48 }
 0x4ea   : > { %1979 = vmatpush3.bf16.msra.mxu0 %v1976_v11 }
 0x5b7   : > { %v1862_v21 = vpop.f32.mrb[8].mxu0  ;;  %v1868_v14 = vpop.f32.mrb[16].mxu1 }
 0x5b8   : > { %v1228_v22 = vpop.f32.mrb[17].mxu1  ;;  %1257 = vrot.lane.b32.xlu1 %v1862_v21, %s2143_s18  ;;  %v1208_v24 = vpop.f32.mrb[9].mxu0 }
 0x5b9   : > { %1255 = vrot.lane.b32.xlu0 %v1208_v24, %s2143_s18 }
 0x5bb   : > { %v1865_v23 = vpop.f32.mrb[10].mxu0  ;;  %v1871_v27 = vpop.f32.mrb[18].mxu1 }
 0x5bc   : > { %v1238_v28 = vpop.f32.mrb[19].mxu1  ;;  %1261 = vrot.lane.b32.xlu1 %v1865_v23, %s2143_s18  ;;  %v1218_v31 = vpop.f32.mrb[11].mxu0 }
 0x5bd   : > { %1259 = vrot.lane.b32.xlu0 %v1218_v31, %s2143_s18 }
 0x5c0   : > { %1265 = vrot.lane.b32.xlu1 %v1868_v14, %s2143_s18 }
 0x5c1   : > { %1263 = vrot.lane.b32.xlu0 %v1228_v22, %s2143_s18 }
 0x5c4   : > { %1269 = vrot.lane.b32.xlu1 %v1871_v27, %s2143_s18 }
 0x5c5   : > { %1267 = vrot.lane.b32.xlu0 %v1238_v28, %s2143_s18 }
 0x62a   : > { %v1258_v33 = vpop.permute.xlu1 %1257 }
 0x62b   : > { %v1256_v3 = vpop.permute.xlu0 %1255  ;;  %v1280_v35 = vsel %vm448_vm0, %v2489_v13, %v1258_v33 }
 0x62c   : > { %v1279_v6 = vsel %vm448_vm0, %v2491_v50, %v1256_v3 }
 0x62d   : > { %1880 = vmatprep.mubr.msk.f32.mxu0 %vm1298_vm3, %v1279_v6 }
 0x62e   : > { %1881 = vmatmul.mubr.msk.f32.vlgmr.msra.gmra.mrb[12].mxu0 %vm1298_vm3, %v1280_v35  ;;  %v1262_v36 = vpop.permute.xlu1 %1261 }
 0x62f   : > { %v1260_v37 = vpop.permute.xlu0 %1259  ;;  %v1282_v39 = vsel %vm448_vm0, %v2493_v15, %v1262_v36 }
 0x630   : > { %v1281_v38 = vsel %vm448_vm0, %v2495_v8, %v1260_v37 }
 0x631   : > { %1883 = vmatprep.mubr.msk.f32.mxu0 %vm1298_vm3, %v1281_v38 }
 0x632   : > { %v1266_v41 = vpop.permute.xlu1 %1265  ;;  %1884 = vmatmul.mubr.msk.f32.gmra.mrb[14].mxu0 %vm1298_vm3, %v1282_v39 }
 0x633   : > { %v1264_v50 = vpop.permute.xlu0 %1263  ;;  %v1284_v42 = vsel %vm448_vm0, %v2497_v16, %v1266_v41  ;;  %v1668_v16 = vld [vmem:[%s2676_s6] ss:$0 sm:$0xff] }
 0x634   : > { %v1283_v13 = vsel %vm448_vm0, %v2499_v52, %v1264_v50 }
 0x635   : > { %1886 = vmatprep.mubr.msk.f32.mxu0 %vm1298_vm3, %v1283_v13 }
 0x636   : > { %v1270_v8 = vpop.permute.xlu1 %1269  ;;  %1887 = vmatmul.mubr.msk.f32.gmra.mrb[16].mxu0 %vm1298_vm3, %v1284_v42 }
 0x637   : > { %v1268_v44 = vpop.permute.xlu0 %1267  ;;  %v1286_v1 = vsel %vm448_vm0, %v2501_v18, %v1270_v8 }
 0x638   : > { %v1285_v15 = vsel %vm448_vm0, %v2503_v20, %v1268_v44  ;;  %v1429_v20 = vld [vmem:[%s2626_s21 + $0x8] sm:$0xff] }
 0x639   : > { %1889 = vmatprep.mubr.msk.f32.mxu0 %vm1298_vm3, %v1285_v15 }
 0x63a   : > { %1890 = vmatmul.mubr.msk.f32.gmra.mrb[18].mxu0 %vm1298_vm3, %v1286_v1 }
 0x701   : > { %v1882_v52 = vpop.f32.mrb[12].mxu0 }
 0x702   : > { %v1395_v18 = vadd.f32 %v1882_v52, %v1668_v16  ;;  %v1389_v2 = vpop.f32.mrb[13].mxu0 }
 0x703   : > { %v1390_v4 = vadd.f32 %v1668_v16, %v1389_v2 }
 0x704   : > { %v1437_v43 = vadd.f32 %v1429_v20, %v1395_v18 }
 0x705   : > { %v1436_v40 = vadd.f32 %v1428_v32, %v1390_v4  ;;  %v1885_v34 = vpop.f32.mrb[14].mxu0 }
 0x706   : > { %1445 = vst.msk [vmem:[%s2637_s30 + $0x8] sm:$0xff] %vm1298_vm3, %v1437_v43  ;;  %v1405_v25 = vadd.f32 %v1885_v34, %v1668_v16  ;;  %v1399_v26 = vpop.f32.mrb[15].mxu0 }
 0x707   : > { %1444 = vst.msk [vmem:[%s2637_s30] sm:$0xff] %vm1298_vm3, %v1436_v40  ;;  %v1400_v30 = vadd.f32 %v1668_v16, %v1399_v26 }
 0x708   : > { %v1439_v47 = vadd.f32 %v1431_v46, %v1405_v25 }
 0x709   : > { %v1438_v49 = vadd.f32 %v1430_v29, %v1400_v30  ;;  %v1888_v0 = vpop.f32.mrb[16].mxu0 }
 0x70a   : > { %1447 = vst.msk [vmem:[%s2637_s30 + $0x18] sm:$0xff] %vm1298_vm3, %v1439_v47  ;;  %v1415_v7 = vadd.f32 %v1888_v0, %v1668_v16  ;;  %v1409_v45 = vpop.f32.mrb[17].mxu0 }
 0x70b   : > { %1446 = vst.msk [vmem:[%s2637_s30 + $0x10] sm:$0xff] %vm1298_vm3, %v1438_v49  ;;  %v1410_v9 = vadd.f32 %v1668_v16, %v1409_v45 }
 0x70c   : > { %v1441_v60 = vadd.f32 %v1433_v62, %v1415_v7 }
 0x70d   : > { %v1440_v61 = vadd.f32 %v1432_v12, %v1410_v9  ;;  %v1891_v63 = vpop.f32.mrb[18].mxu0 }
 0x70e   : > { %1449 = vst.msk [vmem:[%s2637_s30 + $0x28] sm:$0xff] %vm1298_vm3, %v1441_v60  ;;  %v1425_v51 = vadd.f32 %v1891_v63, %v1668_v16  ;;  %v1419_v53 = vpop.f32.mrb[19].mxu0 }
 0x70f   : > { %1448 = vst.msk [vmem:[%s2637_s30 + $0x20] sm:$0xff] %vm1298_vm3, %v1440_v61  ;;  %v1420_v55 = vadd.f32 %v1668_v16, %v1419_v53 }
 0x710   : > { %v1443_v56 = vadd.f32 %v1435_v10, %v1425_v51 }
 0x711   : > { %v1442_v57 = vadd.f32 %v1434_v54, %v1420_v55 }
 0x712   : > { %1451 = vst.msk [vmem:[%s2637_s30 + $0x38] sm:$0xff] %vm1298_vm3, %v1443_v56 }
 0x713   : > { %1450 = vst.msk [vmem:[%s2637_s30 + $0x30] sm:$0xff] %vm1298_vm3, %v1442_v57 }
 0x714 PF: > { %s17_s26 = sadd.s32 1, %s2140_s26   ;;  %s2680_s24 = smov %s2136_s25 }
 0x715   : > { %p14_p5 = scmp.ge.s32.totalorder %s17_s26, 4   ;;  %s2681_s25 = smov %s2683_s27 }
 0x717   :  { %16 = sbr.rel (!%p14_p5) target bundleno = 2 (0x2), region = 91 }

</bundles_post_ra>
